<compile_context>
chip_gen: v7x
topology: tpu7x:2x2x1
jax: 0.10.0
libtpu: 0.0.40
codegen_flags: <defaults>
</compile_context>

<pallas_src>
import jax
import jax.numpy as jnp
from jax.experimental import pallas as pl
from jax.experimental.pallas import tpu as pltpu

LEAKY_SLOPE = 0.01     # nn.LeakyReLU() default negative_slope
BN_EPS = 1e-5          # nn.BatchNorm2d default eps
_W_OFF = 8             # sublane-aligned column offset of the image inside the padded scratch


# --------------------------------------------------------------------------- kernel
def _conv3x3_bias_lrelu(xpad, w, b, H, W):
    """Fused 3x3 'SAME' conv + bias + LeakyReLU on a zero-haloed image.

    BatchNorm scale is pre-folded into `w`, and conv-bias + BN shift into `b`.

    xpad : (H+2, W+2*_W_OFF, C) f32; image at rows 1..H, cols _W_OFF.._W_OFF+W-1,
           with a zero halo immediately around it.
    w    : (9*C, Cout) bf16  (HWIO 3x3 weight flattened, BN scale folded in)
    b    : (1, Cout) f32     (conv bias + BN shift folded)
    returns (H*W, Cout) f32
    """
    C = xpad.shape[-1]
    cols = []
    for dh in range(3):                                   # im2col: 9 shifted views
        for dw in range(3):
            c0 = _W_OFF - 1 + dw
            cols.append(xpad[dh:dh + H, c0:c0 + W, :].reshape(H * W, C))
    patches = jnp.concatenate(cols, axis=-1)              # (H*W, 9*C)
    y = jnp.dot(patches.astype(jnp.bfloat16), w,          # one big MXU matmul, bf16 in
                preferred_element_type=jnp.float32)       # f32 accumulation
    y = y + b                                             # folded conv-bias + BN shift
    return jnp.maximum(y, LEAKY_SLOPE * y)                # LeakyReLU(0.01): mul + max only


def _conv_block_kernel(x_ref, w1_ref, b1_ref, w2_ref, b2_ref,
                       o_ref, pad1, pad2):
    H, W, Cout = o_ref.shape[1], o_ref.shape[2], o_ref.shape[3]

    # Re-zero halos every step (cheap; keeps grid steps independent -> safe for "parallel").
    pad1[...] = jnp.zeros_like(pad1)
    pad2[...] = jnp.zeros_like(pad2)

    # ---- conv1 (+ folded BN) + LeakyReLU ---------------------------------------
    pad1[1:H + 1, _W_OFF:_W_OFF + W, :] = x_ref[0]
    y1 = _conv3x3_bias_lrelu(pad1[...], w1_ref[...], b1_ref[...], H, W)

    # TODO(synk): nn.Dropout between the two convs is identity in eval mode; omitted.

    # ---- conv2 (+ folded BN) + LeakyReLU (intermediate never leaves VMEM) ------
    pad2[1:H + 1, _W_OFF:_W_OFF + W, :] = y1.reshape(H, W, Cout)
    y2 = _conv3x3_bias_lrelu(pad2[...], w2_ref[...], b2_ref[...], H, W)

    o_ref[0] = y2.reshape(H, W, Cout)                     # one bulk store of the whole tile


# --------------------------------------------------------------------------- wrapper
def conv_block_forward(x_nchw, layer1, layer2):
    """Fused ConvBlock forward. x_nchw: (N, Cin, H, W) f32 -> (N, Cout, H, W) f32."""
    w1, b1 = layer1
    w2, b2 = layer2
    N, Cin, H, W = x_nchw.shape
    Cout = w1.shape[-1]
    x = jnp.transpose(x_nchw, (0, 2, 3, 1))               # NHWC: channels -> lane dim
    wpad = W + 2 * _W_OFF

    # Note: for large resolutions / channel counts, add an H-tile grid axis with a
    # 2-row halo and set vmem_limit_bytes (v7x has 64 MiB VMEM vs 128 MiB on v5e/v6e).
    out = pl.pallas_call(
        _conv_block_kernel,
        out_shape=jax.ShapeDtypeStruct((N, H, W, Cout), jnp.float32),
        grid=(N,),
        in_specs=[
            pl.BlockSpec((1, H, W, Cin), lambda n: (n, 0, 0, 0)),
            pl.BlockSpec((9 * Cin, Cout), lambda n: (0, 0)),
            pl.BlockSpec((1, Cout), lambda n: (0, 0)),
            pl.BlockSpec((9 * Cout, Cout), lambda n: (0, 0)),
            pl.BlockSpec((1, Cout), lambda n: (0, 0)),
        ],
        out_specs=pl.BlockSpec((1, H, W, Cout), lambda n: (n, 0, 0, 0)),
        scratch_shapes=[
            pltpu.VMEM((H + 2, wpad, Cin), jnp.float32),   # zero-padded input
            pltpu.VMEM((H + 2, wpad, Cout), jnp.float32),  # zero-padded intermediate
        ],
        compiler_params=pltpu.CompilerParams(
            dimension_semantics=("parallel",)),            # v7x: batch over both TensorCores
    )(x, w1, b1.reshape(1, -1), w2, b2.reshape(1, -1))

    return jnp.transpose(out, (0, 3, 1, 2))                # back to NCHW


# --------------------------------------------------------------------------- params
def init_raw_params(key, cin, cout):
    """PyTorch-style raw parameters for the two (Conv2d + BatchNorm2d) layers."""
    raw = []
    c_in = cin
    for _ in range(2):
        key, kw, kb, kg, kbeta, km, kv = jax.random.split(key, 7)
        fan_in = c_in * 9
        w = jax.random.normal(kw, (cout, c_in, 3, 3), jnp.float32) / jnp.sqrt(fan_in)
        b = 0.1 * jax.random.normal(kb, (cout,), jnp.float32)
        gamma = 1.0 + 0.1 * jax.random.normal(kg, (cout,), jnp.float32)
        beta = 0.1 * jax.random.normal(kbeta, (cout,), jnp.float32)
        mean = 0.1 * jax.random.normal(km, (cout,), jnp.float32)
        var = 0.5 + jax.random.uniform(kv, (cout,), jnp.float32)
        raw.append((w, b, gamma, beta, mean, var))
        c_in = cout
    return raw


def fold_layer(w_oihw, b_conv, gamma, beta, mean, var):
    """Fold conv bias + inference BatchNorm fully into (bf16 weight matrix, f32 bias).

    conv(x, W)*s + (beta + s*(b_conv - mean)) == BN(conv(x, W) + b_conv), s = gamma/sqrt(var+eps).
    Scale is applied to the f32 weights BEFORE the bf16 cast.
    """
    cout, cin = w_oihw.shape[0], w_oihw.shape[1]
    w_mat = jnp.transpose(w_oihw, (2, 3, 1, 0)).reshape(9 * cin, cout)   # OIHW -> HWIO -> (9*Cin, Cout)
    scale = gamma / jnp.sqrt(var + BN_EPS)
    w_fold = w_mat * scale[None, :]
    bias = beta + scale * (b_conv - mean)
    return w_fold.astype(jnp.bfloat16), bias


# --------------------------------------------------------------------------- pure-JAX reference
def ref_conv_block(x_nchw, raw):
    """f32 reference matching the PyTorch eval-mode ConvBlock."""
    y = x_nchw
    for (w, b, gamma, beta, mean, var) in raw:
        y = jax.lax.conv_general_dilated(
            y, w, (1, 1), 'SAME',
            dimension_numbers=('NCHW', 'OIHW', 'NCHW'),
            precision=jax.lax.Precision.HIGHEST)
        y = y + b[None, :, None, None]
        y = (y - mean[None, :, None, None]) * (
            gamma[None, :, None, None] / jnp.sqrt(var[None, :, None, None] + BN_EPS)
        ) + beta[None, :, None, None]
        y = jnp.where(y >= 0, y, LEAKY_SLOPE * y)
        # Dropout between the layers is identity in eval mode.
    return y


# --------------------------------------------------------------------------- main
if __name__ == "__main__":
    N, Cin, H, W = 2, 4, 16, 16
    Cout = 32
    key = jax.random.PRNGKey(0)
    kx, kp = jax.random.split(key)
    x = jax.random.normal(kx, (N, Cin, H, W), jnp.float32)   # NCHW, like PyTorch

    raw = init_raw_params(kp, Cin, Cout)
    layer1 = fold_layer(*raw[0])
    layer2 = fold_layer(*raw[1])

    out = conv_block_forward(x, layer1, layer2)
    out = jax.block_until_ready(out)

    ref = ref_conv_block(x, raw)
    assert out.shape == ref.shape == (N, Cout, H, W), (out.shape, ref.shape)
    max_err = float(jnp.max(jnp.abs(out - ref)))
    # bf16 MXU path (weights with BN scale folded in) vs. the f32 HIGHEST reference.
    assert jnp.allclose(out, ref, rtol=2e-2, atol=2e-2), max_err

    print("KERNEL_OK")
</pallas_src>

<mosaic_0001>
module attributes {stable_mosaic.version = 11 : i64} {
  func.func @_conv_block_kernel(%arg0: i32, %arg1: memref<1x16x16x4xf32, #tpu.memory_space<vmem>>, %arg2: memref<36x32xbf16, #tpu.memory_space<vmem>>, %arg3: memref<1x32xf32, #tpu.memory_space<vmem>>, %arg4: memref<288x32xbf16, #tpu.memory_space<vmem>>, %arg5: memref<1x32xf32, #tpu.memory_space<vmem>>, %arg6: memref<1x16x16x32xf32, #tpu.memory_space<vmem>>, %arg7: memref<18x32x4xf32, #tpu.memory_space<vmem>>, %arg8: memref<18x32x32xf32, #tpu.memory_space<vmem>>) attributes {dimension_semantics = [#tpu.dimension_semantics<parallel>], iteration_bounds = array<i64: 2>, scalar_prefetch = 0 : i64, scratch_operands = 2 : i64, tpu.core_type = #tpu.core_type<tc>, window_params = [{transform_indices = @transform_0, window_bounds = array<i64: 1, 16, 16, 4>}, {pipeline_mode = #tpu.pipeline_mode<synchronous>, transform_indices = @transform_1, window_bounds = array<i64: 36, 32>}, {pipeline_mode = #tpu.pipeline_mode<synchronous>, transform_indices = @transform_2, window_bounds = array<i64: 1, 32>}, {pipeline_mode = #tpu.pipeline_mode<synchronous>, transform_indices = @transform_3, window_bounds = array<i64: 288, 32>}, {pipeline_mode = #tpu.pipeline_mode<synchronous>, transform_indices = @transform_4, window_bounds = array<i64: 1, 32>}, {transform_indices = @transform_5, window_bounds = array<i64: 1, 16, 16, 32>}]} {
    %cst = arith.constant 0.000000e+00 : f32
    %0 = vector.broadcast %cst : f32 to vector<18x32x4xf32>
    %c0 = arith.constant 0 : index
    %c0_0 = arith.constant 0 : index
    %c0_1 = arith.constant 0 : index
    %1 = vector.load %arg7[%c0, %c0_0, %c0_1] : memref<18x32x4xf32, #tpu.memory_space<vmem>>, vector<18x32x4xf32>
    tpu.vector_store %arg7[%c0, %c0_0, %c0_1], %0 {strides = array<i32>} : memref<18x32x4xf32, #tpu.memory_space<vmem>>, vector<18x32x4xf32>,
    %cst_2 = arith.constant 0.000000e+00 : f32
    %2 = vector.broadcast %cst_2 : f32 to vector<18x32x32xf32>
    %c0_3 = arith.constant 0 : index
    %c0_4 = arith.constant 0 : index
    %c0_5 = arith.constant 0 : index
    %3 = vector.load %arg8[%c0_3, %c0_4, %c0_5] : memref<18x32x32xf32, #tpu.memory_space<vmem>>, vector<18x32x32xf32>
    tpu.vector_store %arg8[%c0_3, %c0_4, %c0_5], %2 {strides = array<i32>} : memref<18x32x32xf32, #tpu.memory_space<vmem>>, vector<18x32x32xf32>,
    %c0_6 = arith.constant 0 : index
    %c0_7 = arith.constant 0 : index
    %c0_8 = arith.constant 0 : index
    %c0_9 = arith.constant 0 : index
    %4 = vector.load %arg1[%c0_6, %c0_7, %c0_8, %c0_9] : memref<1x16x16x4xf32, #tpu.memory_space<vmem>>, vector<1x16x16x4xf32>
    %5 = vector.shape_cast %4 : vector<1x16x16x4xf32> to vector<16x16x4xf32>
    %c1 = arith.constant 1 : index
    %c8 = arith.constant 8 : index
    %c0_10 = arith.constant 0 : index
    %6 = vector.load %arg7[%c1, %c8, %c0_10] : memref<18x32x4xf32, #tpu.memory_space<vmem>>, vector<16x16x4xf32>
    tpu.vector_store %arg7[%c1, %c8, %c0_10], %5 {strides = array<i32>} : memref<18x32x4xf32, #tpu.memory_space<vmem>>, vector<16x16x4xf32>,
    %c0_11 = arith.constant 0 : index
    %c0_12 = arith.constant 0 : index
    %c0_13 = arith.constant 0 : index
    %7 = vector.load %arg7[%c0_11, %c0_12, %c0_13] : memref<18x32x4xf32, #tpu.memory_space<vmem>>, vector<18x32x4xf32>
    %c0_14 = arith.constant 0 : index
    %c0_15 = arith.constant 0 : index
    %8 = vector.load %arg2[%c0_14, %c0_15] : memref<36x32xbf16, #tpu.memory_space<vmem>>, vector<36x32xbf16>
    %c0_16 = arith.constant 0 : index
    %c0_17 = arith.constant 0 : index
    %9 = vector.load %arg3[%c0_16, %c0_17] : memref<1x32xf32, #tpu.memory_space<vmem>>, vector<1x32xf32>
    %10 = vector.extract_strided_slice %7 {offsets = [0, 7, 0], sizes = [16, 16, 4], strides = [1, 1, 1]} : vector<18x32x4xf32> to vector<16x16x4xf32>
    %11 = vector.shape_cast %10 : vector<16x16x4xf32> to vector<256x4xf32>
    %12 = vector.extract_strided_slice %7 {offsets = [0, 8, 0], sizes = [16, 16, 4], strides = [1, 1, 1]} : vector<18x32x4xf32> to vector<16x16x4xf32>
    %13 = vector.shape_cast %12 : vector<16x16x4xf32> to vector<256x4xf32>
    %14 = vector.extract_strided_slice %7 {offsets = [0, 9, 0], sizes = [16, 16, 4], strides = [1, 1, 1]} : vector<18x32x4xf32> to vector<16x16x4xf32>
    %15 = vector.shape_cast %14 : vector<16x16x4xf32> to vector<256x4xf32>
    %16 = vector.extract_strided_slice %7 {offsets = [1, 7, 0], sizes = [16, 16, 4], strides = [1, 1, 1]} : vector<18x32x4xf32> to vector<16x16x4xf32>
    %17 = vector.shape_cast %16 : vector<16x16x4xf32> to vector<256x4xf32>
    %18 = vector.extract_strided_slice %7 {offsets = [1, 8, 0], sizes = [16, 16, 4], strides = [1, 1, 1]} : vector<18x32x4xf32> to vector<16x16x4xf32>
    %19 = vector.shape_cast %18 : vector<16x16x4xf32> to vector<256x4xf32>
    %20 = vector.extract_strided_slice %7 {offsets = [1, 9, 0], sizes = [16, 16, 4], strides = [1, 1, 1]} : vector<18x32x4xf32> to vector<16x16x4xf32>
    %21 = vector.shape_cast %20 : vector<16x16x4xf32> to vector<256x4xf32>
    %22 = vector.extract_strided_slice %7 {offsets = [2, 7, 0], sizes = [16, 16, 4], strides = [1, 1, 1]} : vector<18x32x4xf32> to vector<16x16x4xf32>
    %23 = vector.shape_cast %22 : vector<16x16x4xf32> to vector<256x4xf32>
    %24 = vector.extract_strided_slice %7 {offsets = [2, 8, 0], sizes = [16, 16, 4], strides = [1, 1, 1]} : vector<18x32x4xf32> to vector<16x16x4xf32>
    %25 = vector.shape_cast %24 : vector<16x16x4xf32> to vector<256x4xf32>
    %26 = vector.extract_strided_slice %7 {offsets = [2, 9, 0], sizes = [16, 16, 4], strides = [1, 1, 1]} : vector<18x32x4xf32> to vector<16x16x4xf32>
    %27 = vector.shape_cast %26 : vector<16x16x4xf32> to vector<256x4xf32>
    %28 = tpu.concatenate %11, %13, %15, %17, %19, %21, %23, %25, %27 in 1 : vector<256x4xf32>, vector<256x4xf32>, vector<256x4xf32>, vector<256x4xf32>, vector<256x4xf32>, vector<256x4xf32>, vector<256x4xf32>, vector<256x4xf32>, vector<256x4xf32> -> vector<256x36xf32>
    %29 = arith.truncf %28 : vector<256x36xf32> to vector<256x36xbf16>
    %cst_18 = arith.constant dense<0.000000e+00> : vector<256x32xf32>
    %30 = tpu.matmul %29, %8, %cst_18 {dimension_numbers = #tpu.dot_dimension_numbers<[1], [0], [0], [1], [0, 0, 1, 1], [], []>} : vector<256x36xbf16>, vector<36x32xbf16>, vector<256x32xf32> -> vector<256x32xf32>
    %31 = vector.broadcast %9 : vector<1x32xf32> to vector<256x32xf32>
    %32 = arith.addf %30, %31 : vector<256x32xf32>
    %cst_19 = arith.constant 0.00999999977 : f32
    %33 = vector.broadcast %cst_19 : f32 to vector<256x32xf32>
    %34 = arith.mulf %33, %32 : vector<256x32xf32>
    %35 = arith.maximumf %32, %34 : vector<256x32xf32>
    %36 = vector.shape_cast %35 : vector<256x32xf32> to vector<16x16x32xf32>
    %c1_20 = arith.constant 1 : index
    %c8_21 = arith.constant 8 : index
    %c0_22 = arith.constant 0 : index
    %37 = vector.load %arg8[%c1_20, %c8_21, %c0_22] : memref<18x32x32xf32, #tpu.memory_space<vmem>>, vector<16x16x32xf32>
    tpu.vector_store %arg8[%c1_20, %c8_21, %c0_22], %36 {strides = array<i32>} : memref<18x32x32xf32, #tpu.memory_space<vmem>>, vector<16x16x32xf32>,
    %c0_23 = arith.constant 0 : index
    %c0_24 = arith.constant 0 : index
    %c0_25 = arith.constant 0 : index
    %38 = vector.load %arg8[%c0_23, %c0_24, %c0_25] : memref<18x32x32xf32, #tpu.memory_space<vmem>>, vector<18x32x32xf32>
    %c0_26 = arith.constant 0 : index
    %c0_27 = arith.constant 0 : index
    %39 = vector.load %arg4[%c0_26, %c0_27] : memref<288x32xbf16, #tpu.memory_space<vmem>>, vector<288x32xbf16>
    %c0_28 = arith.constant 0 : index
    %c0_29 = arith.constant 0 : index
    %40 = vector.load %arg5[%c0_28, %c0_29] : memref<1x32xf32, #tpu.memory_space<vmem>>, vector<1x32xf32>
    %41 = vector.extract_strided_slice %38 {offsets = [0, 7, 0], sizes = [16, 16, 32], strides = [1, 1, 1]} : vector<18x32x32xf32> to vector<16x16x32xf32>
    %42 = vector.shape_cast %41 : vector<16x16x32xf32> to vector<256x32xf32>
    %43 = vector.extract_strided_slice %38 {offsets = [0, 8, 0], sizes = [16, 16, 32], strides = [1, 1, 1]} : vector<18x32x32xf32> to vector<16x16x32xf32>
    %44 = vector.shape_cast %43 : vector<16x16x32xf32> to vector<256x32xf32>
    %45 = vector.extract_strided_slice %38 {offsets = [0, 9, 0], sizes = [16, 16, 32], strides = [1, 1, 1]} : vector<18x32x32xf32> to vector<16x16x32xf32>
    %46 = vector.shape_cast %45 : vector<16x16x32xf32> to vector<256x32xf32>
    %47 = vector.extract_strided_slice %38 {offsets = [1, 7, 0], sizes = [16, 16, 32], strides = [1, 1, 1]} : vector<18x32x32xf32> to vector<16x16x32xf32>
    %48 = vector.shape_cast %47 : vector<16x16x32xf32> to vector<256x32xf32>
    %49 = vector.extract_strided_slice %38 {offsets = [1, 8, 0], sizes = [16, 16, 32], strides = [1, 1, 1]} : vector<18x32x32xf32> to vector<16x16x32xf32>
    %50 = vector.shape_cast %49 : vector<16x16x32xf32> to vector<256x32xf32>
    %51 = vector.extract_strided_slice %38 {offsets = [1, 9, 0], sizes = [16, 16, 32], strides = [1, 1, 1]} : vector<18x32x32xf32> to vector<16x16x32xf32>
    %52 = vector.shape_cast %51 : vector<16x16x32xf32> to vector<256x32xf32>
    %53 = vector.extract_strided_slice %38 {offsets = [2, 7, 0], sizes = [16, 16, 32], strides = [1, 1, 1]} : vector<18x32x32xf32> to vector<16x16x32xf32>
    %54 = vector.shape_cast %53 : vector<16x16x32xf32> to vector<256x32xf32>
    %55 = vector.extract_strided_slice %38 {offsets = [2, 8, 0], sizes = [16, 16, 32], strides = [1, 1, 1]} : vector<18x32x32xf32> to vector<16x16x32xf32>
    %56 = vector.shape_cast %55 : vector<16x16x32xf32> to vector<256x32xf32>
    %57 = vector.extract_strided_slice %38 {offsets = [2, 9, 0], sizes = [16, 16, 32], strides = [1, 1, 1]} : vector<18x32x32xf32> to vector<16x16x32xf32>
    %58 = vector.shape_cast %57 : vector<16x16x32xf32> to vector<256x32xf32>
    %59 = tpu.concatenate %42, %44, %46, %48, %50, %52, %54, %56, %58 in 1 : vector<256x32xf32>, vector<256x32xf32>, vector<256x32xf32>, vector<256x32xf32>, vector<256x32xf32>, vector<256x32xf32>, vector<256x32xf32>, vector<256x32xf32>, vector<256x32xf32> -> vector<256x288xf32>
    %60 = arith.truncf %59 : vector<256x288xf32> to vector<256x288xbf16>
    %cst_30 = arith.constant dense<0.000000e+00> : vector<256x32xf32>
    %61 = tpu.matmul %60, %39, %cst_30 {dimension_numbers = #tpu.dot_dimension_numbers<[1], [0], [0], [1], [0, 0, 1, 1], [], []>} : vector<256x288xbf16>, vector<288x32xbf16>, vector<256x32xf32> -> vector<256x32xf32>
    %62 = vector.broadcast %40 : vector<1x32xf32> to vector<256x32xf32>
    %63 = arith.addf %61, %62 : vector<256x32xf32>
    %cst_31 = arith.constant 0.00999999977 : f32
    %64 = vector.broadcast %cst_31 : f32 to vector<256x32xf32>
    %65 = arith.mulf %64, %63 : vector<256x32xf32>
    %66 = arith.maximumf %63, %65 : vector<256x32xf32>
    %67 = vector.shape_cast %66 : vector<256x32xf32> to vector<16x16x32xf32>
    %c0_32 = arith.constant 0 : index
    %c0_33 = arith.constant 0 : index
    %c0_34 = arith.constant 0 : index
    %c0_35 = arith.constant 0 : index
    %68 = vector.load %arg6[%c0_32, %c0_33, %c0_34, %c0_35] : memref<1x16x16x32xf32, #tpu.memory_space<vmem>>, vector<1x16x16x32xf32>
    %69 = vector.shape_cast %68 : vector<1x16x16x32xf32> to vector<16x16x32xf32>
    %70 = vector.shape_cast %67 : vector<16x16x32xf32> to vector<1x16x16x32xf32>
    tpu.vector_store %arg6[%c0_32, %c0_33, %c0_34, %c0_35], %70 {strides = array<i32>} : memref<1x16x16x32xf32, #tpu.memory_space<vmem>>, vector<1x16x16x32xf32>,
    return
  }
  func.func @transform_0(%arg0: i32) -> (i32, i32, i32, i32) {
    %c0_i32 = arith.constant 0 : i32
    %c0_i32_0 = arith.constant 0 : i32
    %c0_i32_1 = arith.constant 0 : i32
    %c0_i32_2 = arith.constant 0 : i32
    return %arg0, %c0_i32, %c0_i32_0, %c0_i32_1 : i32, i32, i32, i32
  }
  func.func @transform_1(%arg0: i32) -> (i32, i32) {
    %c0_i32 = arith.constant 0 : i32
    %c0_i32_0 = arith.constant 0 : i32
    %c0_i32_1 = arith.constant 0 : i32
    return %c0_i32, %c0_i32_0 : i32, i32
  }
  func.func @transform_2(%arg0: i32) -> (i32, i32) {
    %c0_i32 = arith.constant 0 : i32
    %c0_i32_0 = arith.constant 0 : i32
    %c0_i32_1 = arith.constant 0 : i32
    return %c0_i32, %c0_i32_0 : i32, i32
  }
  func.func @transform_3(%arg0: i32) -> (i32, i32) {
    %c0_i32 = arith.constant 0 : i32
    %c0_i32_0 = arith.constant 0 : i32
    %c0_i32_1 = arith.constant 0 : i32
    return %c0_i32, %c0_i32_0 : i32, i32
  }
  func.func @transform_4(%arg0: i32) -> (i32, i32) {
    %c0_i32 = arith.constant 0 : i32
    %c0_i32_0 = arith.constant 0 : i32
    %c0_i32_1 = arith.constant 0 : i32
    return %c0_i32, %c0_i32_0 : i32, i32
  }
  func.func @transform_5(%arg0: i32) -> (i32, i32, i32, i32) {
    %c0_i32 = arith.constant 0 : i32
    %c0_i32_0 = arith.constant 0 : i32
    %c0_i32_1 = arith.constant 0 : i32
    %c0_i32_2 = arith.constant 0 : i32
    return %arg0, %c0_i32, %c0_i32_0, %c0_i32_1 : i32, i32, i32, i32
  }
}

</mosaic_0001>

<bundles_post_ra>
// kernel: tpu_custom_call.1
= control target key start
LH: loop header
LB: loop body
LE: loop exit
PB: predicated region body
PF: predicated region fallthrough
CT: control target
= control target key end

     0   :  { %10 = vsyncpa [#allocation5], 0  ;;  %s8740_s0 = inlined_call_operand.vmem [shape: f32[2,16,16,4], index: 0, kind: input, shape index: {}]   ;;  %s8741_s1 = inlined_call_operand.vmem [shape: bf16[36,32], index: 1, kind: input, shape index: {}]   ;;  %s8742_s2 = inlined_call_operand.vmem [shape: f32[1,32], index: 2, kind: input, shape index: {}]   ;;  %s8743_s3 = inlined_call_operand.vmem [shape: bf16[288,32], index: 3, kind: input, shape index: {}]   ;;  %s8744_s4 = inlined_call_operand.vmem [shape: f32[1,32], index: 4, kind: input, shape index: {}]   ;;  %s8745_s5 = inlined_call_operand.hbm [shape: f32[2,16,16,32], index: 5, kind: output, shape index: {}]  }
   0x1   :  { %12 = vsyncpa [#allocation5 + $0x1], 0  ;;  %s5723_s18 = smov 0   ;;  %s5725_s19 = smov 0  }
   0x2   :  { %s5727_s20 = smov 0   ;;  %s5729_s21 = smov 0  }
   0x3 LB: > { %s5744_s22 = sadd.s32 4294967295, %s5678_s21   ;;  %s4076_s23 = sadd.s32 4294967294, %s5678_s21   ;;  %s5678_s21 = sphi %s5729_s21, %s8996_s21   ;;  %s5674_s20 = sphi %s5727_s20, %s8995_s20   ;;  %s5670_s19 = sphi %s5725_s19, %s8994_s19   ;;  %s5666_s18 = sphi %s5723_s18, %s8993_s18  }
   0x4   : > { %s5748_s24 = sadd.s32 1, %s5678_s21   ;;  %s135_s25 = sadd.s32 1, %s5674_s20 }
   0x5   : > { %s132_s26 = ssub.s32 %s5678_s21, %s5748_s24  ;;  %p145_p0 = scmp.ne.s32.totalorder %s5674_s20, %s5670_s19 }
   0x6   : > { %p133_p1 = scmp.eq.s32.totalorder %s132_s26, 0  ;;  %p146_p2 = scmp.eq.s32.totalorder %s5744_s22, 1 }
   0x7   : > { %p151_p3 = scmp.ne.s32.totalorder %s5670_s19, %s5666_s18  ;;  %p152_p4 = scmp.eq.s32.totalorder %s4076_s23, 1 }
   0x8   : > { %s5759_s27 = scalar_select %p133_p1, %s5674_s20, %s135_s25  }
   0x9   : > { %p5761_p5 = por %p146_p2, %p145_p0  ;;  %p5765_p6 = por %p152_p4, %p151_p3 }
   0xa   : > { %p4079_p7 = scmp.ge.s32.totalorder %s5678_s21, 1  ;;  %p190_p8 = scmp.lt.s32.totalorder %s5678_s21, 3 }
   0xc   : > { %p191_p9 = pnand %p4079_p7, %p190_p8 }
   0xe   : > { %194 = sbr.rel (%p191_p9) target bundleno = 1083 (0x43b), region = 40 }
  0x15   : > { %vm224_vm0 = vcmask 31744   ;;  %p218_p10 = scmp.lt.s32.totalorder %s5744_s22, 1  ;;  %v8747_v0 = vmov 0.0   ;;  %vm561_vm1 = vcmask 1040384   ;;  %s5681_s10 = smov 4   ;;  %vm690_vm2 = vcmask 1046528  }
  0x16   : > { %226 = vst.msk [vmem:[#allocation2 + $0x8] sm:$0xff] %vm224_vm0, %v8747_v0  ;;  %227 = vst.msk [vmem:[#allocation2 + $0x10] sm:$0xff] %vm224_vm0, %v8747_v0  ;;  %s5682_s11 = smov 8   ;;  %s5683_s12 = smov 12   ;;  %vm297_vm3 = vcmask 261120   ;;  %vm1915_vm4 = vcmask 1041408  }
  0x17   : > { %225 = vst.msk [vmem:[#allocation2] sm:$0xff] %vm224_vm0, %v8747_v0  ;;  %228 = vst.msk [vmem:[#allocation2 + $0x18] sm:$0xff] %vm224_vm0, %v8747_v0  ;;  %s219_s30 = scalar_select %p218_p10, %s5744_s22, 1  ;;  %vm1599_vm5 = vcmask 64512   ;;  %vm1632_vm6 = vcmask 97280   ;;  %vm1665_vm7 = vcmask 130048  }
  0x18   : > { %229 = vst.msk [vmem:[#allocation2 + $0x20] sm:$0xff] %vm224_vm0, %v8747_v0  ;;  %230 = vst.msk [vmem:[#allocation2 + $0x28] sm:$0xff] %vm224_vm0, %v8747_v0  ;;  %s5684_s15 = smov 16   ;;  %s5685_s23 = smov 20   ;;  %vm1698_vm8 = vcmask 162816   ;;  %vm1731_vm9 = vcmask 195584  }
  0x19   : > { %231 = vst.msk [vmem:[#allocation2 + $0x30] sm:$0xff] %vm224_vm0, %v8747_v0  ;;  %232 = vst.msk [vmem:[#allocation2 + $0x38] sm:$0xff] %vm224_vm0, %v8747_v0  ;;  %s4143_s6 = sshll.u32 %s219_s30, 8  ;;  %s5686_s30 = smov 24   ;;  %vm1764_vm10 = vcmask 228352   ;;  %vm1866_vm11 = vcmask 293888  }
  0x1a   : > { %233 = vst.msk [vmem:[#allocation2 + $0x40] sm:$0xff] %vm224_vm0, %v8747_v0  ;;  %234 = vst.msk [vmem:[#allocation2 + $0x48] sm:$0xff] %vm224_vm0, %v8747_v0  ;;  %s5922_s9 = scalar_lea.vmem %s8740_s0, %s4143_s6  ;;  %s5687_s6 = smov 28   ;;  %vm3210_vm12 = vcmask 523264   ;;  %vm3243_vm13 = vcmask 785408  }
  0x1b   : > { %235 = vst.msk [vmem:[#allocation2 + $0x50] sm:$0xff] %vm224_vm0, %v8747_v0  ;;  %236 = vst.msk [vmem:[#allocation2 + $0x58] sm:$0xff] %vm224_vm0, %v8747_v0  ;;  %v372_v1 = vld [vmem:[%s5922_s9 + $0x10] sm:$0xff]  ;;  %v373_v2 = vld [vmem:[%s5922_s9 + $0x18] sm:$0xff]  ;;  %s5688_s7 = smov 32   ;;  %s5689_s8 = smov 64  }
  0x1c   : > { %237 = vst.msk [vmem:[#allocation2 + $0x60] sm:$0xff] %vm224_vm0, %v8747_v0  ;;  %238 = vst.msk [vmem:[#allocation2 + $0x68] sm:$0xff] %vm224_vm0, %v8747_v0  ;;  %v370_v3 = vld [vmem:[%s5922_s9] sm:$0xff]  ;;  %v371_v4 = vld [vmem:[%s5922_s9 + $0x8] sm:$0xff]  ;;  %s5690_s25 = smov 96  }
  0x1d   : > { %239 = vst.msk [vmem:[#allocation2 + $0x70] sm:$0xff] %vm224_vm0, %v8747_v0  ;;  %240 = vst.msk [vmem:[#allocation2 + $0x78] sm:$0xff] %vm224_vm0, %v8747_v0  ;;  %v374_v5 = vld [vmem:[%s5922_s9 + $0x20] sm:$0xff]  ;;  %v375_v6 = vld [vmem:[%s5922_s9 + $0x28] sm:$0xff] }
  0x1e   : > { %241 = vst.msk [vmem:[#allocation2 + $0x80] sm:$0xff] %vm224_vm0, %v8747_v0  ;;  %242 = vst.msk [vmem:[#allocation2 + $0x88] sm:$0xff] %vm224_vm0, %v8747_v0  ;;  %v5933_v7 = vld [vmem:[#allocation2 + $0x8] sm:$0xff]  ;;  %v5935_v8 = vld [vmem:[#allocation2 + $0x10] sm:$0xff] }
  0x1f   : > { %243 = vst.msk [vmem:[#allocation2 + $0x90] sm:$0xff] %vm224_vm0, %v8747_v0  ;;  %244 = vst.msk [vmem:[#allocation2 + $0x98] sm:$0xff] %vm224_vm0, %v8747_v0  ;;  %v376_v9 = vld [vmem:[%s5922_s9 + $0x30] sm:$0xff]  ;;  %v565_v10 = vrot.slane %v5935_v8, 7  ;;  %v4436_v11 = vpack.i.bf16 %v5935_v8, %v5933_v7  ;;  %v8746_v12 = vrot.slane %v5933_v7, 7  ;;  %v377_v13 = vld [vmem:[%s5922_s9 + $0x38] sm:$0xff] }
  0x20   : > { %245 = vst.msk [vmem:[#allocation2 + $0xa0] sm:$0xff] %vm224_vm0, %v8747_v0  ;;  %246 = vst.msk [vmem:[#allocation2 + $0xa8] sm:$0xff] %vm224_vm0, %v8747_v0  ;;  %v378_v14 = vld [vmem:[%s5922_s9 + $0x40] sm:$0xff]  ;;  %v379_v15 = vld [vmem:[%s5922_s9 + $0x48] sm:$0xff] }
  0x21   : > { %247 = vst.msk [vmem:[#allocation2 + $0xb0] sm:$0xff] %vm224_vm0, %v8747_v0  ;;  %248 = vst.msk [vmem:[#allocation2 + $0xb8] sm:$0xff] %vm224_vm0, %v8747_v0  ;;  %v380_v16 = vld [vmem:[%s5922_s9 + $0x50] sm:$0xff]  ;;  %v381_v17 = vld [vmem:[%s5922_s9 + $0x58] sm:$0xff]  ;;  %4437 = vrot.lane.b32.xlu0 %v4436_v11, %s5681_s10  ;;  %v5965_v22 = vsel %vm561_vm1, %v8746_v12, %v565_v10  ;;  %v692_v10 = vrot.slane %v5935_v8, 1 }
  0x22   : > { %249 = vst.msk [vmem:[#allocation2 + $0xc0] sm:$0xff] %vm224_vm0, %v8747_v0  ;;  %250 = vst.msk [vmem:[#allocation2 + $0xc8] sm:$0xff] %vm224_vm0, %v8747_v0  ;;  %v382_v18 = vld [vmem:[%s5922_s9 + $0x60] sm:$0xff]  ;;  %v383_v19 = vld [vmem:[%s5922_s9 + $0x68] sm:$0xff] }
  0x23   : > { %251 = vst.msk [vmem:[#allocation2 + $0xd0] sm:$0xff] %vm224_vm0, %v8747_v0  ;;  %252 = vst.msk [vmem:[#allocation2 + $0xd8] sm:$0xff] %vm224_vm0, %v8747_v0  ;;  %v384_v20 = vld [vmem:[%s5922_s9 + $0x70] sm:$0xff]  ;;  %v385_v21 = vld [vmem:[%s5922_s9 + $0x78] sm:$0xff] }
  0x24   : > { %253 = vst.msk [vmem:[#allocation2 + $0xe0] sm:$0xff] %vm224_vm0, %v8747_v0  ;;  %254 = vst.msk [vmem:[#allocation2 + $0xe8] sm:$0xff] %vm224_vm0, %v8747_v0  ;;  %v386_v23 = vld [vmem:[%s5922_s9 + $0x80] sm:$0xff]  ;;  %v387_v24 = vld [vmem:[%s5922_s9 + $0x88] sm:$0xff] }
  0x25   : > { %255 = vst.msk [vmem:[#allocation2 + $0xf0] sm:$0xff] %vm224_vm0, %v8747_v0  ;;  %256 = vst.msk [vmem:[#allocation2 + $0xf8] sm:$0xff] %vm224_vm0, %v8747_v0  ;;  %v388_v25 = vld [vmem:[%s5922_s9 + $0x90] sm:$0xff]  ;;  %v389_v26 = vld [vmem:[%s5922_s9 + $0x98] sm:$0xff] }
  0x26   : > { %257 = vst.msk [vmem:[#allocation2 + $0x100] sm:$0xff] %vm224_vm0, %v8747_v0  ;;  %258 = vst.msk [vmem:[#allocation2 + $0x108] sm:$0xff] %vm224_vm0, %v8747_v0  ;;  %v390_v27 = vld [vmem:[%s5922_s9 + $0xa0] sm:$0xff]  ;;  %v391_v28 = vld [vmem:[%s5922_s9 + $0xa8] sm:$0xff] }
  0x27   : > { %259 = vst.msk [vmem:[#allocation2 + $0x110] sm:$0xff] %vm224_vm0, %v8747_v0  ;;  %260 = vst.msk [vmem:[#allocation2 + $0x118] sm:$0xff] %vm224_vm0, %v8747_v0  ;;  %v392_v38 = vld [vmem:[%s5922_s9 + $0xb0] sm:$0xff]  ;;  %v393_v39 = vld [vmem:[%s5922_s9 + $0xb8] sm:$0xff] }
  0x28   : > { %261 = vst.msk [vmem:[#allocation2 + $0x120] sm:$0xff] %vm224_vm0, %v8747_v0  ;;  %262 = vst.msk [vmem:[#allocation2 + $0x128] sm:$0xff] %vm224_vm0, %v8747_v0  ;;  %v394_v53 = vld [vmem:[%s5922_s9 + $0xc0] sm:$0xff]  ;;  %v395_v54 = vld [vmem:[%s5922_s9 + $0xc8] sm:$0xff] }
  0x29   : > { %263 = vst.msk [vmem:[#allocation2 + $0x130] sm:$0xff] %vm224_vm0, %v8747_v0  ;;  %264 = vst.msk [vmem:[#allocation2 + $0x138] sm:$0xff] %vm224_vm0, %v8747_v0  ;;  %v396_v55 = vld [vmem:[%s5922_s9 + $0xd0] sm:$0xff]  ;;  %v397_v56 = vld [vmem:[%s5922_s9 + $0xd8] sm:$0xff] }
  0x2a   : > { %265 = vst.msk [vmem:[#allocation2 + $0x140] sm:$0xff] %vm224_vm0, %v8747_v0  ;;  %266 = vst.msk [vmem:[#allocation2 + $0x148] sm:$0xff] %vm224_vm0, %v8747_v0  ;;  %v398_v57 = vld [vmem:[%s5922_s9 + $0xe0] sm:$0xff]  ;;  %v399_v58 = vld [vmem:[%s5922_s9 + $0xe8] sm:$0xff] }
  0x2b   : > { %267 = vst.msk [vmem:[#allocation2 + $0x150] sm:$0xff] %vm224_vm0, %v8747_v0  ;;  %268 = vst.msk [vmem:[#allocation2 + $0x158] sm:$0xff] %vm224_vm0, %v8747_v0  ;;  %v438_v11 = vld [vmem:[#allocation2 + $0x18] sm:$0xff] }
  0x2c   : > { %269 = vst.msk [vmem:[#allocation2 + $0x160] sm:$0xff] %vm224_vm0, %v8747_v0  ;;  %270 = vst.msk [vmem:[#allocation2 + $0x168] sm:$0xff] %vm224_vm0, %v8747_v0 }
  0x2d   : > { %271 = vst.msk [vmem:[#allocation2 + $0x170] sm:$0xff] %vm224_vm0, %v8747_v0  ;;  %272 = vst.msk [vmem:[#allocation2 + $0x178] sm:$0xff] %vm224_vm0, %v8747_v0 }
  0x2e   : > { %273 = vst.msk [vmem:[#allocation2 + $0x180] sm:$0xff] %vm224_vm0, %v8747_v0  ;;  %274 = vst.msk [vmem:[#allocation2 + $0x188] sm:$0xff] %vm224_vm0, %v8747_v0 }
  0x2f   : > { %275 = vst.msk [vmem:[#allocation2 + $0x190] sm:$0xff] %vm224_vm0, %v8747_v0  ;;  %276 = vst.msk [vmem:[#allocation2 + $0x198] sm:$0xff] %vm224_vm0, %v8747_v0 }
  0x30   : > { %277 = vst.msk [vmem:[#allocation2 + $0x1a0] sm:$0xff] %vm224_vm0, %v8747_v0  ;;  %278 = vst.msk [vmem:[#allocation2 + $0x1a8] sm:$0xff] %vm224_vm0, %v8747_v0 }
  0x31   : > { %279 = vst.msk [vmem:[#allocation2 + $0x1b0] sm:$0xff] %vm224_vm0, %v8747_v0  ;;  %280 = vst.msk [vmem:[#allocation2 + $0x1b8] sm:$0xff] %vm224_vm0, %v8747_v0 }
  0x32   : > { %281 = vst.msk [vmem:[#allocation2 + $0x1c0] sm:$0xff] %vm224_vm0, %v8747_v0  ;;  %282 = vst.msk [vmem:[#allocation2 + $0x1c8] sm:$0xff] %vm224_vm0, %v8747_v0 }
  0x33   : > { %283 = vst.msk [vmem:[#allocation2 + $0x1d0] sm:$0xff] %vm224_vm0, %v8747_v0  ;;  %284 = vst.msk [vmem:[#allocation2 + $0x1d8] sm:$0xff] %vm224_vm0, %v8747_v0 }
  0x34   : > { %285 = vst.msk [vmem:[#allocation2 + $0x1e0] sm:$0xff] %vm224_vm0, %v8747_v0  ;;  %286 = vst.msk [vmem:[#allocation2 + $0x1e8] sm:$0xff] %vm224_vm0, %v8747_v0 }
  0x35   : > { %287 = vst.msk [vmem:[#allocation2 + $0x1f0] sm:$0xff] %vm224_vm0, %v8747_v0  ;;  %288 = vst.msk [vmem:[#allocation2 + $0x1f8] sm:$0xff] %vm224_vm0, %v8747_v0 }
  0x36   : > { %289 = vst.msk [vmem:[#allocation2 + $0x200] sm:$0xff] %vm224_vm0, %v8747_v0  ;;  %290 = vst.msk [vmem:[#allocation2 + $0x208] sm:$0xff] %vm224_vm0, %v8747_v0 }
  0x37   : > { %291 = vst.msk [vmem:[#allocation2 + $0x210] sm:$0xff] %vm224_vm0, %v8747_v0  ;;  %292 = vst.msk [vmem:[#allocation2 + $0x218] sm:$0xff] %vm224_vm0, %v8747_v0 }
  0x38   : > { %293 = vst.msk [vmem:[#allocation2 + $0x220] sm:$0xff] %vm224_vm0, %v8747_v0  ;;  %294 = vst.msk [vmem:[#allocation2 + $0x228] sm:$0xff] %vm224_vm0, %v8747_v0 }
  0x39   : > { %295 = vst.msk [vmem:[#allocation2 + $0x230] sm:$0xff] %vm224_vm0, %v8747_v0  ;;  %296 = vst.msk [vmem:[#allocation2 + $0x238] sm:$0xff] %vm224_vm0, %v8747_v0  ;;  %v400_v0 = vld [vmem:[%s5922_s9 + $0xf0] sm:$0xff] }
  0x3a   : > { %405 = vst.msk [vmem:[#allocation2 + $0x48] sm:$0xff] %vm224_vm0, %v372_v1  ;;  %406 = vst.msk [vmem:[#allocation2 + $0x50] sm:$0xff] %vm224_vm0, %v373_v2 }
  0x3b   : > { %403 = vst.msk [vmem:[#allocation2 + $0x28] sm:$0xff] %vm224_vm0, %v370_v3  ;;  %8834 = vst [vmem:[#allocation7_spill] sm:$0xff] %v5933_v7 }
  0x3c   : > { %404 = vst.msk [vmem:[#allocation2 + $0x30] sm:$0xff] %vm224_vm0, %v371_v4  ;;  %407 = vst.msk [vmem:[#allocation2 + $0x68] sm:$0xff] %vm224_vm0, %v374_v5 }
  0x3d   : > { %408 = vst.msk [vmem:[#allocation2 + $0x70] sm:$0xff] %vm224_vm0, %v375_v6  ;;  %409 = vst.msk [vmem:[#allocation2 + $0x88] sm:$0xff] %vm224_vm0, %v376_v9 }
  0x3e   : > { %410 = vst.msk [vmem:[#allocation2 + $0x90] sm:$0xff] %vm224_vm0, %v377_v13  ;;  %411 = vst.msk [vmem:[#allocation2 + $0xa8] sm:$0xff] %vm224_vm0, %v378_v14  ;;  %v691_v13 = vrot.slane %v5933_v7, 1 }
  0x3f   : > { %412 = vst.msk [vmem:[#allocation2 + $0xb0] sm:$0xff] %vm224_vm0, %v379_v15  ;;  %413 = vst.msk [vmem:[#allocation2 + $0xc8] sm:$0xff] %vm224_vm0, %v380_v16 }
  0x40   : > { %414 = vst.msk [vmem:[#allocation2 + $0xd0] sm:$0xff] %vm224_vm0, %v381_v17  ;;  %415 = vst.msk [vmem:[#allocation2 + $0xe8] sm:$0xff] %vm224_vm0, %v382_v18 }
  0x41   : > { %8835 = vst [vmem:[#allocation8_spill] sm:$0xff] %v5965_v22  ;;  %416 = vst.msk [vmem:[#allocation2 + $0xf0] sm:$0xff] %vm224_vm0, %v383_v19  ;;  %v5979_v29 = vld [vmem:[#allocation2 + $0x48] sm:$0xff]  ;;  %v5981_v30 = vld [vmem:[#allocation2 + $0x50] sm:$0xff] }
  0x42   : > { %417 = vst.msk [vmem:[#allocation2 + $0x108] sm:$0xff] %vm224_vm0, %v384_v20  ;;  %418 = vst.msk [vmem:[#allocation2 + $0x110] sm:$0xff] %vm224_vm0, %v385_v21  ;;  %v5983_v31 = vld [vmem:[#allocation2 + $0x28] sm:$0xff]  ;;  %v5990_v32 = vpack.i.bf16 %v5981_v30, %v5979_v29  ;;  %v701_v15 = vrot.slane %v5979_v29, 1  ;;  %v702_v16 = vrot.slane %v5981_v30, 1 }
  0x43   : > { %419 = vst.msk [vmem:[#allocation2 + $0x128] sm:$0xff] %vm224_vm0, %v386_v23  ;;  %420 = vst.msk [vmem:[#allocation2 + $0x130] sm:$0xff] %vm224_vm0, %v387_v24  ;;  %v5992_v33 = vld [vmem:[#allocation2 + $0x30] sm:$0xff]  ;;  %v5994_v34 = vld [vmem:[#allocation2 + $0x68] sm:$0xff]  ;;  %v696_v19 = vrot.slane %v5983_v31, 1 }
  0x44   : > { %421 = vst.msk [vmem:[#allocation2 + $0x148] sm:$0xff] %vm224_vm0, %v388_v25  ;;  %422 = vst.msk [vmem:[#allocation2 + $0x150] sm:$0xff] %vm224_vm0, %v389_v26  ;;  %v5996_v35 = vld [vmem:[#allocation2 + $0x70] sm:$0xff]  ;;  %v6000_v36 = vpack.i.bf16 %v5992_v33, %v5983_v31  ;;  %v6002_v37 = vld [vmem:[#allocation2 + $0x88] sm:$0xff]  ;;  %4447 = vrot.lane.b32.xlu1 %v5990_v32, %s5681_s10  ;;  %v697_v20 = vrot.slane %v5992_v33, 1  ;;  %v706_v21 = vrot.slane %v5994_v34, 1 }
  0x45   : > { %423 = vst.msk [vmem:[#allocation2 + $0x168] sm:$0xff] %vm224_vm0, %v390_v27  ;;  %424 = vst.msk [vmem:[#allocation2 + $0x170] sm:$0xff] %vm224_vm0, %v391_v28  ;;  %v6010_v40 = vpack.i.bf16 %v5996_v35, %v5994_v34  ;;  %v6012_v41 = vld [vmem:[#allocation2 + $0x90] sm:$0xff]  ;;  %v6022_v43 = vld [vmem:[#allocation2 + $0xa8] sm:$0xff]  ;;  %v694_v25 = vrot.slane %v438_v11, 1  ;;  %v711_v27 = vrot.slane %v6002_v37, 1 }
  0x46   : > { %8836 = vst [vmem:[#allocation9_spill] sm:$0xff] %v5990_v32  ;;  %8837 = vst [vmem:[#allocation10_spill] sm:$0xff] %v6000_v36  ;;  %4442 = vrot.lane.b32.xlu0 %v6000_v36, %s5681_s10  ;;  %v6020_v42 = vpack.i.bf16 %v6012_v41, %v6002_v37  ;;  %v6024_v44 = vld [vmem:[#allocation2 + $0xb0] sm:$0xff]  ;;  %v6026_v45 = vld [vmem:[#allocation2 + $0xc8] sm:$0xff]  ;;  %v707_v28 = vrot.slane %v5996_v35, 1  ;;  %v8850_v36 = vrot.slane %v6012_v41, 1 }
  0x47   : > { %8838 = vst [vmem:[#allocation11_spill] sm:$0xff] %v6010_v40  ;;  %425 = vst.msk [vmem:[#allocation2 + $0x188] sm:$0xff] %vm224_vm0, %v392_v38  ;;  %v6028_v46 = vld [vmem:[#allocation2 + $0xd0] sm:$0xff]  ;;  %v6030_v47 = vld [vmem:[#allocation2 + $0xe8] sm:$0xff]  ;;  %v6036_v48 = vpack.i.bf16 %v6024_v44, %v6022_v43  ;;  %v717_v11 = vrot.slane %v6024_v44, 1 }
  0x48   : > { %426 = vst.msk [vmem:[#allocation2 + $0x190] sm:$0xff] %vm224_vm0, %v393_v39  ;;  %8839 = vst [vmem:[#allocation12_spill] sm:$0xff] %v6020_v42  ;;  %4452 = vrot.lane.b32.xlu1 %v6010_v40, %s5681_s10  ;;  %v6038_v49 = vld [vmem:[#allocation2 + $0xf0] sm:$0xff]  ;;  %v6048_v52 = vpack.i.bf16 %v6028_v46, %v6026_v45  ;;  %v442_v26 = vld [vmem:[#allocation2 + $0x38] sm:$0xff] }
  0x49   : > { %8840 = vst [vmem:[#allocation13_spill] sm:$0xff] %v6036_v48  ;;  %v6040_v50 = vld [vmem:[#allocation2 + $0x108] sm:$0xff]  ;;  %v6042_v51 = vld [vmem:[#allocation2 + $0x110] sm:$0xff]  ;;  %427 = vst.msk [vmem:[#allocation2 + $0x1a8] sm:$0xff] %vm224_vm0, %v394_v53  ;;  %v6066_v59 = vpack.i.bf16 %v6038_v49, %v6030_v47  ;;  %v721_v53 = vrot.slane %v6026_v45, 1 }
  0x4a   : > { %8841 = vst [vmem:[#allocation14_spill] sm:$0xff] %v6040_v50  ;;  %8842 = vst [vmem:[#allocation15_spill] sm:$0xff] %v6042_v51  ;;  %4457 = vrot.lane.b32.xlu0 %v6020_v42, %s5681_s10  ;;  %v6072_v60 = vpack.i.bf16 %v6042_v51, %v6040_v50  ;;  %v6074_v61 = vld [vmem:[#allocation2 + $0x128] sm:$0xff]  ;;  %v6076_v62 = vld [vmem:[#allocation2 + $0x130] sm:$0xff]  ;;  %v731_v12 = vrot.slane %v6040_v50, 1  ;;  %v732_v7 = vrot.slane %v6042_v51, 1 }
  0x4b   : > { %8843 = vst [vmem:[#allocation16_spill] sm:$0xff] %v6048_v52  ;;  %428 = vst.msk [vmem:[#allocation2 + $0x1b0] sm:$0xff] %vm224_vm0, %v395_v54  ;;  %v6078_v63 = vld [vmem:[#allocation2 + $0x148] sm:$0xff]  ;;  %v6080_v1 = vld [vmem:[#allocation2 + $0x150] sm:$0xff]  ;;  %v6086_v2 = vpack.i.bf16 %v6076_v62, %v6074_v61  ;;  %v8851_v51 = vrot.slane %v6028_v46, 1 }
  0x4c   : > { %429 = vst.msk [vmem:[#allocation2 + $0x1c8] sm:$0xff] %vm224_vm0, %v396_v55  ;;  %430 = vst.msk [vmem:[#allocation2 + $0x1d0] sm:$0xff] %vm224_vm0, %v397_v56  ;;  %4462 = vrot.lane.b32.xlu1 %v6036_v48, %s5681_s10  ;;  %v6092_v3 = vpack.i.bf16 %v6080_v1, %v6078_v63  ;;  %v6094_v4 = vld [vmem:[#allocation2 + $0x168] sm:$0xff]  ;;  %v6096_v5 = vld [vmem:[#allocation2 + $0x170] sm:$0xff] }
  0x4d   : > { %431 = vst.msk [vmem:[#allocation2 + $0x1e8] sm:$0xff] %vm224_vm0, %v398_v57  ;;  %432 = vst.msk [vmem:[#allocation2 + $0x1f0] sm:$0xff] %vm224_vm0, %v399_v58  ;;  %v6108_v14 = vpack.i.bf16 %v6096_v5, %v6094_v4  ;;  %v446_v38 = vld [vmem:[#allocation2 + $0x58] sm:$0xff]  ;;  %v716_v58 = vrot.slane %v6022_v43, 1  ;;  %v723_v50 = vsel %vm690_vm2, %v721_v53, %v8851_v51 }
  0x4e   : > { %8844 = vst [vmem:[#allocation17_spill] sm:$0xff] %v6066_v59  ;;  %4467 = vrot.lane.b32.xlu0 %v6048_v52, %s5681_s10  ;;  %8845 = vst [vmem:[#allocation18_spill] sm:$0xff] %v6072_v60  ;;  %v6098_v6 = vld [vmem:[#allocation2 + $0x188] sm:$0xff]  ;;  %v450_v57 = vld [vmem:[#allocation2 + $0x78] sm:$0xff]  ;;  %v726_v52 = vrot.slane %v6030_v47, 1 }
  0x4f   : > { %8846 = vst [vmem:[#allocation19_spill] sm:$0xff] %v6078_v63  ;;  %8847 = vst [vmem:[#allocation20_spill] sm:$0xff] %v6086_v2  ;;  %v6100_v9 = vld [vmem:[#allocation2 + $0x190] sm:$0xff]  ;;  %v401_v39 = vld [vmem:[%s5922_s9 + $0xf8] sm:$0xff]  ;;  %v709_v48 = vrot.slane %v450_v57, 1 }
  0x50   : > { %4472 = vrot.lane.b32.xlu1 %v6066_v59, %s5681_s10  ;;  %8848 = vst [vmem:[#allocation21_spill] sm:$0xff] %v6092_v3  ;;  %8849 = vst [vmem:[#allocation22_spill] sm:$0xff] %v6108_v14  ;;  %v4496_v8 = vpack.i.bf16 %v6100_v9, %v6098_v6  ;;  %v6116_v17 = vld [vmem:[#allocation2 + $0x1a8] sm:$0xff]  ;;  %v462_v59 = vld [vmem:[#allocation2 + $0xd8] sm:$0xff] }
  0x51   : > { %433 = vst.msk [vmem:[#allocation2 + $0x208] sm:$0xff] %vm224_vm0, %v400_v0  ;;  %434 = vst.msk [vmem:[#allocation2 + $0x210] sm:$0xff] %vm224_vm0, %v401_v39  ;;  %v458_v42 = vld [vmem:[#allocation2 + $0xb8] sm:$0xff]  ;;  %v703_v0 = vsel %vm690_vm2, %v701_v15, %v702_v16  ;;  %v698_v39 = vsel %vm690_vm2, %v696_v19, %v697_v20  ;;  %v713_v15 = vsel %vm690_vm2, %v711_v27, %v8850_v36  ;;  %v736_v36 = vrot.slane %v6074_v61, 1 }
  0x52   : > { %4477 = vrot.lane.b32.xlu0 %v6072_v60, %s5681_s10  ;;  %v6118_v18 = vld [vmem:[#allocation2 + $0x1b0] sm:$0xff]  ;;  %v704_v60 = vrot.slane %v446_v38, 1  ;;  %v470_v40 = vld [vmem:[#allocation2 + $0x118] sm:$0xff]  ;;  %v708_v38 = vsel %vm690_vm2, %v706_v21, %v707_v28 }
  0x53   : > { %v6123_v23 = vld [vmem:[#allocation2 + $0x1c8] sm:$0xff]  ;;  %v6125_v24 = vld [vmem:[#allocation2 + $0x1d0] sm:$0xff]  ;;  %v4501_v56 = vpack.i.bf16 %v6118_v18, %v6116_v17  ;;  %v466_v57 = vld [vmem:[#allocation2 + $0xf8] sm:$0xff] }
  0x54   : > { %4482 = vrot.lane.b32.xlu1 %v6086_v2, %s5681_s10  ;;  %v4506_v55 = vpack.i.bf16 %v6125_v24, %v6123_v23  ;;  %v6145_v54 = vld [vmem:[#allocation2 + $0x1e8] sm:$0xff]  ;;  %v6147_v22 = vld [vmem:[#allocation2 + $0x1f0] sm:$0xff]  ;;  %v695_v2 = vsel %vm690_vm2, %v692_v10, %v694_v25  ;;  %v705_v32 = vsel %vm690_vm2, %v702_v16, %v704_v60  ;;  %v734_v60 = vrot.slane %v470_v40, 1  ;;  %v486_v27 = vld [vmem:[#allocation2 + $0x198] sm:$0xff] }
  0x55   : > { %v729_v16 = vrot.slane %v466_v57, 1  ;;  %v6179_v51 = vpack.i.bf16 %v705_v32, %v703_v0  ;;  %v754_v57 = vrot.slane %v486_v27, 1 }
  0x56   : > { %4487 = vrot.lane.b32.xlu0 %v6092_v3, %s5681_s10  ;;  %v693_v3 = vsel %vm690_vm2, %v691_v13, %v692_v10  ;;  %v727_v13 = vrot.slane %v6038_v49, 1 }
  0x57   : > { %v4516_v10 = vpack.i.bf16 %v695_v2, %v693_v3  ;;  %v710_v2 = vsel %vm690_vm2, %v707_v28, %v709_v48  ;;  %v724_v3 = vrot.slane %v462_v59, 1  ;;  %v718_v48 = vsel %vm690_vm2, %v716_v58, %v717_v11 }
  0x58   : > { %4492 = vrot.lane.b32.xlu1 %v6108_v14, %s5681_s10  ;;  %v699_v14 = vrot.slane %v442_v26, 1  ;;  %v4511_v26 = vpack.i.bf16 %v6147_v22, %v6145_v54  ;;  %v8852_v28 = vrot.slane %v6012_v41, 1  ;;  %v6186_v40 = vpack.i.bf16 %v710_v2, %v708_v38 }
  0x59   : > { %v730_v38 = vsel %vm690_vm2, %v727_v13, %v729_v16  ;;  %v746_v2 = vrot.slane %v6094_v4, 1  ;;  %v439_v16 = vld [vmem:[#allocation2 + $0x20] sm:$0xff] }
  0x5a   : > { %4497 = vrot.lane.b32.xlu0 %v4496_v8, %s5681_s10  ;;  %v454_v8 = vld [vmem:[#allocation2 + $0x98] sm:$0xff]  ;;  %v700_v25 = vsel %vm690_vm2, %v697_v20, %v699_v14  ;;  %v719_v14 = vrot.slane %v458_v42, 1  ;;  %v742_v20 = vrot.slane %v6080_v1, 1  ;;  %v733_v42 = vsel %vm690_vm2, %v731_v12, %v732_v7 }
  0x5b   : > { %v714_v19 = vrot.slane %v454_v8, 1  ;;  %v6175_v21 = vpack.i.bf16 %v700_v25, %v698_v39  ;;  %v728_v8 = vsel %vm690_vm2, %v726_v52, %v727_v13  ;;  %v8853_v39 = vrot.slane %v6028_v46, 1 }
  0x5c   : > { %4502 = vrot.lane.b32.xlu1 %v4501_v56, %s5681_s10  ;;  %v741_v56 = vrot.slane %v6078_v63, 1  ;;  %v474_v63 = vld [vmem:[#allocation2 + $0x138] sm:$0xff]  ;;  %v720_v58 = vsel %vm690_vm2, %v717_v11, %v719_v14  ;;  %v751_v12 = vrot.slane %v6098_v6, 1  ;;  %v735_v25 = vsel %vm690_vm2, %v732_v7, %v734_v60 }
  0x5d   : > { %v715_v53 = vsel %vm690_vm2, %v8852_v28, %v714_v19  ;;  %v725_v32 = vsel %vm690_vm2, %v8853_v39, %v724_v3  ;;  %v739_v0 = vrot.slane %v474_v63, 1  ;;  %v752_v52 = vrot.slane %v6100_v9, 1  ;;  %v494_v19 = vld [vmem:[#allocation2 + $0x1d8] sm:$0xff] }
  0x5e   : > { %4507 = vrot.lane.b32.xlu0 %v4506_v55, %s5681_s10  ;;  %v478_v55 = vld [vmem:[#allocation2 + $0x158] sm:$0xff]  ;;  %v743_v63 = vsel %vm690_vm2, %v741_v56, %v742_v20  ;;  %v747_v13 = vrot.slane %v6096_v5, 1  ;;  %v6209_v27 = vpack.i.bf16 %v725_v32, %v723_v50  ;;  %v6211_v28 = vpack.i.bf16 %v720_v58, %v718_v48  ;;  %v443_v56 = vld [vmem:[#allocation2 + $0x40] sm:$0xff] }
  0x5f   : > { %v744_v59 = vrot.slane %v478_v55, 1  ;;  %v6202_v55 = vpack.i.bf16 %v715_v53, %v713_v15  ;;  %v490_v3 = vld [vmem:[#allocation2 + $0x1b8] sm:$0xff]  ;;  %v6213_v15 = vpack.i.bf16 %v735_v25, %v733_v42  ;;  %v6215_v53 = vpack.i.bf16 %v730_v38, %v728_v8  ;;  %v447_v50 = vld [vmem:[#allocation2 + $0x60] sm:$0xff] }
  0x60   : > { %4512 = vrot.lane.b32.xlu1 %v4511_v26, %s5681_s10  ;;  %v737_v26 = vrot.slane %v6076_v62, 1  ;;  %v498_v60 = vld [vmem:[#allocation2 + $0x1f8] sm:$0xff]  ;;  %8854 = vst [vmem:[#allocation23_spill] sm:$0xff] %v6209_v27  ;;  %v755_v39 = vsel %vm690_vm2, %v752_v52, %v754_v57  ;;  %v761_v48 = vrot.slane %v6123_v23, 1  ;;  %v762_v42 = vrot.slane %v6125_v24, 1 }
  0x61   : > { %v745_v11 = vsel %vm690_vm2, %v742_v20, %v744_v59  ;;  %v753_v59 = vsel %vm690_vm2, %v751_v12, %v752_v52  ;;  %v764_v8 = vrot.slane %v494_v19, 1  ;;  %v756_v32 = vrot.slane %v6116_v17, 1 }
  0x62   : > { %4517 = vrot.lane.b32.xlu0 %v4516_v10, %s5682_s11  ;;  %v482_v10 = vld [vmem:[#allocation2 + $0x178] sm:$0xff]  ;;  %v738_v7 = vsel %vm690_vm2, %v736_v36, %v737_v26  ;;  %v6219_v20 = vpack.i.bf16 %v745_v11, %v743_v63  ;;  %v740_v36 = vsel %vm690_vm2, %v737_v26, %v739_v0  ;;  %v748_v58 = vsel %vm690_vm2, %v746_v2, %v747_v13 }
  0x63   : > { %v749_v14 = vrot.slane %v482_v10, 1  ;;  %v757_v26 = vrot.slane %v6118_v18, 1  ;;  %v759_v0 = vrot.slane %v490_v3, 1  ;;  %v766_v12 = vrot.slane %v6145_v54, 1 }
  0x64   : > { %4522 = vrot.lane.b32.xlu1 %v6175_v21, %s5682_s11  ;;  %v767_v25 = vrot.slane %v6147_v22, 1  ;;  %v769_v38 = vrot.slane %v498_v60, 1  ;;  %v567_v52 = vrot.slane %v439_v16, 7  ;;  %v570_v57 = vrot.slane %v5992_v33, 7 }
  0x65   : > { %v750_v10 = vsel %vm690_vm2, %v747_v13, %v749_v14  ;;  %v572_v19 = vrot.slane %v443_v56, 7  ;;  %v573_v63 = vrot.slane %v5979_v29, 7  ;;  %v575_v11 = vrot.slane %v5981_v30, 7 }
  0x66   : > { %4527 = vrot.lane.b32.xlu0 %v6179_v51, %s5682_s11  ;;  %v6241_v2 = vpack.i.bf16 %v740_v36, %v738_v7  ;;  %v577_v3 = vrot.slane %v447_v50, 7  ;;  %v578_v13 = vrot.slane %v5994_v34, 7  ;;  %v580_v14 = vrot.slane %v5996_v35, 7  ;;  %v451_v50 = vld [vmem:[#allocation2 + $0x80] sm:$0xff] }
  0x67   : > { %v763_v60 = vsel %vm690_vm2, %v761_v48, %v762_v42  ;;  %v765_v16 = vsel %vm690_vm2, %v762_v42, %v764_v8  ;;  %v758_v33 = vsel %vm690_vm2, %v756_v32, %v757_v26  ;;  %v760_v29 = vsel %vm690_vm2, %v757_v26, %v759_v0  ;;  %v499_v34 = vld [vmem:[#allocation2 + $0x200] sm:$0xff]  ;;  %v6275_v32 = vld [vmem:[#allocation2 + $0x210] sm:$0xff] }
  0x68   : > { %4532 = vrot.lane.b32.xlu1 %v6186_v40, %s5682_s11  ;;  %v6249_v56 = vpack.i.bf16 %v755_v39, %v753_v59  ;;  %v6251_v30 = vpack.i.bf16 %v750_v10, %v748_v58  ;;  %v768_v7 = vsel %vm690_vm2, %v766_v12, %v767_v25  ;;  %v770_v36 = vsel %vm690_vm2, %v767_v25, %v769_v38 }
  0x69   : > { %v8855_v35 = vrot.slane %v5983_v31, 7  ;;  %v6270_v42 = vsel %vm561_vm1, %v572_v19, %v573_v63  ;;  %v6273_v8 = vsel %vm561_vm1, %v573_v63, %v575_v11  ;;  %v6279_v58 = vpack.i.bf16 %v765_v16, %v763_v60  ;;  %v455_v63 = vld [vmem:[#allocation2 + $0xa0] sm:$0xff] }
  0x6a   : > { %4537 = vrot.lane.b32.xlu0 %v6202_v55, %s5682_s11  ;;  %8858 = vst [vmem:[#allocation25_spill] sm:$0xff] %v6270_v42  ;;  %8859 = vst [vmem:[#allocation26_spill] sm:$0xff] %v6273_v8  ;;  %v6281_v10 = vpack.i.bf16 %v760_v29, %v758_v33  ;;  %v6284_v31 = vsel %vm561_vm1, %v577_v3, %v578_v13  ;;  %v6287_v26 = vsel %vm561_vm1, %v578_v13, %v580_v14  ;;  %v459_v33 = vld [vmem:[#allocation2 + $0xc0] sm:$0xff] }
  0x6b   : > { %v6262_v48 = vsel %vm561_vm1, %v567_v52, %v8855_v35  ;;  %v8856_v59 = vmov %v8855_v35  ;;  %8860 = vst [vmem:[#allocation27_spill] sm:$0xff] %v6279_v58  ;;  %8861 = vst [vmem:[#allocation28_spill] sm:$0xff] %v6284_v31  ;;  %v582_v0 = vrot.slane %v451_v50, 7  ;;  %v583_v12 = vrot.slane %v6002_v37, 7  ;;  %v463_v35 = vld [vmem:[#allocation2 + $0xe0] sm:$0xff] }
  0x6c   : > { %4542 = vrot.lane.b32.xlu1 %v6211_v28, %s5682_s11  ;;  %v6267_v39 = vsel %vm561_vm1, %v8856_v59, %v570_v57  ;;  %8862 = vst [vmem:[#allocation29_spill] sm:$0xff] %v6287_v26  ;;  %v774_v25 = vrot.slane %v499_v34, 7  ;;  %v6291_v52 = vpack.i.bf16 %v770_v36, %v768_v7  ;;  %v6297_v19 = vpack.i.bf16 %v6273_v8, %v6270_v42 }
  0x6d   : > { %8857 = vst [vmem:[#allocation24_spill] sm:$0xff] %v6267_v39  ;;  %v4596_v57 = vpack.i.bf16 %v6267_v39, %v6262_v48  ;;  %v777_v11 = vrot.slane %v6275_v32, 7  ;;  %v6304_v37 = vpack.i.bf16 %v6287_v26, %v6284_v31  ;;  %v585_v3 = vrot.slane %v6012_v41, 7  ;;  %v8901_v26 = vld [vmem:[#allocation21_spill] sm:$0xff] }
  0x6e   : > { %4547 = vrot.lane.b32.xlu0 %v6209_v27, %s5682_s11  ;;  %v6255_v27 = vld [vmem:[#allocation2 + $0x208] sm:$0xff]  ;;  %8863 = vst [vmem:[#allocation30_spill] sm:$0xff] %v6291_v52  ;;  %v6312_v60 = vsel %vm561_vm1, %v582_v0, %v583_v12  ;;  %v587_v16 = vrot.slane %v455_v63, 7  ;;  %v588_v7 = vrot.slane %v6022_v43, 7  ;;  %v590_v36 = vrot.slane %v6024_v44, 7  ;;  %v471_v63 = vld [vmem:[#allocation2 + $0x120] sm:$0xff] }
  0x6f   : > { %v775_v38 = vrot.slane %v6255_v27, 7  ;;  %8864 = vst [vmem:[#allocation31_spill] sm:$0xff] %v6312_v60  ;;  %v6322_v41 = vsel %vm561_vm1, %v583_v12, %v585_v3  ;;  %v592_v50 = vrot.slane %v459_v33, 7  ;;  %v593_v34 = vrot.slane %v6026_v45, 7  ;;  %v467_v12 = vld [vmem:[#allocation2 + $0x100] sm:$0xff] }
  0x70   : > { %4552 = vrot.lane.b32.xlu1 %v6215_v53, %s5682_s11  ;;  %8866 = vst [vmem:[#allocation33_spill] sm:$0xff] %v6322_v41  ;;  %v6330_v43 = vpack.i.bf16 %v6322_v41, %v6312_v60  ;;  %v6333_v59 = vsel %vm561_vm1, %v587_v16, %v588_v7  ;;  %v595_v0 = vrot.slane %v6028_v46, 7  ;;  %v597_v44 = vrot.slane %v463_v35, 7  ;;  %v8872_v16 = vld [vmem:[#allocation15_spill] sm:$0xff]  ;;  %v8893_v41 = vld [vmem:[#allocation17_spill] sm:$0xff] }
  0x71   : > { %v776_v13 = vsel %vm561_vm1, %v774_v25, %v775_v38  ;;  %v778_v14 = vsel %vm561_vm1, %v775_v38, %v777_v11  ;;  %8867 = vst [vmem:[#allocation34_spill] sm:$0xff] %v6333_v59  ;;  %v6341_v45 = vsel %vm561_vm1, %v588_v7, %v590_v36  ;;  %v6345_v25 = vsel %vm561_vm1, %v592_v50, %v593_v34 }
  0x72   : > { %4557 = vrot.lane.b32.xlu0 %v6213_v15, %s5682_s11  ;;  %v6314_v29 = vpack.i.bf16 %v778_v14, %v776_v13  ;;  %8868 = vst [vmem:[#allocation35_spill] sm:$0xff] %v6341_v45  ;;  %8869 = vst [vmem:[#allocation36_spill] sm:$0xff] %v6345_v25  ;;  %v598_v38 = vrot.slane %v6030_v47, 7  ;;  %v6349_v11 = vsel %vm561_vm1, %v593_v34, %v595_v0  ;;  %v600_v46 = vrot.slane %v6038_v49, 7  ;;  %v8871_v13 = vld [vmem:[#allocation14_spill] sm:$0xff]  ;;  %v475_v47 = vld [vmem:[#allocation2 + $0x140] sm:$0xff] }
  0x73   : > { %8870 = vst [vmem:[#allocation37_spill] sm:$0xff] %v6349_v11  ;;  %v602_v3 = vrot.slane %v467_v12, 7  ;;  %v603_v14 = vrot.slane %v8871_v13, 7  ;;  %v605_v33 = vrot.slane %v8872_v16, 7  ;;  %v608_v7 = vrot.slane %v6074_v61, 7  ;;  %v479_v61 = vld [vmem:[#allocation2 + $0x160] sm:$0xff] }
  0x74   : > { %4562 = vrot.lane.b32.xlu1 %v6241_v2, %s5682_s11  ;;  %8865 = vst [vmem:[#allocation32_spill] sm:$0xff] %v6314_v29  ;;  %v610_v36 = vrot.slane %v6076_v62, 7  ;;  %v6362_v49 = vpack.i.bf16 %v6341_v45, %v6333_v59  ;;  %v6366_v50 = vpack.i.bf16 %v6349_v11, %v6345_v25  ;;  %v6369_v34 = vsel %vm561_vm1, %v597_v44, %v598_v38  ;;  %v8875_v12 = vld [vmem:[#allocation19_spill] sm:$0xff] }
  0x75   : > { %8873 = vst [vmem:[#allocation14_spill] sm:$0xff] %v6369_v34  ;;  %v6372_v35 = vsel %vm561_vm1, %v598_v38, %v600_v46  ;;  %v6375_v62 = vsel %vm561_vm1, %v602_v3, %v603_v14  ;;  %v612_v0 = vrot.slane %v475_v47, 7  ;;  %v6381_v13 = vsel %vm561_vm1, %v603_v14, %v605_v33  ;;  %v483_v33 = vld [vmem:[#allocation2 + $0x180] sm:$0xff] }
  0x76   : > { %4567 = vrot.lane.b32.xlu0 %v6219_v20, %s5682_s11  ;;  %8874 = vst [vmem:[#allocation15_spill] sm:$0xff] %v6372_v35  ;;  %v6387_v44 = vsel %vm561_vm1, %v608_v7, %v610_v36  ;;  %v615_v38 = vrot.slane %v6080_v1, 7  ;;  %v6394_v46 = vpack.i.bf16 %v6372_v35, %v6369_v34  ;;  %v617_v3 = vrot.slane %v479_v61, 7 }
  0x77   : > { %v618_v47 = vrot.slane %v6094_v4, 7  ;;  %v620_v14 = vrot.slane %v6096_v5, 7  ;;  %v622_v5 = vrot.slane %v483_v33, 7  ;;  %v623_v61 = vrot.slane %v6098_v6, 7  ;;  %v495_v33 = vld [vmem:[#allocation2 + $0x1e0] sm:$0xff] }
  0x78   : > { %4572 = vrot.lane.b32.xlu1 %v6251_v30, %s5682_s11  ;;  %v628_v25 = vrot.slane %v6116_v17, 7  ;;  %v637_v59 = vrot.slane %v495_v33, 7  ;;  %v5557_v33 = vld [vmem:[%s8741_s1 + $0x8] sm:$0xff]  }
  0x79   : > { %v6419_v34 = vsel %vm561_vm1, %v617_v3, %v618_v47  ;;  %v6437_v3 = vsel %vm561_vm1, %v622_v5, %v623_v61  ;;  %v638_v5 = vrot.slane %v6145_v54, 7 }
  0x7a   : > { %4577 = vrot.lane.b32.xlu0 %v6249_v56, %s5682_s11 }
  0x7c   : > { %4582 = vrot.lane.b32.xlu1 %v6281_v10, %s5682_s11 }
  0x7e   : > { %4587 = vrot.lane.b32.xlu0 %v6279_v58, %s5682_s11 }
  0x80   : > { %4592 = vrot.lane.b32.xlu1 %v6291_v52, %s5682_s11 }
  0x82   : > { %4597 = vrot.lane.b32.xlu0 %v4596_v57, %s5683_s12  ;;  %v607_v57 = vrot.slane %v471_v63, 7  ;;  %v613_v63 = vrot.slane %v8875_v12, 7  ;;  %v625_v12 = vrot.slane %v6100_v9, 7 }
  0x84   : > { %4602 = vrot.lane.b32.xlu1 %v6297_v19, %s5683_s12  ;;  %v6384_v16 = vsel %vm561_vm1, %v607_v57, %v608_v7  ;;  %v487_v57 = vld [vmem:[#allocation2 + $0x1a0] sm:$0xff]  ;;  %v6400_v7 = vpack.i.bf16 %v6381_v13, %v6375_v62  ;;  %v6407_v36 = vsel %vm561_vm1, %v612_v0, %v613_v63  ;;  %v6412_v4 = vsel %vm561_vm1, %v613_v63, %v615_v38 }
  0x85   : > { %v6404_v1 = vpack.i.bf16 %v6387_v44, %v6384_v16  ;;  %v6422_v0 = vsel %vm561_vm1, %v618_v47, %v620_v14  ;;  %v627_v35 = vrot.slane %v487_v57, 7  ;;  %v630_v63 = vrot.slane %v6118_v18, 7  ;;  %v491_v38 = vld [vmem:[#allocation2 + $0x1c0] sm:$0xff] }
  0x86   : > { %4607 = vrot.lane.b32.xlu0 %v6304_v37, %s5683_s12  ;;  %v6430_v6 = vpack.i.bf16 %v6412_v4, %v6407_v36  ;;  %v6434_v9 = vpack.i.bf16 %v6422_v0, %v6419_v34  ;;  %v6440_v17 = vsel %vm561_vm1, %v623_v61, %v625_v12  ;;  %v632_v47 = vrot.slane %v491_v38, 7  ;;  %v8878_v38 = vld [vmem:[#allocation10_spill] sm:$0xff] }
  0x87   : > { %v6445_v18 = vsel %vm561_vm1, %v627_v35, %v628_v25  ;;  %v633_v14 = vrot.slane %v6123_v23, 7  ;;  %v635_v57 = vrot.slane %v6125_v24, 7  ;;  %v6450_v11 = vsel %vm561_vm1, %v628_v25, %v630_v63 }
  0x88   : > { %4612 = vrot.lane.b32.xlu1 %v6330_v43, %s5683_s12  ;;  %v640_v61 = vrot.slane %v6147_v22, 7  ;;  %v6458_v35 = vpack.i.bf16 %v6440_v17, %v6437_v3  ;;  %v6464_v23 = vpack.i.bf16 %v6450_v11, %v6445_v18  ;;  %v6473_v22 = vsel %vm561_vm1, %v637_v59, %v638_v5  ;;  %v5556_v59 = vld [vmem:[%s8741_s1] sm:$0xff]  }
  0x89   : > { %v6467_v24 = vsel %vm561_vm1, %v632_v47, %v633_v14  ;;  %v6470_v54 = vsel %vm561_vm1, %v633_v14, %v635_v57  ;;  %4294 = vmatprep.subr.bf16.mxu0 %v5556_v59  ;;  %v8879_v47 = vld [vmem:[#allocation9_spill] sm:$0xff]  ;;  %v8880_v14 = vmov 0.0  }
  0x8a   : > { %4617 = vrot.lane.b32.xlu0 %v6362_v49, %s5683_s12  ;;  %v6476_v25 = vsel %vm561_vm1, %v638_v5, %v640_v61  ;;  %v6482_v12 = vpack.i.bf16 %v6470_v54, %v6467_v24  ;;  %4295 = vmatpush3.bf16.msra.mxu0 %v5556_v59  ;;  %298 = vst.msk [vmem:[#allocation3] sm:$0xff] %vm297_vm3, %v8880_v14  ;;  %299 = vst.msk [vmem:[#allocation3 + $0x8] sm:$0xff] %vm297_vm3, %v8880_v14  ;;  %v8881_v5 = vld [vmem:[#allocation11_spill] sm:$0xff]  ;;  %v8883_v59 = vld [vmem:[#allocation12_spill] sm:$0xff] }
  0x8b   : > { %v6488_v63 = vpack.i.bf16 %v6476_v25, %v6473_v22  ;;  %4296 = vmatprep.subr.bf16.mxu0 %v5557_v33  ;;  %300 = vst.msk [vmem:[#allocation3 + $0x10] sm:$0xff] %vm297_vm3, %v8880_v14  ;;  %301 = vst.msk [vmem:[#allocation3 + $0x18] sm:$0xff] %vm297_vm3, %v8880_v14 }
  0x8c   : > { %4622 = vrot.lane.b32.xlu1 %v6366_v50, %s5683_s12  ;;  %8876 = vst [vmem:[#allocation19_spill] sm:$0xff] %v6482_v12  ;;  %302 = vst.msk [vmem:[#allocation3 + $0x20] sm:$0xff] %vm297_vm3, %v8880_v14 }
  0x8d   : > { %8877 = vst [vmem:[#allocation38_spill] sm:$0xff] %v6488_v63  ;;  %303 = vst.msk [vmem:[#allocation3 + $0x28] sm:$0xff] %vm297_vm3, %v8880_v14 }
  0x8e   : > { %4627 = vrot.lane.b32.xlu0 %v6394_v46, %s5683_s12  ;;  %4297 = vmatpush3.bf16.msra.mxu0 %v5557_v33  ;;  %304 = vst.msk [vmem:[#allocation3 + $0x30] sm:$0xff] %vm297_vm3, %v8880_v14  ;;  %305 = vst.msk [vmem:[#allocation3 + $0x38] sm:$0xff] %vm297_vm3, %v8880_v14 }
  0x8f   : > { %306 = vst.msk [vmem:[#allocation3 + $0x40] sm:$0xff] %vm297_vm3, %v8880_v14  ;;  %307 = vst.msk [vmem:[#allocation3 + $0x48] sm:$0xff] %vm297_vm3, %v8880_v14 }
  0x90   : > { %4632 = vrot.lane.b32.xlu1 %v6400_v7, %s5683_s12  ;;  %308 = vst.msk [vmem:[#allocation3 + $0x50] sm:$0xff] %vm297_vm3, %v8880_v14  ;;  %309 = vst.msk [vmem:[#allocation3 + $0x58] sm:$0xff] %vm297_vm3, %v8880_v14 }
  0x91   : > { %310 = vst.msk [vmem:[#allocation3 + $0x60] sm:$0xff] %vm297_vm3, %v8880_v14  ;;  %311 = vst.msk [vmem:[#allocation3 + $0x68] sm:$0xff] %vm297_vm3, %v8880_v14 }
  0x92   : > { %4637 = vrot.lane.b32.xlu0 %v6404_v1, %s5683_s12  ;;  %312 = vst.msk [vmem:[#allocation3 + $0x70] sm:$0xff] %vm297_vm3, %v8880_v14  ;;  %313 = vst.msk [vmem:[#allocation3 + $0x78] sm:$0xff] %vm297_vm3, %v8880_v14 }
  0x93   : > { %314 = vst.msk [vmem:[#allocation3 + $0x80] sm:$0xff] %vm297_vm3, %v8880_v14  ;;  %315 = vst.msk [vmem:[#allocation3 + $0x88] sm:$0xff] %vm297_vm3, %v8880_v14  ;;  %v6667_v61 = vpop.permute.xlu0 %4437 }
  0x94   : > { %4642 = vrot.lane.b32.xlu1 %v6430_v6, %s5683_s12  ;;  %316 = vst.msk [vmem:[#allocation3 + $0x90] sm:$0xff] %vm297_vm3, %v8880_v14  ;;  %317 = vst.msk [vmem:[#allocation3 + $0x98] sm:$0xff] %vm297_vm3, %v8880_v14 }
  0x95   : > { %318 = vst.msk [vmem:[#allocation3 + $0xa0] sm:$0xff] %vm297_vm3, %v8880_v14  ;;  %319 = vst.msk [vmem:[#allocation3 + $0xa8] sm:$0xff] %vm297_vm3, %v8880_v14 }
  0x96   : > { %4647 = vrot.lane.b32.xlu0 %v6434_v9, %s5683_s12  ;;  %320 = vst.msk [vmem:[#allocation3 + $0xb0] sm:$0xff] %vm297_vm3, %v8880_v14  ;;  %321 = vst.msk [vmem:[#allocation3 + $0xb8] sm:$0xff] %vm297_vm3, %v8880_v14 }
  0x97   : > { %322 = vst.msk [vmem:[#allocation3 + $0xc0] sm:$0xff] %vm297_vm3, %v8880_v14  ;;  %323 = vst.msk [vmem:[#allocation3 + $0xc8] sm:$0xff] %vm297_vm3, %v8880_v14 }
  0x98   : > { %4652 = vrot.lane.b32.xlu1 %v6458_v35, %s5683_s12  ;;  %324 = vst.msk [vmem:[#allocation3 + $0xd0] sm:$0xff] %vm297_vm3, %v8880_v14  ;;  %325 = vst.msk [vmem:[#allocation3 + $0xd8] sm:$0xff] %vm297_vm3, %v8880_v14 }
  0x99   : > { %326 = vst.msk [vmem:[#allocation3 + $0xe0] sm:$0xff] %vm297_vm3, %v8880_v14  ;;  %327 = vst.msk [vmem:[#allocation3 + $0xe8] sm:$0xff] %vm297_vm3, %v8880_v14 }
  0x9a   : > { %4657 = vrot.lane.b32.xlu0 %v6464_v23, %s5683_s12  ;;  %328 = vst.msk [vmem:[#allocation3 + $0xf0] sm:$0xff] %vm297_vm3, %v8880_v14  ;;  %329 = vst.msk [vmem:[#allocation3 + $0xf8] sm:$0xff] %vm297_vm3, %v8880_v14 }
  0x9b   : > { %330 = vst.msk [vmem:[#allocation3 + $0x100] sm:$0xff] %vm297_vm3, %v8880_v14  ;;  %331 = vst.msk [vmem:[#allocation3 + $0x108] sm:$0xff] %vm297_vm3, %v8880_v14 }
  0x9c   : > { %4662 = vrot.lane.b32.xlu1 %v6482_v12, %s5683_s12  ;;  %332 = vst.msk [vmem:[#allocation3 + $0x110] sm:$0xff] %vm297_vm3, %v8880_v14  ;;  %333 = vst.msk [vmem:[#allocation3 + $0x118] sm:$0xff] %vm297_vm3, %v8880_v14 }
  0x9d   : > { %334 = vst.msk [vmem:[#allocation3 + $0x120] sm:$0xff] %vm297_vm3, %v8880_v14  ;;  %335 = vst.msk [vmem:[#allocation3 + $0x128] sm:$0xff] %vm297_vm3, %v8880_v14 }
  0x9e   : > { %4667 = vrot.lane.b32.xlu0 %v6488_v63, %s5683_s12  ;;  %336 = vst.msk [vmem:[#allocation3 + $0x130] sm:$0xff] %vm297_vm3, %v8880_v14  ;;  %337 = vst.msk [vmem:[#allocation3 + $0x138] sm:$0xff] %vm297_vm3, %v8880_v14 }
  0x9f   : > { %338 = vst.msk [vmem:[#allocation3 + $0x140] sm:$0xff] %vm297_vm3, %v8880_v14  ;;  %339 = vst.msk [vmem:[#allocation3 + $0x148] sm:$0xff] %vm297_vm3, %v8880_v14 }
  0xa0   : > { %4672 = vrot.lane.b32.xlu1 %v6314_v29, %s5683_s12  ;;  %340 = vst.msk [vmem:[#allocation3 + $0x150] sm:$0xff] %vm297_vm3, %v8880_v14  ;;  %341 = vst.msk [vmem:[#allocation3 + $0x158] sm:$0xff] %vm297_vm3, %v8880_v14 }
  0xa1   : > { %342 = vst.msk [vmem:[#allocation3 + $0x160] sm:$0xff] %vm297_vm3, %v8880_v14  ;;  %343 = vst.msk [vmem:[#allocation3 + $0x168] sm:$0xff] %vm297_vm3, %v8880_v14 }
  0xa2   : > { %4677 = vrot.lane.b32.xlu0 %v8878_v38, %s5684_s15  ;;  %344 = vst.msk [vmem:[#allocation3 + $0x170] sm:$0xff] %vm297_vm3, %v8880_v14  ;;  %345 = vst.msk [vmem:[#allocation3 + $0x178] sm:$0xff] %vm297_vm3, %v8880_v14 }
  0xa3   : > { %346 = vst.msk [vmem:[#allocation3 + $0x180] sm:$0xff] %vm297_vm3, %v8880_v14  ;;  %347 = vst.msk [vmem:[#allocation3 + $0x188] sm:$0xff] %vm297_vm3, %v8880_v14 }
  0xa4   : > { %4682 = vrot.lane.b32.xlu1 %v8879_v47, %s5684_s15  ;;  %348 = vst.msk [vmem:[#allocation3 + $0x190] sm:$0xff] %vm297_vm3, %v8880_v14  ;;  %349 = vst.msk [vmem:[#allocation3 + $0x198] sm:$0xff] %vm297_vm3, %v8880_v14 }
  0xa5   : > { %350 = vst.msk [vmem:[#allocation3 + $0x1a0] sm:$0xff] %vm297_vm3, %v8880_v14  ;;  %351 = vst.msk [vmem:[#allocation3 + $0x1a8] sm:$0xff] %vm297_vm3, %v8880_v14 }
  0xa6   : > { %4687 = vrot.lane.b32.xlu0 %v6175_v21, %s5685_s23  ;;  %352 = vst.msk [vmem:[#allocation3 + $0x1b0] sm:$0xff] %vm297_vm3, %v8880_v14  ;;  %353 = vst.msk [vmem:[#allocation3 + $0x1b8] sm:$0xff] %vm297_vm3, %v8880_v14  ;;  %v5558_v21 = vld [vmem:[%s8741_s1 + $0x10] ss:$0 sps:$4 sm:$0x33]  }
  0xa7   : > { %354 = vst.msk [vmem:[#allocation3 + $0x1c0] sm:$0xff] %vm297_vm3, %v8880_v14  ;;  %355 = vst.msk [vmem:[#allocation3 + $0x1c8] sm:$0xff] %vm297_vm3, %v8880_v14  ;;  %4384 = vmatprep.subr.msk.bf16.mxu0 %vm1915_vm4, %v5558_v21  ;;  %v1917_v57 = vsel %vm1915_vm4, %v5558_v21, 0  ;;  %v8889_v21 = vld [vmem:[#allocation13_spill] sm:$0xff] }
  0xa8   : > { %356 = vst.msk [vmem:[#allocation3 + $0x1d0] sm:$0xff] %vm297_vm3, %v8880_v14  ;;  %357 = vst.msk [vmem:[#allocation3 + $0x1d8] sm:$0xff] %vm297_vm3, %v8880_v14  ;;  %4692 = vrot.lane.b32.xlu1 %v6179_v51, %s5685_s23  ;;  %4299 = vmatpush3.bf16.msra.mxu0 %v1917_v57 }
  0xa9   : > { %358 = vst.msk [vmem:[#allocation3 + $0x1e0] sm:$0xff] %vm297_vm3, %v8880_v14  ;;  %359 = vst.msk [vmem:[#allocation3 + $0x1e8] sm:$0xff] %vm297_vm3, %v8880_v14 }
  0xaa   : > { %360 = vst.msk [vmem:[#allocation3 + $0x1f0] sm:$0xff] %vm297_vm3, %v8880_v14  ;;  %361 = vst.msk [vmem:[#allocation3 + $0x1f8] sm:$0xff] %vm297_vm3, %v8880_v14  ;;  %4697 = vrot.lane.b32.xlu0 %v6297_v19, %s5686_s30 }
  0xab   : > { %362 = vst.msk [vmem:[#allocation3 + $0x200] sm:$0xff] %vm297_vm3, %v8880_v14  ;;  %363 = vst.msk [vmem:[#allocation3 + $0x208] sm:$0xff] %vm297_vm3, %v8880_v14 }
  0xac   : > { %364 = vst.msk [vmem:[#allocation3 + $0x210] sm:$0xff] %vm297_vm3, %v8880_v14  ;;  %365 = vst.msk [vmem:[#allocation3 + $0x218] sm:$0xff] %vm297_vm3, %v8880_v14  ;;  %4702 = vrot.lane.b32.xlu1 %v6304_v37, %s5686_s30 }
  0xad   : > { %366 = vst.msk [vmem:[#allocation3 + $0x220] sm:$0xff] %vm297_vm3, %v8880_v14  ;;  %367 = vst.msk [vmem:[#allocation3 + $0x228] sm:$0xff] %vm297_vm3, %v8880_v14 }
  0xae   : > { %368 = vst.msk [vmem:[#allocation3 + $0x230] sm:$0xff] %vm297_vm3, %v8880_v14  ;;  %369 = vst.msk [vmem:[#allocation3 + $0x238] sm:$0xff] %vm297_vm3, %v8880_v14  ;;  %4707 = vrot.lane.b32.xlu0 %v8879_v47, %s5687_s6 }
  0xb0   : > { %4712 = vrot.lane.b32.xlu1 %v8881_v5, %s5687_s6 }
  0xb2   : > { %4717 = vrot.lane.b32.xlu0 %v6179_v51, %s5688_s7 }
  0xb4   : > { %4722 = vrot.lane.b32.xlu1 %v6186_v40, %s5688_s7 }
  0xb6   : > { %4727 = vrot.lane.b32.xlu0 %v8881_v5, %s5684_s15  ;;  %v6673_v19 = vpop.permute.xlu1 %4447 }
  0xb7   : > { %8882 = vst [vmem:[#allocation10_spill] sm:$0xff] %v6673_v19 }
  0xb8   : > { %v6675_v37 = vpop.permute.xlu0 %4442  ;;  %4732 = vrot.lane.b32.xlu1 %v8883_v59, %s5684_s15 }
  0xba   : > { %4737 = vrot.lane.b32.xlu0 %v6186_v40, %s5685_s23  ;;  %v6681_v38 = vpop.permute.xlu1 %4452 }
  0xbb   : > { %8884 = vst [vmem:[#allocation9_spill] sm:$0xff] %v6681_v38  ;;  %v5577_v38 = vld [vmem:[#allocation2 + $0x188] sm:$0xff] }
  0xbc   : > { %v6683_v51 = vpop.permute.xlu0 %4457  ;;  %4742 = vrot.lane.b32.xlu1 %v6202_v55, %s5685_s23 }
  0xbd   : > { %8885 = vst [vmem:[#allocation11_spill] sm:$0xff] %v6683_v51  ;;  %v8898_v51 = vld [vmem:[#allocation18_spill] sm:$0xff] }
  0xbe   : > { %4747 = vrot.lane.b32.xlu0 %v6330_v43, %s5686_s30  ;;  %v6689_v33 = vpop.permute.xlu1 %4462 }
  0xbf   : > { %8886 = vst [vmem:[#allocation12_spill] sm:$0xff] %v6689_v33 }
  0xc0   : > { %v6691_v47 = vpop.permute.xlu0 %4467  ;;  %4752 = vrot.lane.b32.xlu1 %v6362_v49, %s5686_s30 }
  0xc1   : > { %8887 = vst [vmem:[#allocation39_spill] sm:$0xff] %v6691_v47  ;;  %v8891_v47 = vld [vmem:[#allocation23_spill] sm:$0xff] }
  0xc2   : > { %4757 = vrot.lane.b32.xlu0 %v8883_v59, %s5687_s6  ;;  %v6697_v40 = vpop.permute.xlu1 %4472  ;;  %v8890_v59 = vld [vmem:[#allocation16_spill] sm:$0xff] }
  0xc3   : > { %8888 = vst [vmem:[#allocation40_spill] sm:$0xff] %v6697_v40 }
  0xc4   : > { %v6699_v14 = vpop.permute.xlu0 %4477  ;;  %4762 = vrot.lane.b32.xlu1 %v8889_v21, %s5687_s6 }
  0xc5   : > { %v4480_v19 = vunpack.i.h.bf16 %v6699_v14 }
  0xc6   : > { %4767 = vrot.lane.b32.xlu0 %v6202_v55, %s5688_s7  ;;  %v6705_v43 = vpop.permute.xlu1 %4482 }
  0xc7   : > { %v4485_v12 = vunpack.i.h.bf16 %v6705_v43 }
  0xc8   : > { %v6707_v57 = vpop.permute.xlu0 %4487  ;;  %4772 = vrot.lane.b32.xlu1 %v6211_v28, %s5688_s7 }
  0xca   : > { %4777 = vrot.lane.b32.xlu0 %v8889_v21, %s5684_s15  ;;  %v6713_v49 = vpop.permute.xlu1 %4492 }
  0xcc   : > { %v6715_v5 = vpop.permute.xlu0 %4497  ;;  %4782 = vrot.lane.b32.xlu1 %v8890_v59, %s5684_s15 }
  0xcd   : > { %v4500_v58 = vunpack.i.h.bf16 %v6715_v5 }
  0xce   : > { %4787 = vrot.lane.b32.xlu0 %v6211_v28, %s5685_s23  ;;  %v6721_v55 = vpop.permute.xlu1 %4502 }
  0xcf   : > { %v4505_v39 = vunpack.i.h.bf16 %v6721_v55 }
  0xd0   : > { %v6723_v40 = vpop.permute.xlu0 %4507  ;;  %4792 = vrot.lane.b32.xlu1 %v8891_v47, %s5685_s23 }
  0xd2   : > { %4797 = vrot.lane.b32.xlu0 %v6366_v50, %s5686_s30  ;;  %v6729_v21 = vpop.permute.xlu1 %4512 }
  0xd4   : > { %v6731_v45 = vpop.permute.xlu0 %4517  ;;  %4802 = vrot.lane.b32.xlu1 %v6394_v46, %s5686_s30 }
  0xd6   : > { %4807 = vrot.lane.b32.xlu0 %v8890_v59, %s5687_s6  ;;  %v6737_v28 = vpop.permute.xlu1 %4522 }
  0xd8   : > { %v6739_v60 = vpop.permute.xlu0 %4527  ;;  %4812 = vrot.lane.b32.xlu1 %v8893_v41, %s5687_s6 }
  0xd9   : > { %8892 = vst [vmem:[#allocation13_spill] sm:$0xff] %v6739_v60 }
  0xda   : > { %4817 = vrot.lane.b32.xlu0 %v8891_v47, %s5688_s7  ;;  %v6745_v50 = vpop.permute.xlu1 %4532 }
  0xdb   : > { %8894 = vst [vmem:[#allocation16_spill] sm:$0xff] %v6745_v50 }
  0xdc   : > { %v6747_v33 = vpop.permute.xlu0 %4537  ;;  %4822 = vrot.lane.b32.xlu1 %v6215_v53, %s5688_s7 }
  0xdd   : > { %8895 = vst [vmem:[#allocation23_spill] sm:$0xff] %v6747_v33 }
  0xde   : > { %4827 = vrot.lane.b32.xlu0 %v8893_v41, %s5684_s15  ;;  %v6753_v46 = vpop.permute.xlu1 %4542 }
  0xdf   : > { %8896 = vst [vmem:[#allocation17_spill] sm:$0xff] %v6753_v46 }
  0xe0   : > { %v6755_v59 = vpop.permute.xlu0 %4547  ;;  %4832 = vrot.lane.b32.xlu1 %v8898_v51, %s5684_s15 }
  0xe1   : > { %8897 = vst [vmem:[#allocation41_spill] sm:$0xff] %v6755_v59  ;;  %v8900_v59 = vld [vmem:[#allocation20_spill] sm:$0xff] }
  0xe2   : > { %4837 = vrot.lane.b32.xlu0 %v6215_v53, %s5685_s23  ;;  %v6761_v47 = vpop.permute.xlu1 %4552 }
  0xe3   : > { %8899 = vst [vmem:[#allocation18_spill] sm:$0xff] %v6761_v47 }
  0xe4   : > { %v6763_v29 = vpop.permute.xlu0 %4557  ;;  %4842 = vrot.lane.b32.xlu1 %v6213_v15, %s5685_s23 }
  0xe6   : > { %4847 = vrot.lane.b32.xlu0 %v6400_v7, %s5686_s30  ;;  %v6769_v41 = vpop.permute.xlu1 %4562 }
  0xe8   : > { %v6771_v46 = vpop.permute.xlu0 %4567  ;;  %4852 = vrot.lane.b32.xlu1 %v6404_v1, %s5686_s30 }
  0xea   : > { %4857 = vrot.lane.b32.xlu0 %v8898_v51, %s5687_s6  ;;  %v6777_v53 = vpop.permute.xlu1 %4572  ;;  %v435_v51 = vld [vmem:[#allocation2] sm:$0xff] }
  0xec   : > { %v6779_v47 = vpop.permute.xlu0 %4577  ;;  %4862 = vrot.lane.b32.xlu1 %v8900_v59, %s5687_s6 }
  0xee   : > { %4867 = vrot.lane.b32.xlu0 %v6213_v15, %s5688_s7  ;;  %v6785_v7 = vpop.permute.xlu1 %4582  ;;  %v562_v15 = vrot.slane %v435_v51, 7 }
  0xf0   : > { %v6787_v33 = vpop.permute.xlu0 %4587  ;;  %4872 = vrot.lane.b32.xlu1 %v6241_v2, %s5688_s7 }
  0xf2   : > { %4877 = vrot.lane.b32.xlu0 %v8900_v59, %s5684_s15  ;;  %v6793_v1 = vpop.permute.xlu1 %4592  ;;  %v8903_v59 = vld [vmem:[#allocation7_spill] sm:$0xff] }
  0xf3   : > { %v8904_v52 = vrot.slane %v8903_v59, 7 }
  0xf4   : > { %v6795_v31 = vpop.permute.xlu0 %4597  ;;  %4882 = vrot.lane.b32.xlu1 %v8901_v26, %s5684_s15 }
  0xf5   : > { %v6812_v8 = vsel %vm561_vm1, %v562_v15, %v8904_v52  ;;  %v5579_v52 = vld [vmem:[#allocation2 + $0x1a8] sm:$0xff]  ;;  %v5580_v15 = vld [vmem:[#allocation2 + $0x1b0] sm:$0xff] }
  0xf6   : > { %4887 = vrot.lane.b32.xlu0 %v6241_v2, %s5685_s23  ;;  %v6801_v50 = vpop.permute.xlu1 %4602  ;;  %v5578_v2 = vld [vmem:[#allocation2 + $0x190] sm:$0xff]  ;;  %v6826_v59 = vpack.i.bf16 %v5580_v15, %v5579_v52  ;;  %v4499_v52 = vunpack.i.l.bf16 %v6715_v5 }
  0xf7   : > { %v6816_v51 = vpack.i.bf16 %v5578_v2, %v5577_v38  ;;  %v4490_v38 = vunpack.i.h.bf16 %v6707_v57  ;;  %v4489_v2 = vunpack.i.l.bf16 %v6707_v57  ;;  %v1584_v57 = vsel %vm224_vm0, %v6381_v13, %v4480_v19  ;;  %v8909_v13 = vld [vmem:[#allocation22_spill] sm:$0xff] }
  0xf8   : > { %v6803_v60 = vpop.permute.xlu0 %4607  ;;  %4892 = vrot.lane.b32.xlu1 %v6219_v20, %s5685_s23  ;;  %v4560_v19 = vunpack.i.h.bf16 %v6763_v29 }
  0xf9   : > { %8902 = vst [vmem:[#allocation20_spill] sm:$0xff] %v6803_v60  ;;  %v4479_v60 = vunpack.i.l.bf16 %v6699_v14  ;;  %v5581_v14 = vld [vmem:[#allocation2 + $0x1c8] sm:$0xff] }
  0xfa   : > { %4897 = vrot.lane.b32.xlu0 %v6430_v6, %s5686_s30  ;;  %v6814_v42 = vpop.permute.xlu1 %4612  ;;  %v4484_v6 = vunpack.i.l.bf16 %v6705_v43  ;;  %v4495_v43 = vunpack.i.h.bf16 %v6713_v49 }
  0xfb   : > { %8905 = vst [vmem:[#allocation21_spill] sm:$0xff] %v6814_v42 }
  0xfc   : > { %v6820_v63 = vpop.permute.xlu0 %4617  ;;  %4902 = vrot.lane.b32.xlu1 %v6434_v9, %s5686_s30  ;;  %v4494_v9 = vunpack.i.l.bf16 %v6713_v49  ;;  %v1586_v49 = vsel %vm224_vm0, %v6387_v44, %v4485_v12  ;;  %v1585_v5 = vsel %vm224_vm0, %v6384_v16, %v4484_v6  ;;  %v4559_v44 = vunpack.i.l.bf16 %v6763_v29 }
  0xfd   : > { %8906 = vst [vmem:[#allocation7_spill] sm:$0xff] %v6820_v63  ;;  %v5582_v63 = vld [vmem:[#allocation2 + $0x1d0] sm:$0xff]  ;;  %v1590_v16 = vsel %vm224_vm0, %v6422_v0, %v4495_v43  ;;  %v1594_v29 = vsel %vm224_vm0, %v6450_v11, %v4505_v39  ;;  %v4564_v0 = vunpack.i.l.bf16 %v6769_v41  ;;  %v1617_v11 = vsel %vm1599_vm5, %v1584_v57, %v4560_v19 }
  0xfe   : > { %4907 = vrot.lane.b32.xlu0 %v8901_v26, %s5687_s6  ;;  %v6832_v42 = vpack.i.bf16 %v5582_v63, %v5581_v14  ;;  %v6838_v15 = vpop.permute.xlu1 %4622  ;;  %v1583_v26 = vsel %vm224_vm0, %v6375_v62, %v4479_v60  ;;  %v4504_v63 = vunpack.i.l.bf16 %v6721_v55  ;;  %v1588_v60 = vsel %vm224_vm0, %v6412_v4, %v4490_v38 }
  0xff   : > { %8908 = vst [vmem:[#allocation43_spill] sm:$0xff] %v6838_v15  ;;  %v4510_v15 = vunpack.i.h.bf16 %v6723_v40  ;;  %v1587_v62 = vsel %vm224_vm0, %v6407_v36, %v4489_v2  ;;  %v1589_v12 = vsel %vm224_vm0, %v6419_v34, %v4494_v9  ;;  %v1591_v4 = vsel %vm224_vm0, %v6437_v3, %v4499_v52 }
 0x100   : > { %8907 = vst [vmem:[#allocation42_spill] sm:$0xff] %v6832_v42  ;;  %v6846_v14 = vpop.permute.xlu0 %4627  ;;  %v4509_v42 = vunpack.i.l.bf16 %v6723_v40  ;;  %4912 = vrot.lane.b32.xlu1 %v8909_v13, %s5687_s6  ;;  %v1592_v40 = vsel %vm224_vm0, %v6440_v17, %v4500_v58  ;;  %v4565_v55 = vunpack.i.h.bf16 %v6769_v41  ;;  %v1616_v39 = vsel %vm1599_vm5, %v1583_v26, %v4559_v44 }
 0x101   : > { %v6882_v34 = vsel %vm224_vm0, %v6470_v54, %v4510_v15  ;;  %v4569_v41 = vunpack.i.l.bf16 %v6771_v46  ;;  %v4575_v54 = vunpack.i.h.bf16 %v6777_v53  ;;  %v1618_v9 = vsel %vm1599_vm5, %v1585_v5, %v4564_v0 }
 0x102   : > { %4917 = vrot.lane.b32.xlu0 %v6219_v20, %s5688_s7  ;;  %v6872_v36 = vpop.permute.xlu1 %4632  ;;  %v1593_v20 = vsel %vm224_vm0, %v6445_v18, %v4504_v63  ;;  %v6886_v58 = vsel %vm224_vm0, %v6467_v24, %v4509_v42  ;;  %v4570_v18 = vunpack.i.h.bf16 %v6771_v46  ;;  %v4574_v42 = vunpack.i.l.bf16 %v6777_v53 }
 0x103   : > { %v1619_v43 = vsel %vm1599_vm5, %v1586_v49, %v4565_v55  ;;  %v4580_v57 = vunpack.i.h.bf16 %v6779_v47  ;;  %v4579_v26 = vunpack.i.l.bf16 %v6779_v47  ;;  %v1623_v47 = vsel %vm1599_vm5, %v1590_v16, %v4575_v54 }
 0x104   : > { %v4638_v6 = vpop.permute.xlu0 %4637  ;;  %4922 = vrot.lane.b32.xlu1 %v6251_v30, %s5688_s7  ;;  %v1621_v19 = vsel %vm1599_vm5, %v1588_v60, %v4570_v18  ;;  %v1622_v44 = vsel %vm1599_vm5, %v1589_v12, %v4574_v42  ;;  %v4585_v0 = vunpack.i.h.bf16 %v6785_v7  ;;  %v4590_v18 = vunpack.i.h.bf16 %v6787_v33 }
 0x105   : > { %v4640_v3 = vunpack.i.h.bf16 %v4638_v6  ;;  %v4639_v17 = vunpack.i.l.bf16 %v4638_v6  ;;  %v4584_v6 = vunpack.i.l.bf16 %v6785_v7  ;;  %v1625_v16 = vsel %vm1599_vm5, %v1592_v40, %v4580_v57 }
 0x106   : > { %4927 = vrot.lane.b32.xlu0 %v8909_v13, %s5684_s15  ;;  %v4643_v2 = vpop.permute.xlu1 %4642  ;;  %v1620_v13 = vsel %vm1599_vm5, %v1587_v62, %v4569_v41  ;;  %v4589_v41 = vunpack.i.l.bf16 %v6787_v33  ;;  %v4515_v40 = vunpack.i.h.bf16 %v6729_v21  ;;  %v4594_v57 = vunpack.i.l.bf16 %v6793_v1 }
 0x107   : > { %v6899_v24 = vsel %vm1632_vm6, %v1617_v11, %v4640_v3  ;;  %v6902_v38 = vsel %vm1632_vm6, %v1616_v39, %v4639_v17  ;;  %v4645_v52 = vunpack.i.h.bf16 %v4643_v2  ;;  %v4644_v46 = vunpack.i.l.bf16 %v4643_v2 }
 0x108   : > { %v4648_v15 = vpop.permute.xlu0 %4647  ;;  %4932 = vrot.lane.b32.xlu1 %v6816_v51, %s5684_s15 }
 0x109   : > { %v4650_v63 = vunpack.i.h.bf16 %v4648_v15  ;;  %v4649_v53 = vunpack.i.l.bf16 %v4648_v15  ;;  %v6913_v49 = vsel %vm1632_vm6, %v1618_v9, %v4644_v46  ;;  %v6916_v5 = vsel %vm1632_vm6, %v1619_v43, %v4645_v52 }
 0x10a   : > { %4937 = vrot.lane.b32.xlu0 %v6251_v30, %s5685_s23  ;;  %v4653_v60 = vpop.permute.xlu1 %4652  ;;  %v1624_v30 = vsel %vm1599_vm5, %v1591_v4, %v4579_v26  ;;  %v4514_v4 = vunpack.i.l.bf16 %v6729_v21  ;;  %v1627_v43 = vsel %vm1599_vm5, %v1594_v29, %v4585_v0  ;;  %v1626_v9 = vsel %vm1599_vm5, %v1593_v20, %v4584_v6 }
 0x10b   : > { %v6923_v55 = vsel %vm1632_vm6, %v1621_v19, %v4650_v63  ;;  %v6926_v62 = vsel %vm1632_vm6, %v1620_v13, %v4649_v53  ;;  %v4655_v3 = vunpack.i.h.bf16 %v4653_v60  ;;  %v4654_v17 = vunpack.i.l.bf16 %v4653_v60 }
 0x10c   : > { %v4658_v39 = vpop.permute.xlu0 %4657  ;;  %4942 = vrot.lane.b32.xlu1 %v6249_v56, %s5685_s23  ;;  %v1628_v63 = vsel %vm1599_vm5, %v6886_v58, %v4589_v41  ;;  %v1629_v29 = vsel %vm1599_vm5, %v6882_v34, %v4590_v18  ;;  %v780_v19 = vrot.slane %v6255_v27, 1  ;;  %v1598_v34 = vsel %vm224_vm0, %v6476_v25, %v4515_v40  ;;  %v6990_v25 = vld [vmem:[#allocation2 + $0x230] sm:$0xff] }
 0x10d   : > { %v4660_v11 = vunpack.i.h.bf16 %v4658_v39  ;;  %v4659_v12 = vunpack.i.l.bf16 %v4658_v39  ;;  %v6937_v54 = vsel %vm1632_vm6, %v1622_v44, %v4654_v17  ;;  %v6940_v7 = vsel %vm1632_vm6, %v1623_v47, %v4655_v3  ;;  %v503_v17 = vld [vmem:[#allocation2 + $0x220] sm:$0xff]  ;;  %v6988_v39 = vld [vmem:[#allocation2 + $0x228] sm:$0xff]  ;;  %v5584_v18 = vld [vmem:[#allocation2 + $0x1f0] sm:$0xff] }
 0x10e   : > { %4947 = vrot.lane.b32.xlu0 %v6458_v35, %s5686_s30  ;;  %v4663_v33 = vpop.permute.xlu1 %4662  ;;  %v4595_v35 = vunpack.i.h.bf16 %v6793_v1  ;;  %v502_v1 = vld [vmem:[#allocation2 + $0x218] sm:$0xff]  ;;  %v1597_v47 = vsel %vm224_vm0, %v6473_v22, %v4514_v4  ;;  %v781_v3 = vrot.slane %v6275_v32, 1  ;;  %v4439_v32 = vunpack.i.l.bf16 %v6667_v61 }
 0x10f   : > { %v6947_v42 = vsel %vm1632_vm6, %v1625_v16, %v4660_v11  ;;  %v6950_v2 = vsel %vm1632_vm6, %v1624_v30, %v4659_v12  ;;  %v4665_v52 = vunpack.i.h.bf16 %v4663_v33  ;;  %v4664_v46 = vunpack.i.l.bf16 %v4663_v33  ;;  %v5583_v12 = vld [vmem:[#allocation2 + $0x1e8] sm:$0xff] }
 0x110   : > { %v4668_v15 = vpop.permute.xlu0 %4667  ;;  %4952 = vrot.lane.b32.xlu1 %v6464_v23, %s5686_s30  ;;  %v1630_v6 = vsel %vm1599_vm5, %v1597_v47, %v4594_v57  ;;  %v783_v27 = vrot.slane %v502_v1, 1  ;;  %v4440_v16 = vunpack.i.h.bf16 %v6667_v61  ;;  %v7004_v41 = vpack.i.bf16 %v5584_v18, %v5583_v12 }
 0x111   : > { %v4670_v26 = vunpack.i.h.bf16 %v4668_v15  ;;  %v4669_v21 = vunpack.i.l.bf16 %v4668_v15  ;;  %v6963_v20 = vsel %vm1632_vm6, %v1626_v9, %v4664_v46  ;;  %v6966_v53 = vsel %vm1632_vm6, %v1627_v43, %v4665_v52 }
 0x112   : > { %4957 = vrot.lane.b32.xlu0 %v6816_v51, %s5687_s6  ;;  %v4673_v58 = vpop.permute.xlu1 %4672  ;;  %v1631_v51 = vsel %vm1599_vm5, %v1598_v34, %v4595_v35  ;;  %v4444_v40 = vunpack.i.l.bf16 %v6675_v37  ;;  %v788_v33 = vrot.slane %v503_v17, 7  ;;  %v789_v43 = vrot.slane %v6988_v39, 7 }
 0x113   : > { %v6971_v13 = vsel %vm1632_vm6, %v1629_v29, %v4670_v26  ;;  %v6974_v23 = vsel %vm1632_vm6, %v1628_v63, %v4669_v21  ;;  %v4675_v44 = vunpack.i.h.bf16 %v4673_v58  ;;  %v4674_v60 = vunpack.i.l.bf16 %v4673_v58  ;;  %v8910_v26 = vld [vmem:[#allocation8_spill] sm:$0xff] }
 0x114   : > { %v6981_v0 = vpop.permute.xlu0 %4677  ;;  %4962 = vrot.lane.b32.xlu1 %v6826_v59, %s5687_s6  ;;  %v791_v9 = vrot.slane %v6990_v25, 7  ;;  %v7015_v61 = vsel %vm690_vm2, %v781_v3, %v783_v27  ;;  %v4445_v52 = vunpack.i.h.bf16 %v6675_v37  ;;  %v4520_v46 = vunpack.i.h.bf16 %v6731_v45 }
 0x115   : > { %v6993_v22 = vsel %vm1632_vm6, %v1630_v6, %v4674_v60  ;;  %v6996_v30 = vsel %vm1632_vm6, %v1631_v51, %v4675_v44  ;;  %v4519_v15 = vunpack.i.l.bf16 %v6731_v45  ;;  %v4524_v35 = vunpack.i.l.bf16 %v6737_v28  ;;  %v8911_v44 = vld [vmem:[#allocation42_spill] sm:$0xff] }
 0x116   : > { %4967 = vrot.lane.b32.xlu0 %v6249_v56, %s5688_s7  ;;  %v7002_v11 = vpop.permute.xlu1 %4682  ;;  %v7012_v56 = vsel %vm690_vm2, %v780_v19, %v781_v3  ;;  %v1567_v57 = vsel %vm224_vm0, %v6812_v8, %v4439_v32  ;;  %v1568_v21 = vsel %vm224_vm0, %v8910_v26, %v4440_v16  ;;  %v4525_v63 = vunpack.i.h.bf16 %v6737_v28 }
 0x117   : > { %v4600_v29 = vunpack.i.h.bf16 %v6795_v31  ;;  %v1569_v45 = vsel %vm224_vm0, %v6262_v48, %v4444_v40  ;;  %v4599_v1 = vunpack.i.l.bf16 %v6795_v31  ;;  %v7036_v8 = vsel %vm561_vm1, %v789_v43, %v791_v9  ;;  %v8912_v48 = vld [vmem:[#allocation24_spill] sm:$0xff] }
 0x118   : > { %v4688_v4 = vpop.permute.xlu0 %4687  ;;  %4972 = vrot.lane.b32.xlu1 %v6281_v10, %s5688_s7  ;;  %v4605_v19 = vunpack.i.h.bf16 %v6801_v50  ;;  %v4604_v28 = vunpack.i.l.bf16 %v6801_v50  ;;  %v4680_v34 = vunpack.i.h.bf16 %v6981_v0  ;;  %v4679_v47 = vunpack.i.l.bf16 %v6981_v0 }
 0x119   : > { %v1570_v31 = vsel %vm224_vm0, %v8912_v48, %v4445_v52  ;;  %v1601_v60 = vsel %vm1599_vm5, %v1568_v21, %v4520_v46  ;;  %v1600_v51 = vsel %vm1599_vm5, %v1567_v57, %v4519_v15  ;;  %v1602_v6 = vsel %vm1599_vm5, %v1569_v45, %v4524_v35  ;;  %v8913_v52 = vld [vmem:[#allocation27_spill] sm:$0xff] }
 0x11a   : > { %4977 = vrot.lane.b32.xlu0 %v6826_v59, %s5684_s15  ;;  %v4693_v37 = vpop.permute.xlu1 %4692  ;;  %v7033_v59 = vsel %vm561_vm1, %v788_v33, %v789_v43  ;;  %v1603_v50 = vsel %vm1599_vm5, %v1570_v31, %v4525_v63  ;;  %v1634_v3 = vsel %vm1632_vm6, %v1601_v60, %v4600_v29  ;;  %v4690_v0 = vunpack.i.h.bf16 %v4688_v4  ;;  %v8914_v57 = vld [vmem:[#allocation19_spill] sm:$0xff]  ;;  %v8915_v60 = vld [vmem:[#allocation38_spill] sm:$0xff] }
 0x11b   : > { %v4689_v27 = vunpack.i.l.bf16 %v4688_v4  ;;  %v1633_v16 = vsel %vm1632_vm6, %v1600_v51, %v4599_v1  ;;  %v4684_v32 = vunpack.i.l.bf16 %v7002_v11  ;;  %v1635_v33 = vsel %vm1632_vm6, %v1602_v6, %v4604_v28 }
 0x11c   : > { %v4698_v58 = vpop.permute.xlu0 %4697  ;;  %4982 = vrot.lane.b32.xlu1 %v8911_v44, %s5684_s15  ;;  %v1636_v43 = vsel %vm1632_vm6, %v1603_v50, %v4605_v19  ;;  %v1667_v9 = vsel %vm1665_vm7, %v1634_v3, %v4680_v34  ;;  %v4685_v4 = vunpack.i.h.bf16 %v7002_v11  ;;  %v4694_v46 = vunpack.i.l.bf16 %v4693_v37 }
 0x11d   : > { %v4700_v12 = vunpack.i.h.bf16 %v4698_v58  ;;  %v4699_v18 = vunpack.i.l.bf16 %v4698_v58  ;;  %v1700_v21 = vsel %vm1698_vm8, %v1667_v9, %v4690_v0  ;;  %v4695_v63 = vunpack.i.h.bf16 %v4693_v37 }
 0x11e   : > { %4987 = vrot.lane.b32.xlu0 %v6281_v10, %s5685_s23  ;;  %v4703_v17 = vpop.permute.xlu1 %4702  ;;  %v1666_v10 = vsel %vm1665_vm7, %v1633_v16, %v4679_v47  ;;  %v1668_v1 = vsel %vm1665_vm7, %v1635_v33, %v4684_v32  ;;  %v1669_v51 = vsel %vm1665_vm7, %v1636_v43, %v4685_v4  ;;  %v8916_v33 = vld [vmem:[#allocation10_spill] sm:$0xff] }
 0x11f   : > { %v1699_v26 = vsel %vm1698_vm8, %v1666_v10, %v4689_v27  ;;  %v4704_v29 = vunpack.i.l.bf16 %v4703_v17  ;;  %v4705_v58 = vunpack.i.h.bf16 %v4703_v17  ;;  %v1733_v11 = vsel %vm1731_vm9, %v1700_v21, %v4700_v12 }
 0x120   : > { %v4708_v40 = vpop.permute.xlu0 %4707  ;;  %4992 = vrot.lane.b32.xlu1 %v8913_v52, %s5685_s23  ;;  %v1732_v28 = vsel %vm1731_vm9, %v1699_v26, %v4699_v18  ;;  %v1701_v37 = vsel %vm1698_vm8, %v1668_v1, %v4694_v46  ;;  %v1702_v3 = vsel %vm1698_vm8, %v1669_v51, %v4695_v63  ;;  %v4450_v43 = vunpack.i.h.bf16 %v8916_v33  ;;  %v506_v1 = vld [vmem:[#allocation2 + $0x238] sm:$0xff] }
 0x121   : > { %v4710_v15 = vunpack.i.h.bf16 %v4708_v40  ;;  %v4709_v35 = vunpack.i.l.bf16 %v4708_v40  ;;  %v1734_v0 = vsel %vm1731_vm9, %v1701_v37, %v4704_v29  ;;  %v1735_v32 = vsel %vm1731_vm9, %v1702_v3, %v4705_v58  ;;  %v8917_v58 = vld [vmem:[#allocation9_spill] sm:$0xff] }
 0x122   : > { %4997 = vrot.lane.b32.xlu0 %v8914_v57, %s5686_s30  ;;  %v4713_v45 = vpop.permute.xlu1 %4712  ;;  %v4449_v10 = vunpack.i.l.bf16 %v8916_v33  ;;  %v5586_v57 = vld [vmem:[#allocation2 + $0x210] sm:$0xff]  ;;  %v7101_v29 = vpack.i.bf16 %v7015_v61, %v7012_v56  ;;  %v8920_v61 = vld [vmem:[#allocation30_spill] sm:$0xff]  ;;  %v797_v3 = vrot.slane %v506_v1, 1 }
 0x123   : > { %v4715_v34 = vunpack.i.h.bf16 %v4713_v45  ;;  %v4714_v47 = vunpack.i.l.bf16 %v4713_v45  ;;  %v1765_v6 = vsel %vm1764_vm10, %v1732_v28, %v4709_v35  ;;  %v1766_v50 = vsel %vm1764_vm10, %v1733_v11, %v4710_v15  ;;  %v5585_v35 = vld [vmem:[#allocation2 + $0x208] sm:$0xff] }
 0x124   : > { %v4718_v19 = vpop.permute.xlu0 %4717  ;;  %5002 = vrot.lane.b32.xlu1 %v8915_v60, %s5686_s30  ;;  %v7095_v26 = vpack.i.bf16 %v5586_v57, %v5585_v35  ;;  %v5051_v45 = vpack.i.bf16 %v7036_v8, %v7033_v59  ;;  %v794_v11 = vrot.slane %v6988_v39, 1  ;;  %v8921_v60 = vld [vmem:[#allocation13_spill] sm:$0xff] }
 0x125   : > { %v4720_v48 = vunpack.i.h.bf16 %v4718_v19  ;;  %v4719_v31 = vunpack.i.l.bf16 %v4718_v19  ;;  %v1767_v9 = vsel %vm1764_vm10, %v1734_v0, %v4714_v47  ;;  %v1768_v4 = vsel %vm1764_vm10, %v1735_v32, %v4715_v34  ;;  %v8918_v47 = vld [vmem:[#allocation25_spill] sm:$0xff] }
 0x126   : > { %5007 = vrot.lane.b32.xlu0 %v8911_v44, %s5687_s6  ;;  %v4723_v27 = vpop.permute.xlu1 %4722  ;;  %v4455_v19 = vunpack.i.h.bf16 %v8917_v58  ;;  %v795_v34 = vrot.slane %v6990_v25, 1  ;;  %v4530_v51 = vunpack.i.h.bf16 %v8921_v60  ;;  %v4529_v37 = vunpack.i.l.bf16 %v8921_v60 }
 0x127   : > { %v1797_v17 = vsel %vm297_vm3, %v1765_v6, %v4719_v31  ;;  %v1798_v16 = vsel %vm297_vm3, %v1766_v50, %v4720_v48  ;;  %v4725_v12 = vunpack.i.h.bf16 %v4723_v27  ;;  %v4724_v18 = vunpack.i.l.bf16 %v4723_v27  ;;  %v8919_v31 = vld [vmem:[#allocation26_spill] sm:$0xff]  ;;  %v8922_v6 = vld [vmem:[#allocation16_spill] sm:$0xff] }
 0x128   : > { %v7082_v40 = vpop.permute.xlu0 %4727  ;;  %v1829_v44 = vpack.c.bf16 %v1798_v16, %v1797_v17  ;;  %5012 = vrot.lane.b32.xlu1 %v7004_v41, %s5687_s6  ;;  %v1571_v48 = vsel %vm224_vm0, %v8918_v47, %v4449_v10  ;;  %v1572_v56 = vsel %vm224_vm0, %v8919_v31, %v4450_v43  ;;  %v4535_v50 = vunpack.i.h.bf16 %v8922_v6  ;;  %v8923_v27 = vld [vmem:[#allocation20_spill] sm:$0xff] }
 0x129   : > { %v1799_v46 = vsel %vm297_vm3, %v1767_v9, %v4724_v18  ;;  %v1800_v15 = vsel %vm297_vm3, %v1768_v4, %v4725_v12  ;;  %v4534_v0 = vunpack.i.l.bf16 %v8922_v6  ;;  %v4610_v17 = vunpack.i.h.bf16 %v8923_v27  ;;  %v8924_v12 = vld [vmem:[#allocation29_spill] sm:$0xff] }
 0x12a   : > { %5017 = vrot.lane.b32.xlu0 %v8913_v52, %s5688_s7  ;;  %4300 = vmatprep.mubr.msk.bf16.mxu0 %vm1866_vm11, %v1829_v44  ;;  %v7097_v21 = vpop.permute.xlu1 %4732  ;;  %v1830_v63 = vpack.c.bf16 %v1800_v15, %v1799_v46  ;;  %v4454_v52 = vunpack.i.l.bf16 %v8917_v58  ;;  %v5061_v32 = vpack.i.bf16 %v6990_v25, %v6988_v39  ;;  %v1574_v18 = vsel %vm224_vm0, %v8924_v12, %v4455_v19  ;;  %v8925_v44 = vld [vmem:[#allocation28_spill] sm:$0xff]  ;;  %v8926_v9 = vld [vmem:[#allocation21_spill] sm:$0xff] }
 0x12b   : > { %v4609_v43 = vunpack.i.l.bf16 %v8923_v27  ;;  %v4615_v4 = vunpack.i.h.bf16 %v8926_v9  ;;  %v4614_v46 = vunpack.i.l.bf16 %v8926_v9  ;;  %v4730_v15 = vunpack.i.h.bf16 %v7082_v40  ;;  %v8927_v27 = vld [vmem:[#allocation32_spill] sm:$0xff] }
 0x12c   : > { %v4738_v28 = vpop.permute.xlu0 %4737  ;;  %5022 = vrot.lane.b32.xlu1 %v8920_v61, %s5688_s7  ;;  %4301 = vmatmul.mubr.msk.bf16.vlgmr.msra.gmra.mrb[0].mxu0 %vm1866_vm11, %v1830_v63  ;;  %v1573_v33 = vsel %vm224_vm0, %v8925_v44, %v4454_v52  ;;  %v4729_v35 = vunpack.i.l.bf16 %v7082_v40  ;;  %v1605_v57 = vsel %vm1599_vm5, %v1572_v56, %v4530_v51  ;;  %v1604_v63 = vsel %vm1599_vm5, %v1571_v48, %v4529_v37  ;;  %v8929_v39 = vld [vmem:[#allocation12_spill] sm:$0xff] }
 0x12d   : > { %v1607_v1 = vsel %vm1599_vm5, %v1574_v18, %v4535_v50  ;;  %v7145_v58 = vsel %vm690_vm2, %v795_v34, %v797_v3  ;;  %v1606_v19 = vsel %vm1599_vm5, %v1573_v33, %v4534_v0  ;;  %v1638_v52 = vsel %vm1632_vm6, %v1605_v57, %v4610_v17 }
 0x12e   : > { %5027 = vrot.lane.b32.xlu0 %v7004_v41, %s5684_s15  ;;  %v4743_v16 = vpop.permute.xlu1 %4742  ;;  %v7131_v41 = vsel %vm690_vm2, %v794_v11, %v795_v34  ;;  %v4740_v40 = vunpack.i.h.bf16 %v4738_v28  ;;  %v4739_v11 = vunpack.i.l.bf16 %v4738_v28  ;;  %v1637_v31 = vsel %vm1632_vm6, %v1604_v63, %v4609_v43 }
 0x12f   : > { %v4734_v56 = vunpack.i.l.bf16 %v7097_v21  ;;  %v1639_v37 = vsel %vm1632_vm6, %v1606_v19, %v4614_v46  ;;  %v1670_v34 = vsel %vm1665_vm7, %v1637_v31, %v4729_v35  ;;  %v1671_v6 = vsel %vm1665_vm7, %v1638_v52, %v4730_v15 }
 0x130   : > { %v4748_v10 = vpop.permute.xlu0 %4747  ;;  %5032 = vrot.lane.b32.xlu1 %v7095_v26, %s5684_s15  ;;  %v4735_v28 = vunpack.i.h.bf16 %v7097_v21  ;;  %v4744_v50 = vunpack.i.l.bf16 %v4743_v16  ;;  %v1703_v17 = vsel %vm1698_vm8, %v1670_v34, %v4739_v11  ;;  %v1704_v12 = vsel %vm1698_vm8, %v1671_v6, %v4740_v40  ;;  %s4144_s15 = sshll.u32 %s5744_s22, 12 }
 0x131   : > { %v4750_v48 = vunpack.i.h.bf16 %v4748_v10  ;;  %v4749_v60 = vunpack.i.l.bf16 %v4748_v10  ;;  %v4745_v18 = vunpack.i.h.bf16 %v4743_v16  ;;  %v1672_v43 = vsel %vm1665_vm7, %v1639_v37, %v4734_v56  ;;  %s8688_s26 = scalar_lea.hbm %s8745_s5, %s4144_s15 }
 0x132   : > { %5037 = vrot.lane.b32.xlu0 %v8920_v61, %s5685_s23  ;;  %v4753_v47 = vpop.permute.xlu1 %4752  ;;  %v1640_v61 = vsel %vm1632_vm6, %v1607_v1, %v4615_v4  ;;  %v1705_v63 = vsel %vm1698_vm8, %v1672_v43, %v4744_v50  ;;  %v4465_v25 = vunpack.i.h.bf16 %v8929_v39  ;;  %v8933_v43 = vld [vmem:[#allocation33_spill] sm:$0xff] }
 0x133   : > { %v4754_v44 = vunpack.i.l.bf16 %v4753_v47  ;;  %v1736_v10 = vsel %vm1731_vm9, %v1703_v17, %v4749_v60  ;;  %v1737_v9 = vsel %vm1731_vm9, %v1704_v12, %v4750_v48  ;;  %v4755_v21 = vunpack.i.h.bf16 %v4753_v47 }
 0x134   : > { %v4758_v51 = vpop.permute.xlu0 %4757  ;;  %5042 = vrot.lane.b32.xlu1 %v7101_v29, %s5685_s23  ;;  %v1673_v16 = vsel %vm1665_vm7, %v1640_v61, %v4735_v28  ;;  %v8928_v28 = vld [vmem:[#allocation11_spill] sm:$0xff] }
 0x135   : > { %v4760_v3 = vunpack.i.h.bf16 %v4758_v51  ;;  %v4759_v0 = vunpack.i.l.bf16 %v4758_v51  ;;  %v1706_v52 = vsel %vm1698_vm8, %v1673_v16, %v4745_v18  ;;  %v1738_v40 = vsel %vm1731_vm9, %v1705_v63, %v4754_v44  ;;  %v8932_v18 = vld [vmem:[#allocation7_spill] sm:$0xff] }
 0x136   : > { %5047 = vrot.lane.b32.xlu0 %v8927_v27, %s5686_s30  ;;  %v4763_v33 = vpop.permute.xlu1 %4762  ;;  %v4460_v50 = vunpack.i.h.bf16 %v8928_v28  ;;  %v8931_v27 = vld [vmem:[#allocation17_spill] sm:$0xff]  ;;  %v4620_v44 = vunpack.i.h.bf16 %v8932_v18 }
 0x137   : > { %v4765_v46 = vunpack.i.h.bf16 %v4763_v33  ;;  %v4764_v15 = vunpack.i.l.bf16 %v4763_v33  ;;  %v1769_v1 = vsel %vm1764_vm10, %v1736_v10, %v4759_v0  ;;  %v1770_v19 = vsel %vm1764_vm10, %v1737_v9, %v4760_v3  ;;  %v8934_v9 = vld [vmem:[#allocation31_spill] sm:$0xff] }
 0x138   : > { %v4768_v4 = vpop.permute.xlu0 %4767  ;;  %5052 = vrot.lane.b32.xlu1 %v5051_v45, %s5686_s30  ;;  %v1739_v45 = vsel %vm1731_vm9, %v1706_v52, %v4755_v21  ;;  %v4459_v3 = vunpack.i.l.bf16 %v8928_v28  ;;  %v4545_v17 = vunpack.i.h.bf16 %v8931_v27  ;;  %v4544_v12 = vunpack.i.l.bf16 %v8931_v27  ;;  %v8937_v52 = vld [vmem:[#allocation34_spill] sm:$0xff] }
 0x139   : > { %v4770_v35 = vunpack.i.h.bf16 %v4768_v4  ;;  %v4769_v57 = vunpack.i.l.bf16 %v4768_v4  ;;  %v1771_v60 = vsel %vm1764_vm10, %v1738_v40, %v4764_v15  ;;  %v1772_v51 = vsel %vm1764_vm10, %v1739_v45, %v4765_v46  ;;  %v8935_v4 = vld [vmem:[#allocation35_spill] sm:$0xff] }
 0x13a   : > { %5057 = vrot.lane.b32.xlu0 %v7095_v26, %s5687_s6  ;;  %v4773_v8 = vpop.permute.xlu1 %4772  ;;  %v5071_v26 = vpack.i.bf16 %v7145_v58, %v7131_v41  ;;  %v4464_v41 = vunpack.i.l.bf16 %v8929_v39  ;;  %v8930_v58 = vld [vmem:[#allocation23_spill] sm:$0xff]  ;;  %v1576_v10 = vsel %vm224_vm0, %v8933_v43, %v4460_v50  ;;  %v1575_v21 = vsel %vm224_vm0, %v8934_v9, %v4459_v3 }
 0x13b   : > { %v1801_v11 = vsel %vm297_vm3, %v1769_v1, %v4769_v57  ;;  %v1802_v59 = vsel %vm297_vm3, %v1770_v19, %v4770_v35  ;;  %v4775_v47 = vunpack.i.h.bf16 %v4773_v8  ;;  %v4774_v31 = vunpack.i.l.bf16 %v4773_v8  ;;  %v8936_v57 = vld [vmem:[#allocation43_spill] sm:$0xff] }
 0x13c   : > { %v4778_v56 = vpop.permute.xlu0 %4777  ;;  %v1831_v48 = vpack.c.bf16 %v1802_v59, %v1801_v11  ;;  %5062 = vrot.lane.b32.xlu1 %v5061_v32, %s5687_s6  ;;  %v4540_v0 = vunpack.i.h.bf16 %v8930_v58  ;;  %v1578_v46 = vsel %vm224_vm0, %v8935_v4, %v4465_v25  ;;  %v4619_v15 = vunpack.i.l.bf16 %v8932_v18  ;;  %s5691_s6 = smov [#allocation4]  }
 0x13d   : > { %v1803_v37 = vsel %vm297_vm3, %v1771_v60, %v4774_v31  ;;  %v1804_v61 = vsel %vm297_vm3, %v1772_v51, %v4775_v47  ;;  %v4625_v16 = vunpack.i.h.bf16 %v8936_v57  ;;  %v4624_v63 = vunpack.i.l.bf16 %v8936_v57  ;;  %s5620_s9 = sshll.u32 %s5691_s6, 4  ;;  %s5621_s9 = int_to_ptr.vmem [resolvable:$false] %s5620_s9 }
 0x13e   : > { %5067 = vrot.lane.b32.xlu0 %v7101_v29, %s5688_s7  ;;  %4304 = vmatprep.mubr.msk.bf16.mxu0 %vm1866_vm11, %v1831_v48  ;;  %v4783_v34 = vpop.permute.xlu1 %4782  ;;  %v1832_v6 = vpack.c.bf16 %v1804_v61, %v1803_v37  ;;  %v4539_v29 = vunpack.i.l.bf16 %v8930_v58  ;;  %v4780_v1 = vunpack.i.h.bf16 %v4778_v56  ;;  %v4779_v19 = vunpack.i.l.bf16 %v4778_v56  ;;  %s5622_s10 = scalar_lea.vmem %s5621_s9, 8192 }
 0x13f   : > { %v1577_v40 = vsel %vm224_vm0, %v8937_v52, %v4464_v41  ;;  %v1609_v59 = vsel %vm1599_vm5, %v1576_v10, %v4540_v0  ;;  %v1611_v8 = vsel %vm1599_vm5, %v1578_v46, %v4545_v17  ;;  %v4785_v39 = vunpack.i.h.bf16 %v4783_v34 }
 0x140   : > { %v4788_v32 = vpop.permute.xlu0 %4787  ;;  %5072 = vrot.lane.b32.xlu1 %v5071_v26, %s5688_s7  ;;  %4305 = vmatmul.mubr.msk.bf16.gmra.mrb[4].mxu0 %vm1866_vm11, %v1832_v6  ;;  %v1608_v11 = vsel %vm1599_vm5, %v1575_v21, %v4539_v29  ;;  %v1610_v45 = vsel %vm1599_vm5, %v1577_v40, %v4544_v12  ;;  %v1642_v47 = vsel %vm1632_vm6, %v1609_v59, %v4620_v44  ;;  %v4784_v26 = vunpack.i.l.bf16 %v4783_v34 }
 0x141   : > { %v4790_v31 = vunpack.i.h.bf16 %v4788_v32  ;;  %v4789_v48 = vunpack.i.l.bf16 %v4788_v32  ;;  %v1641_v51 = vsel %vm1632_vm6, %v1608_v11, %v4619_v15  ;;  %v1643_v6 = vsel %vm1632_vm6, %v1610_v45, %v4624_v63 }
 0x142   : > { %v4793_v33 = vpop.permute.xlu1 %4792  ;;  %v1644_v28 = vsel %vm1632_vm6, %v1611_v8, %v4625_v16  ;;  %v1674_v50 = vsel %vm1665_vm7, %v1641_v51, %v4779_v19  ;;  %v1675_v3 = vsel %vm1665_vm7, %v1642_v47, %v4780_v1  ;;  %v1676_v12 = vsel %vm1665_vm7, %v1643_v6, %v4784_v26  ;;  %v8938_v26 = vld [vmem:[#allocation39_spill] sm:$0xff] }
 0x143   : > { %v4794_v25 = vunpack.i.l.bf16 %v4793_v33  ;;  %v1707_v32 = vsel %vm1698_vm8, %v1674_v50, %v4789_v48  ;;  %v1708_v0 = vsel %vm1698_vm8, %v1675_v3, %v4790_v31  ;;  %v4795_v29 = vunpack.i.h.bf16 %v4793_v33  ;;  %v8940_v3 = vld [vmem:[#allocation41_spill] sm:$0xff] }
 0x144   : > { %v4798_v35 = vpop.permute.xlu0 %4797  ;;  %v1677_v46 = vsel %vm1665_vm7, %v1644_v28, %v4785_v39  ;;  %v4550_v39 = vunpack.i.h.bf16 %v8940_v3 }
 0x145   : > { %v4800_v56 = vunpack.i.h.bf16 %v4798_v35  ;;  %v4799_v37 = vunpack.i.l.bf16 %v4798_v35  ;;  %v1709_v15 = vsel %vm1698_vm8, %v1676_v12, %v4794_v25  ;;  %v1710_v57 = vsel %vm1698_vm8, %v1677_v46, %v4795_v29  ;;  %v8943_v12 = vld [vmem:[#allocation36_spill] sm:$0xff] }
 0x146   : > { %v4803_v60 = vpop.permute.xlu1 %4802  ;;  %v4549_v25 = vunpack.i.l.bf16 %v8940_v3 }
 0x147   : > { %v4804_v27 = vunpack.i.l.bf16 %v4803_v60  ;;  %v1740_v18 = vsel %vm1731_vm9, %v1707_v32, %v4799_v37  ;;  %v1741_v44 = vsel %vm1731_vm9, %v1708_v0, %v4800_v56  ;;  %v4805_v43 = vunpack.i.h.bf16 %v4803_v60 }
 0x148   : > { %v4808_v61 = vpop.permute.xlu0 %4807  ;;  %v4470_v56 = vunpack.i.h.bf16 %v8938_v26  ;;  %v4469_v37 = vunpack.i.l.bf16 %v8938_v26  ;;  %v4630_v0 = vunpack.i.h.bf16 %v6846_v14 }
 0x149   : > { %v4810_v41 = vunpack.i.h.bf16 %v4808_v61  ;;  %v4809_v58 = vunpack.i.l.bf16 %v4808_v61  ;;  %v1742_v16 = vsel %vm1731_vm9, %v1709_v15, %v4804_v27  ;;  %v1743_v52 = vsel %vm1731_vm9, %v1710_v57, %v4805_v43  ;;  %v8939_v61 = vld [vmem:[#allocation40_spill] sm:$0xff]  ;;  %v8942_v27 = vld [vmem:[#allocation37_spill] sm:$0xff]  ;;  %v8945_v15 = vld [vmem:[#allocation14_spill] sm:$0xff] }
 0x14a   : > { %v4813_v17 = vpop.permute.xlu1 %4812  ;;  %v4475_v6 = vunpack.i.h.bf16 %v8939_v61  ;;  %v4474_v50 = vunpack.i.l.bf16 %v8939_v61 }
 0x14b   : > { %v4815_v9 = vunpack.i.h.bf16 %v4813_v17  ;;  %v4814_v34 = vunpack.i.l.bf16 %v4813_v17  ;;  %v1773_v33 = vsel %vm1764_vm10, %v1740_v18, %v4809_v58  ;;  %v1774_v35 = vsel %vm1764_vm10, %v1741_v44, %v4810_v41  ;;  %v8941_v41 = vld [vmem:[#allocation18_spill] sm:$0xff]  ;;  %v8944_v44 = vld [vmem:[#allocation15_spill] sm:$0xff] }
 0x14c   : > { %v4818_v10 = vpop.permute.xlu0 %4817  ;;  %v4555_v58 = vunpack.i.h.bf16 %v8941_v41  ;;  %v4554_v32 = vunpack.i.l.bf16 %v8941_v41  ;;  %v1580_v17 = vsel %vm224_vm0, %v8942_v27, %v4470_v56  ;;  %v1579_v18 = vsel %vm224_vm0, %v8943_v12, %v4469_v37 }
 0x14d   : > { %v4820_v21 = vunpack.i.h.bf16 %v4818_v10  ;;  %v4819_v4 = vunpack.i.l.bf16 %v4818_v10  ;;  %v1775_v45 = vsel %vm1764_vm10, %v1742_v16, %v4814_v34  ;;  %v1776_v47 = vsel %vm1764_vm10, %v1743_v52, %v4815_v9 }
 0x14e   : > { %v4823_v19 = vpop.permute.xlu1 %4822  ;;  %v1582_v43 = vsel %vm224_vm0, %v8944_v44, %v4475_v6  ;;  %v4629_v10 = vunpack.i.l.bf16 %v6846_v14  ;;  %v4635_v34 = vunpack.i.h.bf16 %v6872_v36  ;;  %v1613_v57 = vsel %vm1599_vm5, %v1580_v17, %v4550_v39 }
 0x14f   : > { %v1805_v63 = vsel %vm297_vm3, %v1773_v33, %v4819_v4  ;;  %v1806_v1 = vsel %vm297_vm3, %v1774_v35, %v4820_v21  ;;  %v4825_v40 = vunpack.i.h.bf16 %v4823_v19  ;;  %v4824_v11 = vunpack.i.l.bf16 %v4823_v19 }
 0x150   : > { %v4828_v59 = vpop.permute.xlu0 %4827  ;;  %v1833_v8 = vpack.c.bf16 %v1806_v1, %v1805_v63  ;;  %v4634_v21 = vunpack.i.l.bf16 %v6872_v36  ;;  %v1581_v33 = vsel %vm224_vm0, %v8945_v15, %v4474_v50  ;;  %v1612_v35 = vsel %vm1599_vm5, %v1579_v18, %v4549_v25 }
 0x151   : > { %v1807_v31 = vsel %vm297_vm3, %v1775_v45, %v4824_v11  ;;  %v1808_v48 = vsel %vm297_vm3, %v1776_v47, %v4825_v40  ;;  %v4830_v4 = vunpack.i.h.bf16 %v4828_v59  ;;  %v4829_v46 = vunpack.i.l.bf16 %v4828_v59 }
 0x152   : > { %4308 = vmatprep.mubr.msk.bf16.mxu0 %vm1866_vm11, %v1833_v8  ;;  %v4833_v60 = vpop.permute.xlu1 %4832  ;;  %v1834_v51 = vpack.c.bf16 %v1808_v48, %v1807_v31  ;;  %v1615_v16 = vsel %vm1599_vm5, %v1582_v43, %v4555_v58  ;;  %v1614_v63 = vsel %vm1599_vm5, %v1581_v33, %v4554_v32  ;;  %v1646_v14 = vsel %vm1632_vm6, %v1613_v57, %v4630_v0 }
 0x153   : > { %v1645_v36 = vsel %vm1632_vm6, %v1612_v35, %v4629_v10  ;;  %v4834_v40 = vunpack.i.l.bf16 %v4833_v60  ;;  %v1647_v45 = vsel %vm1632_vm6, %v1614_v63, %v4634_v21  ;;  %v1648_v47 = vsel %vm1632_vm6, %v1615_v16, %v4635_v34 }
 0x154   : > { %v4838_v28 = vpop.permute.xlu0 %4837  ;;  %4309 = vmatmul.mubr.msk.bf16.gmra.mrb[8].mxu0 %vm1866_vm11, %v1834_v51  ;;  %v1678_v31 = vsel %vm1665_vm7, %v1645_v36, %v4829_v46  ;;  %v1679_v48 = vsel %vm1665_vm7, %v1646_v14, %v4830_v4  ;;  %v4835_v51 = vunpack.i.h.bf16 %v4833_v60 }
 0x155   : > { %v4840_v1 = vunpack.i.h.bf16 %v4838_v28  ;;  %v4839_v19 = vunpack.i.l.bf16 %v4838_v28  ;;  %v1680_v39 = vsel %vm1665_vm7, %v1647_v45, %v4834_v40 }
 0x156   : > { %v4843_v29 = vpop.permute.xlu1 %4842  ;;  %v1681_v12 = vsel %vm1665_vm7, %v1648_v47, %v4835_v51 }
 0x157   : > { %v4844_v26 = vunpack.i.l.bf16 %v4843_v29  ;;  %v1711_v61 = vsel %vm1698_vm8, %v1678_v31, %v4839_v19  ;;  %v1712_v6 = vsel %vm1698_vm8, %v1679_v48, %v4840_v1  ;;  %v4845_v28 = vunpack.i.h.bf16 %v4843_v29 }
 0x158   : > { %v4848_v9 = vpop.permute.xlu0 %4847 }
 0x159   : > { %v4850_v11 = vunpack.i.h.bf16 %v4848_v9  ;;  %v4849_v59 = vunpack.i.l.bf16 %v4848_v9  ;;  %v1713_v18 = vsel %vm1698_vm8, %v1680_v39, %v4844_v26  ;;  %v1714_v43 = vsel %vm1698_vm8, %v1681_v12, %v4845_v28 }
 0x15a   : > { %v4853_v52 = vpop.permute.xlu1 %4852 }
 0x15b   : > { %v4854_v50 = vunpack.i.l.bf16 %v4853_v52  ;;  %v1744_v25 = vsel %vm1731_vm9, %v1711_v61, %v4849_v59  ;;  %v1745_v41 = vsel %vm1731_vm9, %v1712_v6, %v4850_v11  ;;  %v4855_v58 = vunpack.i.h.bf16 %v4853_v52 }
 0x15c   : > { %v4858_v8 = vpop.permute.xlu0 %4857 }
 0x15d   : > { %v4860_v56 = vunpack.i.h.bf16 %v4858_v8  ;;  %v4859_v37 = vunpack.i.l.bf16 %v4858_v8  ;;  %v1746_v10 = vsel %vm1731_vm9, %v1713_v18, %v4854_v50  ;;  %v1747_v4 = vsel %vm1731_vm9, %v1714_v43, %v4855_v58 }
 0x15e   : > { %v4863_v3 = vpop.permute.xlu1 %4862 }
 0x15f   : > { %v4865_v0 = vunpack.i.h.bf16 %v4863_v3  ;;  %v4864_v60 = vunpack.i.l.bf16 %v4863_v3  ;;  %v1777_v29 = vsel %vm1764_vm10, %v1744_v25, %v4859_v37  ;;  %v1778_v44 = vsel %vm1764_vm10, %v1745_v41, %v4860_v56 }
 0x160   : > { %v4868_v32 = vpop.permute.xlu0 %4867 }
 0x161   : > { %v4870_v27 = vunpack.i.h.bf16 %v4868_v32  ;;  %v4869_v17 = vunpack.i.l.bf16 %v4868_v32  ;;  %v1779_v57 = vsel %vm1764_vm10, %v1746_v10, %v4864_v60  ;;  %v1780_v16 = vsel %vm1764_vm10, %v1747_v4, %v4865_v0 }
 0x162   : > { %v4873_v21 = vpop.permute.xlu1 %4872 }
 0x163   : > { %v1809_v9 = vsel %vm297_vm3, %v1777_v29, %v4869_v17  ;;  %v1810_v34 = vsel %vm297_vm3, %v1778_v44, %v4870_v27  ;;  %v4875_v46 = vunpack.i.h.bf16 %v4873_v21  ;;  %v4874_v15 = vunpack.i.l.bf16 %v4873_v21 }
 0x164   : > { %v4878_v33 = vpop.permute.xlu0 %4877  ;;  %v1835_v35 = vpack.c.bf16 %v1810_v34, %v1809_v9 }
 0x165   : > { %v1811_v63 = vsel %vm297_vm3, %v1779_v57, %v4874_v15  ;;  %v1812_v14 = vsel %vm297_vm3, %v1780_v16, %v4875_v46  ;;  %v4880_v11 = vunpack.i.h.bf16 %v4878_v33  ;;  %v4879_v59 = vunpack.i.l.bf16 %v4878_v33 }
 0x166   : > { %4312 = vmatprep.mubr.msk.bf16.mxu0 %vm1866_vm11, %v1835_v35  ;;  %v4883_v1 = vpop.permute.xlu1 %4882  ;;  %v1836_v19 = vpack.c.bf16 %v1812_v14, %v1811_v63 }
 0x167   : > { %v4884_v31 = vunpack.i.l.bf16 %v4883_v1  ;;  %v1682_v56 = vsel %vm1665_vm7, %v6902_v38, %v4879_v59  ;;  %v1683_v37 = vsel %vm1665_vm7, %v6899_v24, %v4880_v11  ;;  %v4885_v61 = vunpack.i.h.bf16 %v4883_v1 }
 0x168   : > { %v4888_v52 = vpop.permute.xlu0 %4887  ;;  %4313 = vmatmul.mubr.msk.bf16.gmra.mrb[12].mxu0 %vm1866_vm11, %v1836_v19 }
 0x169   : > { %v4890_v8 = vunpack.i.h.bf16 %v4888_v52  ;;  %v4889_v45 = vunpack.i.l.bf16 %v4888_v52  ;;  %v1684_v32 = vsel %vm1665_vm7, %v6913_v49, %v4884_v31  ;;  %v1685_v29 = vsel %vm1665_vm7, %v6916_v5, %v4885_v61 }
 0x16a   : > { %v4893_v36 = vpop.permute.xlu1 %4892 }
 0x16b   : > { %v4894_v6 = vunpack.i.l.bf16 %v4893_v36  ;;  %v1715_v3 = vsel %vm1698_vm8, %v1682_v56, %v4889_v45  ;;  %v1716_v39 = vsel %vm1698_vm8, %v1683_v37, %v4890_v8  ;;  %v4895_v25 = vunpack.i.h.bf16 %v4893_v36 }
 0x16c   : > { %v4898_v40 = vpop.permute.xlu0 %4897 }
 0x16d   : > { %v4900_v48 = vunpack.i.h.bf16 %v4898_v40  ;;  %v4899_v51 = vunpack.i.l.bf16 %v4898_v40  ;;  %v1717_v44 = vsel %vm1698_vm8, %v1684_v32, %v4894_v6  ;;  %v1718_v49 = vsel %vm1698_vm8, %v1685_v29, %v4895_v25  ;;  %v7337_v29 = vld [vmem:[#allocation3 + $0x10] sm:$0xff] }
 0x16e   : > { %v4903_v47 = vpop.permute.xlu1 %4902 }
 0x16f   : > { %v4904_v41 = vunpack.i.l.bf16 %v4903_v47  ;;  %v1748_v0 = vsel %vm1731_vm9, %v1715_v3, %v4899_v51  ;;  %v1749_v38 = vsel %vm1731_vm9, %v1716_v39, %v4900_v48  ;;  %v4905_v60 = vunpack.i.h.bf16 %v4903_v47 }
 0x170   : > { %v4908_v26 = vpop.permute.xlu0 %4907 }
 0x171   : > { %v4910_v28 = vunpack.i.h.bf16 %v4908_v26  ;;  %v4909_v50 = vunpack.i.l.bf16 %v4908_v26  ;;  %v1750_v9 = vsel %vm1731_vm9, %v1717_v44, %v4904_v41  ;;  %v1751_v46 = vsel %vm1731_vm9, %v1718_v49, %v4905_v60 }
 0x172   : > { %v4913_v58 = vpop.permute.xlu1 %4912  ;;  %v2463_v49 = vrot.slane %v7337_v29, 1 }
 0x173   : > { %v4915_v27 = vunpack.i.h.bf16 %v4913_v58  ;;  %v4914_v17 = vunpack.i.l.bf16 %v4913_v58  ;;  %v1781_v43 = vsel %vm1764_vm10, %v1748_v0, %v4909_v50  ;;  %v1782_v10 = vsel %vm1764_vm10, %v1749_v38, %v4910_v28 }
 0x174   : > { %v4918_v24 = vpop.permute.xlu0 %4917 }
 0x175   : > { %v4920_v12 = vunpack.i.h.bf16 %v4918_v24  ;;  %v4919_v18 = vunpack.i.l.bf16 %v4918_v24  ;;  %v1783_v57 = vsel %vm1764_vm10, %v1750_v9, %v4914_v17  ;;  %v1784_v16 = vsel %vm1764_vm10, %v1751_v46, %v4915_v27  ;;  %v2180_v9 = vld [vmem:[#allocation3 + $0x18] sm:$0xff] }
 0x176   : > { %v4923_v4 = vpop.permute.xlu1 %4922 }
 0x177   : > { %v1813_v34 = vsel %vm297_vm3, %v1781_v43, %v4919_v18  ;;  %v1814_v21 = vsel %vm297_vm3, %v1782_v10, %v4920_v12  ;;  %v4925_v15 = vunpack.i.h.bf16 %v4923_v4  ;;  %v4924_v33 = vunpack.i.l.bf16 %v4923_v4 }
 0x178   : > { %v4928_v5 = vpop.permute.xlu0 %4927  ;;  %v1837_v35 = vpack.c.bf16 %v1814_v21, %v1813_v34 }
 0x179   : > { %v1815_v63 = vsel %vm297_vm3, %v1783_v57, %v4924_v33  ;;  %v1816_v14 = vsel %vm297_vm3, %v1784_v16, %v4925_v15  ;;  %v4930_v11 = vunpack.i.h.bf16 %v4928_v5  ;;  %v4929_v59 = vunpack.i.l.bf16 %v4928_v5 }
 0x17a   : > { %4316 = vmatprep.mubr.msk.bf16.mxu0 %vm1866_vm11, %v1837_v35  ;;  %v4933_v1 = vpop.permute.xlu1 %4932  ;;  %v1838_v19 = vpack.c.bf16 %v1816_v14, %v1815_v63 }
 0x17b   : > { %v4934_v8 = vunpack.i.l.bf16 %v4933_v1  ;;  %v4935_v45 = vunpack.i.h.bf16 %v4933_v1  ;;  %v1686_v6 = vsel %vm1665_vm7, %v6926_v62, %v4929_v59  ;;  %v1687_v28 = vsel %vm1665_vm7, %v6923_v55, %v4930_v11 }
 0x17c   : > { %v4938_v52 = vpop.permute.xlu0 %4937  ;;  %4317 = vmatmul.mubr.msk.bf16.gmra.mrb[16].mxu0 %vm1866_vm11, %v1838_v19  ;;  %v2465_v1 = vrot.slane %v2180_v9, 1 }
 0x17d   : > { %v4940_v47 = vunpack.i.h.bf16 %v4938_v52  ;;  %v4939_v31 = vunpack.i.l.bf16 %v4938_v52  ;;  %v1688_v50 = vsel %vm1665_vm7, %v6937_v54, %v4934_v8  ;;  %v1689_v41 = vsel %vm1665_vm7, %v6940_v7, %v4935_v45  ;;  %v7335_v7 = vld [vmem:[#allocation3 + $0x8] sm:$0xff] }
 0x17e   : > { %v4943_v36 = vpop.permute.xlu1 %4942  ;;  %v5076_v15 = vpack.i.bf16 %v7337_v29, %v7335_v7  ;;  %v2462_v16 = vrot.slane %v7335_v7, 1  ;;  %v2466_v59 = vsel %vm690_vm2, %v2463_v49, %v2465_v1 }
 0x17f   : > { %v4945_v51 = vunpack.i.h.bf16 %v4943_v36  ;;  %v4944_v26 = vunpack.i.l.bf16 %v4943_v36  ;;  %v1719_v58 = vsel %vm1698_vm8, %v1686_v6, %v4939_v31  ;;  %v1720_v32 = vsel %vm1698_vm8, %v1687_v28, %v4940_v47 }
 0x180   : > { %v4948_v40 = vpop.permute.xlu0 %4947  ;;  %5077 = vrot.lane.b32.xlu1 %v5076_v15, %s5688_s7  ;;  %v2464_v36 = vsel %vm690_vm2, %v2462_v16, %v2463_v49 }
 0x181   : > { %v4950_v56 = vunpack.i.h.bf16 %v4948_v40  ;;  %v4949_v37 = vunpack.i.l.bf16 %v4948_v40  ;;  %v1721_v62 = vsel %vm1698_vm8, %v1688_v50, %v4944_v26  ;;  %v1722_v60 = vsel %vm1698_vm8, %v1689_v41, %v4945_v51 }
 0x182   : > { %v4953_v48 = vpop.permute.xlu1 %4952  ;;  %v5081_v45 = vpack.i.bf16 %v2466_v59, %v2464_v36 }
 0x183   : > { %v4954_v3 = vunpack.i.l.bf16 %v4953_v48  ;;  %v4955_v0 = vunpack.i.h.bf16 %v4953_v48  ;;  %v1752_v55 = vsel %vm1731_vm9, %v1719_v58, %v4949_v37  ;;  %v1753_v54 = vsel %vm1731_vm9, %v1720_v32, %v4950_v56 }
 0x184   : > { %v4958_v61 = vpop.permute.xlu0 %4957  ;;  %5082 = vrot.lane.b32.xlu1 %v5081_v45, %s5689_s8 }
 0x185   : > { %v4960_v39 = vunpack.i.h.bf16 %v4958_v61  ;;  %v4959_v25 = vunpack.i.l.bf16 %v4958_v61  ;;  %v1754_v44 = vsel %vm1731_vm9, %v1721_v62, %v4954_v3  ;;  %v1755_v34 = vsel %vm1731_vm9, %v1722_v60, %v4955_v0 }
 0x186   : > { %v4963_v38 = vpop.permute.xlu1 %4962 }
 0x187   : > { %v4965_v27 = vunpack.i.h.bf16 %v4963_v38  ;;  %v4964_v17 = vunpack.i.l.bf16 %v4963_v38  ;;  %v1785_v43 = vsel %vm1764_vm10, %v1752_v55, %v4959_v25  ;;  %v1786_v10 = vsel %vm1764_vm10, %v1753_v54, %v4960_v39 }
 0x188   : > { %v4968_v24 = vpop.permute.xlu0 %4967 }
 0x189   : > { %v4970_v12 = vunpack.i.h.bf16 %v4968_v24  ;;  %v4969_v18 = vunpack.i.l.bf16 %v4968_v24  ;;  %v1787_v63 = vsel %vm1764_vm10, %v1754_v44, %v4964_v17  ;;  %v1788_v14 = vsel %vm1764_vm10, %v1755_v34, %v4965_v27 }
 0x18a   : > { %v4973_v46 = vpop.permute.xlu1 %4972 }
 0x18b   : > { %v1817_v21 = vsel %vm297_vm3, %v1785_v43, %v4969_v18  ;;  %v1818_v4 = vsel %vm297_vm3, %v1786_v10, %v4970_v12  ;;  %v4975_v33 = vunpack.i.h.bf16 %v4973_v46  ;;  %v4974_v5 = vunpack.i.l.bf16 %v4973_v46 }
 0x18c   : > { %v4978_v35 = vpop.permute.xlu0 %4977  ;;  %v1839_v57 = vpack.c.bf16 %v1818_v4, %v1817_v21 }
 0x18d   : > { %v1819_v19 = vsel %vm297_vm3, %v1787_v63, %v4974_v5  ;;  %v1820_v52 = vsel %vm297_vm3, %v1788_v14, %v4975_v33  ;;  %v4980_v48 = vunpack.i.h.bf16 %v4978_v35  ;;  %v4979_v51 = vunpack.i.l.bf16 %v4978_v35 }
 0x18e   : > { %4320 = vmatprep.mubr.msk.bf16.mxu0 %vm1866_vm11, %v1839_v57  ;;  %v4983_v40 = vpop.permute.xlu1 %4982  ;;  %v1840_v11 = vpack.c.bf16 %v1820_v52, %v1819_v19 }
 0x18f   : > { %v4984_v61 = vunpack.i.l.bf16 %v4983_v40  ;;  %v1690_v3 = vsel %vm1665_vm7, %v6950_v2, %v4979_v51  ;;  %v1691_v39 = vsel %vm1665_vm7, %v6947_v42, %v4980_v48  ;;  %v4985_v25 = vunpack.i.h.bf16 %v4983_v40 }
 0x190   : > { %v4988_v8 = vpop.permute.xlu0 %4987  ;;  %4321 = vmatmul.mubr.msk.bf16.gmra.mrb[20].mxu0 %vm1866_vm11, %v1840_v11 }
 0x191   : > { %v4990_v26 = vunpack.i.h.bf16 %v4988_v8  ;;  %v4989_v56 = vunpack.i.l.bf16 %v4988_v8  ;;  %v1692_v54 = vsel %vm1665_vm7, %v6963_v20, %v4984_v61  ;;  %v1693_v43 = vsel %vm1665_vm7, %v6966_v53, %v4985_v25 }
 0x192   : > { %v4993_v47 = vpop.permute.xlu1 %4992 }
 0x193   : > { %v4994_v41 = vunpack.i.l.bf16 %v4993_v47  ;;  %v1723_v0 = vsel %vm1698_vm8, %v1690_v3, %v4989_v56  ;;  %v1724_v38 = vsel %vm1698_vm8, %v1691_v39, %v4990_v26  ;;  %v4995_v62 = vunpack.i.h.bf16 %v4993_v47 }
 0x194   : > { %v4998_v31 = vpop.permute.xlu0 %4997 }
 0x195   : > { %v5000_v6 = vunpack.i.h.bf16 %v4998_v31  ;;  %v4999_v28 = vunpack.i.l.bf16 %v4998_v31  ;;  %v1725_v10 = vsel %vm1698_vm8, %v1692_v54, %v4994_v41  ;;  %v1726_v20 = vsel %vm1698_vm8, %v1693_v43, %v4995_v62 }
 0x196   : > { %v5003_v37 = vpop.permute.xlu1 %5002 }
 0x197   : > { %v5004_v60 = vunpack.i.l.bf16 %v5003_v37  ;;  %v1756_v24 = vsel %vm1731_vm9, %v1723_v0, %v4999_v28  ;;  %v1757_v2 = vsel %vm1731_vm9, %v1724_v38, %v5000_v6  ;;  %v5005_v27 = vunpack.i.h.bf16 %v5003_v37 }
 0x198   : > { %v5008_v50 = vpop.permute.xlu0 %5007 }
 0x199   : > { %v5010_v58 = vunpack.i.h.bf16 %v5008_v50  ;;  %v5009_v32 = vunpack.i.l.bf16 %v5008_v50  ;;  %v1758_v34 = vsel %vm1731_vm9, %v1725_v10, %v5004_v60  ;;  %v1759_v15 = vsel %vm1731_vm9, %v1726_v20, %v5005_v27 }
 0x19a   : > { %v5013_v55 = vpop.permute.xlu1 %5012 }
 0x19b   : > { %v5015_v17 = vunpack.i.h.bf16 %v5013_v55  ;;  %v5014_v12 = vunpack.i.l.bf16 %v5013_v55  ;;  %v1789_v49 = vsel %vm1764_vm10, %v1756_v24, %v5009_v32  ;;  %v1790_v9 = vsel %vm1764_vm10, %v1757_v2, %v5010_v58 }
 0x19c   : > { %v5018_v42 = vpop.permute.xlu0 %5017 }
 0x19d   : > { %v5020_v18 = vunpack.i.h.bf16 %v5018_v42  ;;  %v5019_v44 = vunpack.i.l.bf16 %v5018_v42  ;;  %v1791_v57 = vsel %vm1764_vm10, %v1758_v34, %v5014_v12  ;;  %v1792_v16 = vsel %vm1764_vm10, %v1759_v15, %v5015_v17 }
 0x19e   : > { %v5023_v46 = vpop.permute.xlu1 %5022  ;;  %v2337_v15 = vrot.slane %v7337_v29, 7 }
 0x19f   : > { %v1821_v21 = vsel %vm297_vm3, %v1789_v49, %v5019_v44  ;;  %v1822_v4 = vsel %vm297_vm3, %v1790_v9, %v5020_v18  ;;  %v5025_v33 = vunpack.i.h.bf16 %v5023_v46  ;;  %v5024_v5 = vunpack.i.l.bf16 %v5023_v46  ;;  %v7414_v46 = vld [vmem:[%s8742_s2] ss:$0 sm:$0xff] }
 0x1a0   : > { %v5028_v53 = vpop.permute.xlu0 %5027  ;;  %v1841_v35 = vpack.c.bf16 %v1822_v4, %v1821_v21 }
 0x1a1   : > { %v1823_v63 = vsel %vm297_vm3, %v1791_v57, %v5024_v5  ;;  %v1824_v14 = vsel %vm297_vm3, %v1792_v16, %v5025_v33  ;;  %v5030_v11 = vunpack.i.h.bf16 %v5028_v53  ;;  %v5029_v59 = vunpack.i.l.bf16 %v5028_v53  ;;  %v5559_v53 = vld [vmem:[%s8743_s3 + $0x40] sm:$0xff]  }
 0x1a2   : > { %4324 = vmatprep.mubr.msk.bf16.mxu0 %vm1866_vm11, %v1841_v35  ;;  %v5033_v1 = vpop.permute.xlu1 %5032  ;;  %v1842_v19 = vpack.c.bf16 %v1824_v14, %v1823_v63  ;;  %v8813_v33 = vrot.slane %v7335_v7, 7  ;;  %v5560_v16 = vld [vmem:[%s8743_s3] sm:$0xff]   ;;  %4164 = vmatprep.subr.bf16.mxu0 %v5559_v53 }
 0x1a3   : > { %v5034_v31 = vunpack.i.l.bf16 %v5033_v1  ;;  %v1694_v56 = vsel %vm1665_vm7, %v6974_v23, %v5029_v59  ;;  %v1695_v37 = vsel %vm1665_vm7, %v6971_v13, %v5030_v11  ;;  %v5035_v61 = vunpack.i.h.bf16 %v5033_v1  ;;  %v5561_v1 = vld [vmem:[%s8743_s3 + $0x48] sm:$0xff]   ;;  %4368 = vmatprep.subr.bf16.mxu1 %v5559_v53  ;;  %4165 = vmatpush3.bf16.msra.mxu0 %v5560_v16 }
 0x1a4   : > { %v5038_v52 = vpop.permute.xlu0 %5037  ;;  %4325 = vmatmul.mubr.msk.bf16.gmra.mrb[24].mxu0 %vm1866_vm11, %v1842_v19  ;;  %v7429_v29 = vsel %vm561_vm1, %v8813_v33, %v2337_v15  ;;  %4376 = vmatpush3.bf16.msra.mxu1 %v5560_v16 }
 0x1a5   : > { %v5040_v8 = vunpack.i.h.bf16 %v5038_v52  ;;  %v5039_v45 = vunpack.i.l.bf16 %v5038_v52  ;;  %v1696_v32 = vsel %vm1665_vm7, %v6993_v22, %v5034_v31  ;;  %v1697_v24 = vsel %vm1665_vm7, %v6996_v30, %v5035_v61  ;;  %4166 = vmatprep.subr.bf16.mxu0 %v5561_v1  ;;  %4369 = vmatprep.subr.bf16.mxu1 %v5561_v1  ;;  %v5565_v61 = vld [vmem:[%s8743_s3 + $0x58] sm:$0xff]  }
 0x1a6   : > { %v5043_v36 = vpop.permute.xlu1 %5042 }
 0x1a7   : > { %v5044_v6 = vunpack.i.l.bf16 %v5043_v36  ;;  %v1727_v3 = vsel %vm1698_vm8, %v1694_v56, %v5039_v45  ;;  %v1728_v39 = vsel %vm1698_vm8, %v1695_v37, %v5040_v8  ;;  %v5045_v25 = vunpack.i.h.bf16 %v5043_v36  ;;  %v5564_v56 = vld [vmem:[%s8743_s3 + $0x10] sm:$0xff]   ;;  %v2188_v37 = vld [vmem:[#allocation3 + $0x58] sm:$0xff] }
 0x1a8   : > { %v5048_v40 = vpop.permute.xlu0 %5047 }
 0x1a9   : > { %v5050_v48 = vunpack.i.h.bf16 %v5048_v40  ;;  %v5049_v51 = vunpack.i.l.bf16 %v5048_v40  ;;  %v1729_v2 = vsel %vm1698_vm8, %v1696_v32, %v5044_v6  ;;  %v1730_v22 = vsel %vm1698_vm8, %v1697_v24, %v5045_v25  ;;  %v5562_v40 = vld [vmem:[%s8743_s3 + $0x8] sm:$0xff]   ;;  %v5566_v6 = vld [vmem:[%s8743_s3 + $0x18] sm:$0xff]   ;;  %v2185_v32 = vld [vmem:[#allocation3 + $0x40] sm:$0xff] }
 0x1aa   : > { %v5053_v47 = vpop.permute.xlu1 %5052  ;;  %4167 = vmatpush3.bf16.msra.mxu0 %v5562_v40  ;;  %4377 = vmatpush3.bf16.msra.mxu1 %v5562_v40 }
 0x1ab   : > { %v5054_v41 = vunpack.i.l.bf16 %v5053_v47  ;;  %v1760_v0 = vsel %vm1731_vm9, %v1727_v3, %v5049_v51  ;;  %v1761_v23 = vsel %vm1731_vm9, %v1728_v39, %v5050_v48  ;;  %v5055_v38 = vunpack.i.h.bf16 %v5053_v47  ;;  %v5567_v39 = vld [vmem:[%s8743_s3 + $0x60] sm:$0xff]  }
 0x1ac   : > { %v5058_v26 = vpop.permute.xlu0 %5057 }
 0x1ad   : > { %v5060_v28 = vunpack.i.h.bf16 %v5058_v26  ;;  %v5059_v50 = vunpack.i.l.bf16 %v5058_v26  ;;  %v1762_v17 = vsel %vm1731_vm9, %v1729_v2, %v5054_v41  ;;  %v1763_v43 = vsel %vm1731_vm9, %v1730_v22, %v5055_v38  ;;  %v5563_v26 = vld [vmem:[%s8743_s3 + $0x50] sm:$0xff]  }
 0x1ae   : > { %v5063_v58 = vpop.permute.xlu1 %5062  ;;  %4168 = vmatprep.subr.bf16.mxu0 %v5563_v26  ;;  %4370 = vmatprep.subr.bf16.mxu1 %v5563_v26  ;;  %v2344_v2 = vrot.slane %v2185_v32, 7  ;;  %v7528_v26 = vld [vmem:[%s8743_s3 + $0x80] sm:$0xff]  }
 0x1af   : > { %v5065_v62 = vunpack.i.h.bf16 %v5063_v58  ;;  %v5064_v60 = vunpack.i.l.bf16 %v5063_v58  ;;  %v1793_v27 = vsel %vm1764_vm10, %v1760_v0, %v5059_v50  ;;  %v1794_v42 = vsel %vm1764_vm10, %v1761_v23, %v5060_v28  ;;  %4169 = vmatpush3.bf16.msra.mxu0 %v5564_v56  ;;  %4378 = vmatpush3.bf16.msra.mxu1 %v5564_v56  ;;  %v5568_v0 = vld [vmem:[%s8743_s3 + $0x20] sm:$0xff]  }
 0x1b0   : > { %v5068_v13 = vpop.permute.xlu0 %5067  ;;  %4170 = vmatprep.subr.bf16.mxu0 %v5565_v61  ;;  %4371 = vmatprep.subr.bf16.mxu1 %v5565_v61  ;;  %v2475_v50 = vrot.slane %v2188_v37, 1  ;;  %v2196_v37 = vld [vmem:[#allocation3 + $0x98] sm:$0xff] }
 0x1b1   : > { %v5070_v55 = vunpack.i.h.bf16 %v5068_v13  ;;  %v5069_v54 = vunpack.i.l.bf16 %v5068_v13  ;;  %v1795_v9 = vsel %vm1764_vm10, %v1762_v17, %v5064_v60  ;;  %v1796_v20 = vsel %vm1764_vm10, %v1763_v43, %v5065_v62  ;;  %v2184_v60 = vld [vmem:[#allocation3 + $0x38] sm:$0xff] }
 0x1b2   : > { %v5073_v44 = vpop.permute.xlu1 %5072  ;;  %v2192_v61 = vld [vmem:[#allocation3 + $0x78] sm:$0xff] }
 0x1b3   : > { %v1825_v12 = vsel %vm297_vm3, %v1793_v27, %v5069_v54  ;;  %v1826_v18 = vsel %vm297_vm3, %v1794_v42, %v5070_v55  ;;  %v5075_v49 = vunpack.i.h.bf16 %v5073_v44  ;;  %v5074_v30 = vunpack.i.l.bf16 %v5073_v44  ;;  %4171 = vmatpush3.bf16.msra.mxu0 %v5566_v6  ;;  %4379 = vmatpush3.bf16.msra.mxu1 %v5566_v6  ;;  %v5569_v42 = vld [vmem:[%s8743_s3 + $0x68] sm:$0xff]  }
 0x1b4   : > { %v1843_v10 = vpack.c.bf16 %v1826_v18, %v1825_v12  ;;  %4172 = vmatprep.subr.bf16.mxu0 %v5567_v39  ;;  %4372 = vmatprep.subr.bf16.mxu1 %v5567_v39  ;;  %v5570_v18 = vld [vmem:[%s8743_s3 + $0x28] sm:$0xff]  }
 0x1b5   : > { %v1827_v34 = vsel %vm297_vm3, %v1795_v9, %v5074_v30  ;;  %v1828_v21 = vsel %vm297_vm3, %v1796_v20, %v5075_v49  ;;  %v2470_v30 = vrot.slane %v2184_v60, 1  ;;  %v2480_v60 = vrot.slane %v2192_v61, 1 }
 0x1b6   : > { %4328 = vmatprep.mubr.msk.bf16.mxu0 %vm1866_vm11, %v1843_v10  ;;  %v1844_v4 = vpack.c.bf16 %v1828_v21, %v1827_v34 }
 0x1b7   : > { %4173 = vmatpush3.bf16.msra.mxu0 %v5568_v0  ;;  %4380 = vmatpush3.bf16.msra.mxu1 %v5568_v0 }
 0x1b8   : > { %4329 = vmatmul.mubr.msk.bf16.gmra.mrb[28].mxu0 %vm1866_vm11, %v1844_v4  ;;  %4174 = vmatprep.subr.bf16.mxu0 %v5569_v42 }
 0x1b9   : > { %4373 = vmatprep.subr.bf16.mxu1 %v5569_v42 }
 0x1bb   : > { %4175 = vmatpush3.bf16.msra.mxu0 %v5570_v18  ;;  %4381 = vmatpush3.bf16.msra.mxu1 %v5570_v18 }
 0x1ff   : > { %v4302_v5 = vpop.f32.mrb[0].mxu0 }
 0x200   : > { %v1962_v35 = vadd.f32 %v4302_v5, %v7414_v46  ;;  %v1953_v57 = vpop.f32.mrb[1].mxu0 }
 0x201   : > { %v1954_v63 = vadd.f32 %v7414_v46, %v1953_v57  ;;  %v4303_v14 = vpop.f32.mrb[2].mxu0 }
 0x202   : > { %v2082_v19 = vmul.f32 0.01, %v1962_v35  ;;  %v1965_v52 = vadd.f32 %v4303_v14, %v7414_v46  ;;  %v1956_v36 = vpop.f32.mrb[3].mxu0  ;;  %v5572_v14 = vld [vmem:[%s8743_s3 + $0x30] sm:$0xff]  }
 0x203   : > { %v2080_v11 = vmul.f32 0.01, %v1954_v63  ;;  %v1957_v59 = vadd.f32 %v7414_v46, %v1956_v36 }
 0x204   : > { %v2114_v8 = vmax.f32 %v1962_v35, %v2082_v19  ;;  %v2083_v45 = vmul.f32 0.01, %v1965_v52  ;;  %v5571_v35 = vld [vmem:[%s8743_s3 + $0x70] sm:$0xff]  }
 0x205   : > { %v2112_v47 = vmax.f32 %v1954_v63, %v2080_v11  ;;  %v2081_v31 = vmul.f32 0.01, %v1957_v59  ;;  %4176 = vmatprep.subr.bf16.mxu0 %v5571_v35  ;;  %4374 = vmatprep.subr.bf16.mxu1 %v5571_v35 }
 0x206   : > { %2147 = vst.msk [vmem:[#allocation3 + $0x48] sm:$0xff] %vm297_vm3, %v2114_v8  ;;  %v2115_v48 = vmax.f32 %v1965_v52, %v2083_v45  ;;  %4177 = vmatpush3.bf16.msra.mxu0 %v5572_v14  ;;  %v2181_v45 = vld [vmem:[#allocation3 + $0x20] sm:$0xff]  ;;  %4382 = vmatpush3.bf16.msra.mxu1 %v5572_v14 }
 0x207   : > { %2145 = vst.msk [vmem:[#allocation3 + $0x28] sm:$0xff] %vm297_vm3, %v2112_v47  ;;  %v2113_v51 = vmax.f32 %v1957_v59, %v2081_v31  ;;  %v5573_v59 = vld [vmem:[%s8743_s3 + $0x78] sm:$0xff]  }
 0x208   : > { %2148 = vst.msk [vmem:[#allocation3 + $0x50] sm:$0xff] %vm297_vm3, %v2115_v48  ;;  %v5574_v47 = vld [vmem:[%s8743_s3 + $0x38] sm:$0xff]   ;;  %4178 = vmatprep.subr.bf16.mxu0 %v5573_v59  ;;  %4375 = vmatprep.subr.bf16.mxu1 %v5573_v59  ;;  %v2339_v48 = vrot.slane %v2181_v45, 7 }
 0x209   : > { %2146 = vst.msk [vmem:[#allocation3 + $0x30] sm:$0xff] %vm297_vm3, %v2113_v51 }
 0x20a   : > { %4179 = vmatpush3.bf16.msra.mxu0 %v5574_v47  ;;  %4383 = vmatpush3.bf16.msra.mxu1 %v5574_v47 }
 0x20b   : > { %4332 = vmatprep.subr.bf16.mxu0 %v7528_v26 }
 0x20d   : > { %v2186_v28 = vld [vmem:[#allocation3 + $0x48] sm:$0xff] }
 0x20e   : > { %v2472_v41 = vrot.slane %v2186_v28, 1  ;;  %v7473_v24 = vld [vmem:[#allocation3 + $0x28] sm:$0xff]  ;;  %v2345_v27 = vrot.slane %v2186_v28, 7 }
 0x20f   : > { %v2187_v3 = vld [vmem:[#allocation3 + $0x50] sm:$0xff]  ;;  %v2467_v53 = vrot.slane %v7473_v24, 1  ;;  %v2340_v51 = vrot.slane %v7473_v24, 7 }
 0x210   : > { %v5091_v25 = vpack.i.bf16 %v2187_v3, %v2186_v28  ;;  %v2473_v58 = vrot.slane %v2187_v3, 1  ;;  %v7461_v23 = vld [vmem:[#allocation3 + $0x30] sm:$0xff]  ;;  %v2347_v38 = vrot.slane %v2187_v3, 7  ;;  %v7496_v5 = vsel %vm561_vm1, %v2344_v2, %v2345_v27  ;;  %v2193_v3 = vld [vmem:[#allocation3 + $0x80] sm:$0xff] }
 0x211   : > { %v5096_v12 = vpack.i.bf16 %v7461_v23, %v7473_v24  ;;  %v2468_v49 = vrot.slane %v7461_v23, 1  ;;  %v2342_v31 = vrot.slane %v7461_v23, 7 }
 0x212   : > { %5092 = vrot.lane.b32.xlu0 %v5091_v25, %s5690_s25  ;;  %5087 = vrot.lane.b32.xlu1 %v5091_v25, %s5688_s7  ;;  %v7466_v13 = vsel %vm690_vm2, %v2472_v41, %v2473_v58  ;;  %v7469_v62 = vsel %vm690_vm2, %v2473_v58, %v2475_v50  ;;  %v7486_v10 = vsel %vm561_vm1, %v2345_v27, %v2347_v38  ;;  %v2485_v38 = vrot.slane %v2196_v37, 1 }
 0x213   : > { %v4306_v55 = vpop.f32.mrb[4].mxu0  ;;  %v5101_v54 = vpack.i.bf16 %v7469_v62, %v7466_v13  ;;  %v5116_v63 = vpack.i.bf16 %v7486_v10, %v7496_v5  ;;  %v2469_v52 = vsel %vm690_vm2, %v2467_v53, %v2468_v49  ;;  %v2471_v36 = vsel %vm690_vm2, %v2468_v49, %v2470_v30 }
 0x214   : > { %v1978_v22 = vadd.f32 %v4306_v55, %v7414_v46  ;;  %v1969_v17 = vpop.f32.mrb[5].mxu0  ;;  %v5126_v8 = vpack.i.bf16 %v2471_v36, %v2469_v52  ;;  %v7531_v56 = vsel %vm561_vm1, %v2340_v51, %v2342_v31  ;;  %v7536_v50 = vsel %vm561_vm1, %v2339_v48, %v2340_v51  ;;  %v2189_v52 = vld [vmem:[#allocation3 + $0x60] sm:$0xff] }
 0x215   : > { %v1970_v44 = vadd.f32 %v7414_v46, %v1969_v17  ;;  %v4307_v43 = vpop.f32.mrb[6].mxu0  ;;  %v5131_v25 = vpack.i.bf16 %v7531_v56, %v7536_v50  ;;  %v2354_v55 = vrot.slane %v2193_v3, 7  ;;  %v2349_v47 = vrot.slane %v2189_v52, 7 }
 0x216   : > { %v2086_v9 = vmul.f32 0.01, %v1978_v22  ;;  %v1981_v20 = vadd.f32 %v4307_v43, %v7414_v46  ;;  %5102 = vrot.lane.b32.xlu0 %v5101_v54, %s5688_s7  ;;  %v1972_v34 = vpop.f32.mrb[7].mxu0  ;;  %5097 = vrot.lane.b32.xlu1 %v5096_v12, %s5688_s7 }
 0x217   : > { %v2084_v4 = vmul.f32 0.01, %v1970_v44  ;;  %v1973_v15 = vadd.f32 %v7414_v46, %v1972_v34 }
 0x218   : > { %v2118_v57 = vmax.f32 %v1978_v22, %v2086_v9  ;;  %v2087_v16 = vmul.f32 0.01, %v1981_v20 }
 0x219   : > { %v2116_v1 = vmax.f32 %v1970_v44, %v2084_v4  ;;  %v2085_v19 = vmul.f32 0.01, %v1973_v15 }
 0x21a   : > { %2151 = vst.msk [vmem:[#allocation3 + $0x88] sm:$0xff] %vm297_vm3, %v2118_v57  ;;  %v2119_v40 = vmax.f32 %v1981_v20, %v2087_v16  ;;  %5117 = vrot.lane.b32.xlu0 %v5116_v63, %s5689_s8  ;;  %5107 = vrot.lane.b32.xlu1 %v5116_v63, %s5690_s25 }
 0x21b   : > { %2149 = vst.msk [vmem:[#allocation3 + $0x68] sm:$0xff] %vm297_vm3, %v2116_v1  ;;  %v2117_v11 = vmax.f32 %v1973_v15, %v2085_v19 }
 0x21c   : > { %2152 = vst.msk [vmem:[#allocation3 + $0x90] sm:$0xff] %vm297_vm3, %v2119_v40 }
 0x21d   : > { %2150 = vst.msk [vmem:[#allocation3 + $0x70] sm:$0xff] %vm297_vm3, %v2117_v11 }
 0x21e   : > { %5112 = vrot.lane.b32.xlu1 %v5101_v54, %s5689_s8  ;;  %5127 = vrot.lane.b32.xlu0 %v5126_v8, %s5688_s7 }
 0x221   : > { %v2194_v6 = vld [vmem:[#allocation3 + $0x88] sm:$0xff] }
 0x222   : > { %5122 = vrot.lane.b32.xlu1 %v5126_v8, %s5689_s8  ;;  %v2190_v41 = vld [vmem:[#allocation3 + $0x68] sm:$0xff]  ;;  %v2355_v54 = vrot.slane %v2194_v6, 7  ;;  %v2482_v2 = vrot.slane %v2194_v6, 1 }
 0x223   : > { %v2195_v28 = vld [vmem:[#allocation3 + $0x90] sm:$0xff]  ;;  %v2477_v22 = vrot.slane %v2190_v41, 1  ;;  %v2350_v31 = vrot.slane %v2190_v41, 7 }
 0x224   : > { %v5136_v39 = vpack.i.bf16 %v2195_v28, %v2194_v6  ;;  %v2191_v58 = vld [vmem:[#allocation3 + $0x70] sm:$0xff]  ;;  %v2357_v32 = vrot.slane %v2195_v28, 7  ;;  %v2483_v0 = vrot.slane %v2195_v28, 1  ;;  %v7563_v35 = vsel %vm561_vm1, %v2354_v55, %v2355_v54  ;;  %v2204_v6 = vld [vmem:[#allocation3 + $0xd8] sm:$0xff] }
 0x225   : > { %v2478_v27 = vrot.slane %v2191_v58, 1  ;;  %v5146_v18 = vpack.i.bf16 %v2191_v58, %v2190_v41  ;;  %8947 = vst [vmem:[#allocation8_spill] sm:$0xff] %v7563_v35  ;;  %v2352_v59 = vrot.slane %v2191_v58, 7  ;;  %v7586_v37 = vsel %vm561_vm1, %v2349_v47, %v2350_v31  ;;  %v2200_v28 = vld [vmem:[#allocation3 + $0xb8] sm:$0xff] }
 0x226   : > { %5137 = vrot.lane.b32.xlu0 %v5136_v39, %s5690_s25  ;;  %5132 = vrot.lane.b32.xlu1 %v5131_v25, %s5690_s25  ;;  %v7544_v44 = vsel %vm561_vm1, %v2355_v54, %v2357_v32  ;;  %v7547_v43 = vsel %vm690_vm2, %v2482_v2, %v2483_v0  ;;  %v7551_v9 = vsel %vm690_vm2, %v2483_v0, %v2485_v38  ;;  %v2495_v0 = vrot.slane %v2204_v6, 1  ;;  %v2201_v2 = vld [vmem:[#allocation3 + $0xc0] sm:$0xff] }
 0x227   : > { %v4310_v42 = vpop.f32.mrb[8].mxu0  ;;  %8946 = vst [vmem:[#allocation22_spill] sm:$0xff] %v7544_v44  ;;  %v7554_v20 = vsel %vm690_vm2, %v2477_v22, %v2478_v27  ;;  %v7557_v34 = vsel %vm690_vm2, %v2478_v27, %v2480_v60  ;;  %v5156_v19 = vpack.i.bf16 %v7544_v44, %v7563_v35  ;;  %v5161_v48 = vpack.i.bf16 %v7551_v9, %v7547_v43 }
 0x228   : > { %v1994_v17 = vadd.f32 %v4310_v42, %v7414_v46  ;;  %v1985_v12 = vpop.f32.mrb[9].mxu0  ;;  %v7581_v51 = vsel %vm561_vm1, %v2350_v31, %v2352_v59  ;;  %v5181_v25 = vpack.i.bf16 %v7557_v34, %v7554_v20  ;;  %v2490_v38 = vrot.slane %v2200_v28, 1 }
 0x229   : > { %v1986_v49 = vadd.f32 %v7414_v46, %v1985_v12  ;;  %v4311_v30 = vpop.f32.mrb[10].mxu0  ;;  %v5176_v61 = vpack.i.bf16 %v7581_v51, %v7586_v37 }
 0x22a   : > { %v2090_v4 = vmul.f32 0.01, %v1994_v17  ;;  %v1997_v15 = vadd.f32 %v4311_v30, %v7414_v46  ;;  %v1988_v53 = vpop.f32.mrb[11].mxu0  ;;  %5147 = vrot.lane.b32.xlu0 %v5146_v18, %s5690_s25  ;;  %5142 = vrot.lane.b32.xlu1 %v5136_v39, %s5688_s7 }
 0x22b   : > { %v2088_v57 = vmul.f32 0.01, %v1986_v49  ;;  %v1989_v16 = vadd.f32 %v7414_v46, %v1988_v53 }
 0x22c   : > { %v2122_v14 = vmax.f32 %v1994_v17, %v2090_v4  ;;  %v2091_v1 = vmul.f32 0.01, %v1997_v15 }
 0x22d   : > { %v2120_v40 = vmax.f32 %v1986_v49, %v2088_v57  ;;  %v2089_v11 = vmul.f32 0.01, %v1989_v16 }
 0x22e   : > { %2155 = vst.msk [vmem:[#allocation3 + $0xc8] sm:$0xff] %vm297_vm3, %v2122_v14  ;;  %v2123_v8 = vmax.f32 %v1997_v15, %v2091_v1  ;;  %5157 = vrot.lane.b32.xlu0 %v5156_v19, %s5689_s8  ;;  %5152 = vrot.lane.b32.xlu1 %v5146_v18, %s5688_s7  ;;  %v2364_v1 = vrot.slane %v2201_v2, 7  ;;  %v2208_v2 = vld [vmem:[#allocation3 + $0xf8] sm:$0xff] }
 0x22f   : > { %2153 = vst.msk [vmem:[#allocation3 + $0xa8] sm:$0xff] %vm297_vm3, %v2120_v40  ;;  %v2121_v45 = vmax.f32 %v1989_v16, %v2089_v11 }
 0x230   : > { %2156 = vst.msk [vmem:[#allocation3 + $0xd0] sm:$0xff] %vm297_vm3, %v2123_v8 }
 0x231   : > { %2154 = vst.msk [vmem:[#allocation3 + $0xb0] sm:$0xff] %vm297_vm3, %v2121_v45 }
 0x232   : > { %5162 = vrot.lane.b32.xlu0 %v5161_v48, %s5688_s7  ;;  %5167 = vrot.lane.b32.xlu1 %v5156_v19, %s5690_s25 }
 0x235   : > { %v2202_v3 = vld [vmem:[#allocation3 + $0xc8] sm:$0xff] }
 0x236   : > { %5177 = vrot.lane.b32.xlu0 %v5176_v61, %s5689_s8  ;;  %5172 = vrot.lane.b32.xlu1 %v5161_v48, %s5689_s8  ;;  %v7594_v41 = vld [vmem:[#allocation3 + $0xa8] sm:$0xff]  ;;  %v2492_v60 = vrot.slane %v2202_v3, 1  ;;  %v2365_v19 = vrot.slane %v2202_v3, 7 }
 0x237   : > { %v2203_v39 = vld [vmem:[#allocation3 + $0xd0] sm:$0xff]  ;;  %v2487_v27 = vrot.slane %v7594_v41, 1 }
 0x238   : > { %v2199_v58 = vld [vmem:[#allocation3 + $0xb0] sm:$0xff]  ;;  %v2493_v32 = vrot.slane %v2203_v39, 1  ;;  %v5196_v17 = vpack.i.bf16 %v2203_v39, %v2202_v3  ;;  %v2367_v12 = vrot.slane %v2203_v39, 7  ;;  %v7630_v3 = vsel %vm561_vm1, %v2364_v1, %v2365_v19 }
 0x239   : > { %v2488_v55 = vrot.slane %v2199_v58, 1  ;;  %v5206_v45 = vpack.i.bf16 %v2199_v58, %v7594_v41  ;;  %8949 = vst [vmem:[#allocation24_spill] sm:$0xff] %v7630_v3 }
 0x23a   : > { %5182 = vrot.lane.b32.xlu0 %v5181_v25, %s5688_s7  ;;  %5187 = vrot.lane.b32.xlu1 %v5176_v61, %s5690_s25  ;;  %v7601_v18 = vsel %vm690_vm2, %v2492_v60, %v2493_v32  ;;  %v7605_v4 = vsel %vm690_vm2, %v2493_v32, %v2495_v0  ;;  %v7623_v61 = vsel %vm561_vm1, %v2365_v19, %v2367_v12  ;;  %v2362_v32 = vrot.slane %v2199_v58, 7 }
 0x23b   : > { %v4314_v54 = vpop.f32.mrb[12].mxu0  ;;  %v7608_v15 = vsel %vm690_vm2, %v2487_v27, %v2488_v55  ;;  %v7611_v53 = vsel %vm690_vm2, %v2488_v55, %v2490_v38  ;;  %8948 = vst [vmem:[#allocation42_spill] sm:$0xff] %v7623_v61  ;;  %v5216_v39 = vpack.i.bf16 %v7623_v61, %v7630_v3  ;;  %v2360_v38 = vrot.slane %v7594_v41, 7 }
 0x23c   : > { %v2010_v42 = vadd.f32 %v4314_v54, %v7414_v46  ;;  %v2001_v22 = vpop.f32.mrb[13].mxu0  ;;  %v5221_v60 = vpack.i.bf16 %v7605_v4, %v7601_v18  ;;  %v2212_v54 = vld [vmem:[#allocation3 + $0x118] sm:$0xff] }
 0x23d   : > { %v2002_v49 = vadd.f32 %v7414_v46, %v2001_v22  ;;  %v4315_v30 = vpop.f32.mrb[14].mxu0  ;;  %v7642_v55 = vsel %vm561_vm1, %v2360_v38, %v2362_v32 }
 0x23e   : > { %v2094_v57 = vmul.f32 0.01, %v2010_v42  ;;  %v2013_v16 = vadd.f32 %v4315_v30, %v7414_v46  ;;  %v2004_v14 = vpop.f32.mrb[15].mxu0  ;;  %5197 = vrot.lane.b32.xlu0 %v5196_v17, %s5690_s25  ;;  %5192 = vrot.lane.b32.xlu1 %v5181_v25, %s5689_s8  ;;  %v2197_v25 = vld [vmem:[#allocation3 + $0xa0] sm:$0xff]  ;;  %8950 = vst [vmem:[#allocation27_spill] sm:$0xff] %v7642_v55  ;;  %v2500_v30 = vrot.slane %v2208_v2, 1 }
 0x23f   : > { %v2092_v52 = vmul.f32 0.01, %v2002_v49  ;;  %v2005_v40 = vadd.f32 %v7414_v46, %v2004_v14  ;;  %v2359_v0 = vrot.slane %v2197_v25, 7 }
 0x240   : > { %v2126_v59 = vmax.f32 %v2010_v42, %v2094_v57  ;;  %v2095_v8 = vmul.f32 0.01, %v2013_v16 }
 0x241   : > { %v2124_v31 = vmax.f32 %v2002_v49, %v2092_v52  ;;  %v2093_v48 = vmul.f32 0.01, %v2005_v40  ;;  %v7647_v58 = vsel %vm561_vm1, %v2359_v0, %v2360_v38  ;;  %v2505_v49 = vrot.slane %v2212_v54, 1 }
 0x242   : > { %2159 = vst.msk [vmem:[#allocation3 + $0x108] sm:$0xff] %vm297_vm3, %v2126_v59  ;;  %v2127_v6 = vmax.f32 %v2013_v16, %v2095_v8  ;;  %5207 = vrot.lane.b32.xlu0 %v5206_v45, %s5690_s25  ;;  %5202 = vrot.lane.b32.xlu1 %v5196_v17, %s5688_s7  ;;  %8951 = vst [vmem:[#allocation19_spill] sm:$0xff] %v7647_v58  ;;  %v5236_v41 = vpack.i.bf16 %v7642_v55, %v7647_v58 }
 0x243   : > { %2157 = vst.msk [vmem:[#allocation3 + $0xe8] sm:$0xff] %vm297_vm3, %v2124_v31  ;;  %v2125_v28 = vmax.f32 %v2005_v40, %v2093_v48  ;;  %v5241_v40 = vpack.i.bf16 %v7611_v53, %v7608_v15 }
 0x244   : > { %2160 = vst.msk [vmem:[#allocation3 + $0x110] sm:$0xff] %vm297_vm3, %v2127_v6 }
 0x245   : > { %2158 = vst.msk [vmem:[#allocation3 + $0xf0] sm:$0xff] %vm297_vm3, %v2125_v28 }
 0x246   : > { %5217 = vrot.lane.b32.xlu0 %v5216_v39, %s5689_s8  ;;  %5212 = vrot.lane.b32.xlu1 %v5206_v45, %s5688_s7 }
 0x249   : > { %v2210_v27 = vld [vmem:[#allocation3 + $0x108] sm:$0xff] }
 0x24a   : > { %5222 = vrot.lane.b32.xlu0 %v5221_v60, %s5688_s7  ;;  %5227 = vrot.lane.b32.xlu1 %v5216_v39, %s5690_s25  ;;  %v7651_v22 = vld [vmem:[#allocation3 + $0xe8] sm:$0xff]  ;;  %v2502_v57 = vrot.slane %v2210_v27, 1 }
 0x24b   : > { %v2211_v42 = vld [vmem:[#allocation3 + $0x110] sm:$0xff]  ;;  %v2497_v1 = vrot.slane %v7651_v22, 1 }
 0x24c   : > { %v7653_v17 = vld [vmem:[#allocation3 + $0xf0] sm:$0xff]  ;;  %v2503_v12 = vrot.slane %v2211_v42, 1  ;;  %v5256_v2 = vpack.i.bf16 %v2211_v42, %v2210_v27 }
 0x24d   : > { %v2498_v16 = vrot.slane %v7653_v17, 1 }
 0x24e   : > { %5237 = vrot.lane.b32.xlu0 %v5236_v41, %s5689_s8  ;;  %5232 = vrot.lane.b32.xlu1 %v5221_v60, %s5689_s8  ;;  %v7663_v59 = vsel %vm690_vm2, %v2502_v57, %v2503_v12  ;;  %v7667_v31 = vsel %vm690_vm2, %v2503_v12, %v2505_v49  ;;  %v2209_v12 = vld [vmem:[#allocation3 + $0x100] sm:$0xff] }
 0x24f   : > { %v4318_v14 = vpop.f32.mrb[16].mxu0  ;;  %v7670_v48 = vsel %vm690_vm2, %v2497_v1, %v2498_v16  ;;  %v7673_v6 = vsel %vm690_vm2, %v2498_v16, %v2500_v30  ;;  %v2377_v16 = vrot.slane %v2211_v42, 7  ;;  %v2374_v1 = vrot.slane %v2209_v12, 7 }
 0x250   : > { %v2026_v19 = vadd.f32 %v4318_v14, %v7414_v46  ;;  %v2017_v52 = vpop.f32.mrb[17].mxu0 }
 0x251   : > { %v2018_v8 = vadd.f32 %v7414_v46, %v2017_v52  ;;  %v4319_v45 = vpop.f32.mrb[18].mxu0  ;;  %v5266_v52 = vpack.i.bf16 %v7653_v17, %v7651_v22 }
 0x252   : > { %v2098_v28 = vmul.f32 0.01, %v2026_v19  ;;  %v2029_v39 = vadd.f32 %v4319_v45, %v7414_v46  ;;  %v2020_v25 = vpop.f32.mrb[19].mxu0  ;;  %5242 = vrot.lane.b32.xlu0 %v5241_v40, %s5688_s7  ;;  %5247 = vrot.lane.b32.xlu1 %v5236_v41, %s5690_s25  ;;  %v2372_v45 = vrot.slane %v7653_v17, 7 }
 0x253   : > { %v2096_v32 = vmul.f32 0.01, %v2018_v8  ;;  %v2021_v0 = vadd.f32 %v7414_v46, %v2020_v25  ;;  %v2370_v25 = vrot.slane %v7651_v22, 7 }
 0x254   : > { %v2130_v60 = vmax.f32 %v2026_v19, %v2098_v28  ;;  %v2099_v54 = vmul.f32 0.01, %v2029_v39  ;;  %v2375_v19 = vrot.slane %v2210_v27, 7  ;;  %v2220_v28 = vld [vmem:[#allocation3 + $0x158] sm:$0xff] }
 0x255   : > { %v2128_v30 = vmax.f32 %v2018_v8, %v2096_v32  ;;  %v2097_v57 = vmul.f32 0.01, %v2021_v0  ;;  %v2205_v8 = vld [vmem:[#allocation3 + $0xe0] sm:$0xff]  ;;  %v2515_v12 = vrot.slane %v2220_v28, 1 }
 0x256   : > { %2163 = vst.msk [vmem:[#allocation3 + $0x148] sm:$0xff] %vm297_vm3, %v2130_v60  ;;  %v2131_v14 = vmax.f32 %v2029_v39, %v2099_v54  ;;  %5257 = vrot.lane.b32.xlu0 %v5256_v2, %s5690_s25  ;;  %5252 = vrot.lane.b32.xlu1 %v5241_v40, %s5689_s8  ;;  %v7692_v42 = vsel %vm561_vm1, %v2375_v19, %v2377_v16  ;;  %v2369_v39 = vrot.slane %v2205_v8, 7 }
 0x257   : > { %2161 = vst.msk [vmem:[#allocation3 + $0x128] sm:$0xff] %vm297_vm3, %v2128_v30  ;;  %v2129_v41 = vmax.f32 %v2021_v0, %v2097_v57  ;;  %8952 = vst [vmem:[#allocation38_spill] sm:$0xff] %v7692_v42  ;;  %v7697_v40 = vsel %vm561_vm1, %v2374_v1, %v2375_v19  ;;  %v5281_v0 = vpack.i.bf16 %v7667_v31, %v7663_v59 }
 0x258   : > { %2164 = vst.msk [vmem:[#allocation3 + $0x150] sm:$0xff] %vm297_vm3, %v2131_v14  ;;  %8953 = vst [vmem:[#allocation10_spill] sm:$0xff] %v7697_v40  ;;  %v5276_v27 = vpack.i.bf16 %v7692_v42, %v7697_v40  ;;  %v7708_v54 = vsel %vm561_vm1, %v2370_v25, %v2372_v45  ;;  %v7713_v30 = vsel %vm561_vm1, %v2369_v39, %v2370_v25 }
 0x259   : > { %2162 = vst.msk [vmem:[#allocation3 + $0x130] sm:$0xff] %vm297_vm3, %v2129_v41  ;;  %8954 = vst [vmem:[#allocation9_spill] sm:$0xff] %v7708_v54  ;;  %v5296_v14 = vpack.i.bf16 %v7708_v54, %v7713_v30  ;;  %v5301_v25 = vpack.i.bf16 %v7673_v6, %v7670_v48  ;;  %v8963_v54 = vrot.slane %v7335_v7, 7 }
 0x25a   : > { %5267 = vrot.lane.b32.xlu0 %v5266_v52, %s5690_s25  ;;  %5262 = vrot.lane.b32.xlu1 %v5256_v2, %s5688_s7  ;;  %8955 = vst [vmem:[#allocation25_spill] sm:$0xff] %v7713_v30 }
 0x25d   : > { %v2218_v60 = vld [vmem:[#allocation3 + $0x148] sm:$0xff] }
 0x25e   : > { %5277 = vrot.lane.b32.xlu0 %v5276_v27, %s5689_s8  ;;  %5272 = vrot.lane.b32.xlu1 %v5266_v52, %s5688_s7  ;;  %v2512_v57 = vrot.slane %v2218_v60, 1 }
 0x25f   : > { %v2219_v32 = vld [vmem:[#allocation3 + $0x150] sm:$0xff] }
 0x260   : > { %v2513_v2 = vrot.slane %v2219_v32, 1 }
 0x262   : > { %5282 = vrot.lane.b32.xlu0 %v5281_v0, %s5688_s7  ;;  %5287 = vrot.lane.b32.xlu1 %v5276_v27, %s5690_s25  ;;  %v7720_v19 = vsel %vm690_vm2, %v2512_v57, %v2513_v2  ;;  %v7723_v52 = vsel %vm690_vm2, %v2513_v2, %v2515_v12  ;;  %v2387_v2 = vrot.slane %v2219_v32, 7 }
 0x263   : > { %v4322_v17 = vpop.f32.mrb[20].mxu0  ;;  %8956 = vst [vmem:[#allocation26_spill] sm:$0xff] %v7720_v19  ;;  %8957 = vst [vmem:[#allocation30_spill] sm:$0xff] %v7723_v52 }
 0x264   : > { %v2042_v22 = vadd.f32 %v4322_v17, %v7414_v46  ;;  %v2033_v16 = vpop.f32.mrb[21].mxu0 }
 0x265   : > { %v2034_v41 = vadd.f32 %v7414_v46, %v2033_v16  ;;  %v4323_v1 = vpop.f32.mrb[22].mxu0 }
 0x266   : > { %v2102_v27 = vmul.f32 0.01, %v2042_v22  ;;  %v2045_v8 = vadd.f32 %v4323_v1, %v7414_v46  ;;  %v2036_v45 = vpop.f32.mrb[23].mxu0  ;;  %5297 = vrot.lane.b32.xlu0 %v5296_v14, %s5689_s8  ;;  %5292 = vrot.lane.b32.xlu1 %v5281_v0, %s5689_s8 }
 0x267   : > { %v2100_v28 = vmul.f32 0.01, %v2034_v41  ;;  %v2037_v39 = vadd.f32 %v7414_v46, %v2036_v45  ;;  %v5316_v45 = vpack.i.bf16 %v2219_v32, %v2218_v60 }
 0x268   : > { %v2134_v17 = vmax.f32 %v2042_v22, %v2102_v27  ;;  %v2103_v57 = vmul.f32 0.01, %v2045_v8  ;;  %v2217_v22 = vld [vmem:[#allocation3 + $0x140] sm:$0xff]  ;;  %v2215_v27 = vld [vmem:[#allocation3 + $0x130] sm:$0xff] }
 0x269   : > { %v2132_v12 = vmax.f32 %v2034_v41, %v2100_v28  ;;  %v2101_v16 = vmul.f32 0.01, %v2037_v39  ;;  %v2214_v41 = vld [vmem:[#allocation3 + $0x128] sm:$0xff]  ;;  %v2385_v28 = vrot.slane %v2218_v60, 7  ;;  %v2216_v60 = vld [vmem:[#allocation3 + $0x138] sm:$0xff]  ;;  %v2508_v38 = vrot.slane %v2215_v27, 1 }
 0x26a   : > { %2167 = vst.msk [vmem:[#allocation3 + $0x188] sm:$0xff] %vm297_vm3, %v2134_v17  ;;  %v2135_v1 = vmax.f32 %v2045_v8, %v2103_v57  ;;  %5302 = vrot.lane.b32.xlu0 %v5301_v25, %s5688_s7  ;;  %5307 = vrot.lane.b32.xlu1 %v5296_v14, %s5690_s25  ;;  %v2384_v8 = vrot.slane %v2217_v22, 7  ;;  %v5326_v17 = vpack.i.bf16 %v2215_v27, %v2214_v41  ;;  %v2213_v57 = vld [vmem:[#allocation3 + $0x120] sm:$0xff]  ;;  %v7756_v22 = vpop.permute.xlu1 %5077 }
 0x26b   : > { %2165 = vst.msk [vmem:[#allocation3 + $0x168] sm:$0xff] %vm297_vm3, %v2132_v12  ;;  %v2133_v0 = vmax.f32 %v2037_v39, %v2101_v16  ;;  %v7742_v14 = vsel %vm561_vm1, %v2385_v28, %v2387_v2  ;;  %v2382_v12 = vrot.slane %v2215_v27, 7  ;;  %v2379_v2 = vrot.slane %v2213_v57, 7 }
 0x26c   : > { %2168 = vst.msk [vmem:[#allocation3 + $0x190] sm:$0xff] %vm297_vm3, %v2135_v1  ;;  %8958 = vst [vmem:[#allocation13_spill] sm:$0xff] %v7742_v14  ;;  %v7747_v39 = vsel %vm561_vm1, %v2384_v8, %v2385_v28  ;;  %v2380_v16 = vrot.slane %v2214_v41, 7 }
 0x26d   : > { %2166 = vst.msk [vmem:[#allocation3 + $0x170] sm:$0xff] %vm297_vm3, %v2133_v0  ;;  %8959 = vst [vmem:[#allocation16_spill] sm:$0xff] %v7747_v39  ;;  %v5336_v32 = vpack.i.bf16 %v7742_v14, %v7747_v39 }
 0x26e   : > { %5317 = vrot.lane.b32.xlu0 %v5316_v45, %s5690_s25  ;;  %5312 = vrot.lane.b32.xlu1 %v5301_v25, %s5689_s8  ;;  %v7760_v49 = vsel %vm561_vm1, %v2380_v16, %v2382_v12  ;;  %v7767_v63 = vsel %vm561_vm1, %v2379_v2, %v2380_v16  ;;  %v2177_v2 = vld [vmem:[#allocation3] sm:$0xff] }
 0x26f   : > { %8960 = vst [vmem:[#allocation20_spill] sm:$0xff] %v7760_v49  ;;  %8961 = vst [vmem:[#allocation29_spill] sm:$0xff] %v7767_v63  ;;  %v5356_v27 = vpack.i.bf16 %v7760_v49, %v7767_v63 }
 0x272   : > { %5327 = vrot.lane.b32.xlu0 %v5326_v17, %s5690_s25  ;;  %5322 = vrot.lane.b32.xlu1 %v5316_v45, %s5688_s7  ;;  %v5341_v45 = vpack.i.bf16 %v7723_v52, %v7720_v19 }
 0x276   : > { %5337 = vrot.lane.b32.xlu0 %v5336_v32, %s5689_s8  ;;  %5332 = vrot.lane.b32.xlu1 %v5326_v17, %s5688_s7  ;;  %v2510_v17 = vrot.slane %v2216_v60, 1 }
 0x277   : > { %v4326_v25 = vpop.f32.mrb[24].mxu0 }
 0x278   : > { %v2058_v1 = vadd.f32 %v4326_v25, %v7414_v46  ;;  %v2049_v0 = vpop.f32.mrb[25].mxu0  ;;  %v7775_v39 = vsel %vm690_vm2, %v2508_v38, %v2510_v17  ;;  %v2228_v17 = vld [vmem:[#allocation3 + $0x198] sm:$0xff] }
 0x279   : > { %v2050_v8 = vadd.f32 %v7414_v46, %v2049_v0  ;;  %v4327_v28 = vpop.f32.mrb[26].mxu0  ;;  %v2507_v0 = vrot.slane %v2214_v41, 1  ;;  %v2525_v49 = vrot.slane %v2228_v17, 1 }
 0x27a   : > { %v2106_v47 = vmul.f32 0.01, %v2058_v1  ;;  %v2061_v57 = vadd.f32 %v4327_v28, %v7414_v46  ;;  %v2052_v11 = vpop.f32.mrb[27].mxu0  ;;  %5342 = vrot.lane.b32.xlu0 %v5341_v45, %s5688_s7  ;;  %5347 = vrot.lane.b32.xlu1 %v5336_v32, %s5690_s25 }
 0x27b   : > { %v2104_v25 = vmul.f32 0.01, %v2050_v8  ;;  %v2053_v36 = vadd.f32 %v7414_v46, %v2052_v11  ;;  %v7772_v28 = vsel %vm690_vm2, %v2507_v0, %v2508_v38  ;;  %v2227_v38 = vld [vmem:[#allocation3 + $0x190] sm:$0xff]  ;;  %v7797_v0 = vld [vmem:[#allocation3 + $0x168] sm:$0xff] }
 0x27c   : > { %v2138_v21 = vmax.f32 %v2058_v1, %v2106_v47  ;;  %v2107_v12 = vmul.f32 0.01, %v2061_v57  ;;  %v7780_v47 = vpop.permute.xlu1 %5082  ;;  %v5361_v32 = vpack.i.bf16 %v7775_v39, %v7772_v28  ;;  %v2390_v42 = vrot.slane %v7797_v0, 7 }
 0x27d   : > { %v2136_v60 = vmax.f32 %v2050_v8, %v2104_v25  ;;  %v2105_v33 = vmul.f32 0.01, %v2053_v36  ;;  %v2397_v8 = vrot.slane %v2227_v38, 7  ;;  %v2334_v25 = vrot.slane %v2177_v2, 7 }
 0x27e   : > { %2171 = vst.msk [vmem:[#allocation3 + $0x1c8] sm:$0xff] %vm297_vm3, %v2138_v21  ;;  %v2139_v11 = vmax.f32 %v2061_v57, %v2107_v12  ;;  %5357 = vrot.lane.b32.xlu0 %v5356_v27, %s5689_s8  ;;  %5352 = vrot.lane.b32.xlu1 %v5341_v45, %s5689_s8  ;;  %v2226_v21 = vld [vmem:[#allocation3 + $0x188] sm:$0xff]  ;;  %v2221_v57 = vld [vmem:[#allocation3 + $0x160] sm:$0xff] }
 0x27f   : > { %2169 = vst.msk [vmem:[#allocation3 + $0x1a8] sm:$0xff] %vm297_vm3, %v2136_v60  ;;  %v2137_v41 = vmax.f32 %v2053_v36, %v2105_v33  ;;  %v5376_v45 = vpack.i.bf16 %v2227_v38, %v2226_v21  ;;  %v2225_v33 = vld [vmem:[#allocation3 + $0x180] sm:$0xff]  ;;  %v7793_v36 = vld [vmem:[#allocation3 + $0x170] sm:$0xff]  ;;  %v7799_v60 = vld [vmem:[#allocation3 + $0x178] sm:$0xff]  ;;  %v2389_v40 = vrot.slane %v2221_v57, 7  ;;  %v2522_v57 = vrot.slane %v2226_v21, 1 }
 0x280   : > { %2172 = vst.msk [vmem:[#allocation3 + $0x1d0] sm:$0xff] %vm297_vm3, %v2139_v11  ;;  %v2394_v12 = vrot.slane %v2225_v33, 7  ;;  %v5386_v14 = vpack.i.bf16 %v7793_v36, %v7797_v0  ;;  %v2520_v30 = vrot.slane %v7799_v60, 1  ;;  %v2392_v60 = vrot.slane %v7793_v36, 7 }
 0x281   : > { %2170 = vst.msk [vmem:[#allocation3 + $0x1b0] sm:$0xff] %vm297_vm3, %v2137_v41 }
 0x282   : > { %5362 = vrot.lane.b32.xlu0 %v5361_v32, %s5688_s7  ;;  %5367 = vrot.lane.b32.xlu1 %v5356_v27, %s5690_s25  ;;  %v2395_v27 = vrot.slane %v2226_v21, 7 }
 0x284   : > { %v7789_v16 = vpop.permute.xlu0 %5092  ;;  %v7791_v1 = vpop.permute.xlu1 %5087  ;;  %v7808_v63 = vsel %vm561_vm1, %v2395_v27, %v2397_v8  ;;  %v7819_v8 = vsel %vm561_vm1, %v2334_v25, %v8963_v54  ;;  %v7822_v17 = vsel %vm561_vm1, %v2394_v12, %v2395_v27 }
 0x285   : > { %8962 = vst [vmem:[#allocation28_spill] sm:$0xff] %v7808_v63  ;;  %8964 = vst [vmem:[#allocation21_spill] sm:$0xff] %v7822_v17  ;;  %v5095_v52 = vunpack.i.h.bf16 %v7789_v16 }
 0x286   : > { %5377 = vrot.lane.b32.xlu0 %v5376_v45, %s5690_s25  ;;  %5372 = vrot.lane.b32.xlu1 %v5361_v32, %s5689_s8  ;;  %v2523_v32 = vrot.slane %v2227_v38, 1 }
 0x288   : > { %v7801_v11 = vpop.permute.xlu0 %5102  ;;  %v7803_v41 = vpop.permute.xlu1 %5097  ;;  %v7832_v25 = vsel %vm690_vm2, %v2522_v57, %v2523_v32  ;;  %v7835_v12 = vsel %vm690_vm2, %v2523_v32, %v2525_v49  ;;  %v5587_v49 = vld [vmem:[%s8742_s2] ss:$0 sm:$0xff]  ;;  %v2518_v57 = vrot.slane %v7793_v36, 1 }
 0x289   : > { %v5401_v55 = vpack.i.bf16 %v7835_v12, %v7832_v25 }
 0x28a   : > { %5387 = vrot.lane.b32.xlu0 %v5386_v14, %s5690_s25  ;;  %5382 = vrot.lane.b32.xlu1 %v5376_v45, %s5688_s7  ;;  %v5396_v45 = vpack.i.bf16 %v7808_v63, %v7822_v17  ;;  %v2517_v17 = vrot.slane %v7797_v0, 1 }
 0x28b   : > { %v4330_v38 = vpop.f32.mrb[28].mxu0 }
 0x28c   : > { %v2074_v33 = vadd.f32 %v4330_v38, %v7414_v46  ;;  %v5118_v2 = vpop.permute.xlu0 %5117  ;;  %v2065_v3 = vpop.f32.mrb[29].mxu0 }
 0x28d   : > { %v2066_v7 = vadd.f32 %v7414_v46, %v2065_v3  ;;  %v7829_v61 = vpop.permute.xlu1 %5107  ;;  %v4331_v54 = vpop.f32.mrb[30].mxu0  ;;  %v7841_v3 = vsel %vm561_vm1, %v2389_v40, %v2390_v42  ;;  %v5120_v36 = vunpack.i.h.bf16 %v5118_v2 }
 0x28e   : > { %v2110_v21 = vmul.f32 0.01, %v2074_v33  ;;  %v2077_v27 = vadd.f32 %v4331_v54, %v7414_v46  ;;  %v2068_v38 = vpop.f32.mrb[31].mxu0  ;;  %5397 = vrot.lane.b32.xlu0 %v5396_v45, %s5689_s8  ;;  %5392 = vrot.lane.b32.xlu1 %v5386_v14, %s5688_s7  ;;  %v7851_v14 = vsel %vm561_vm1, %v2390_v42, %v2392_v60  ;;  %v5094_v42 = vunpack.i.l.bf16 %v7789_v16 }
 0x28f   : > { %v2108_v63 = vmul.f32 0.01, %v2066_v7  ;;  %v2069_v32 = vadd.f32 %v5587_v49, %v2068_v38  ;;  %v5084_v38 = vunpack.i.l.bf16 %v7780_v47  ;;  %v8965_v49 = vunpack.i.h.bf16 %v7756_v22 }
 0x290   : > { %v2142_v58 = vmax.f32 %v2074_v33, %v2110_v21  ;;  %v2111_v46 = vmul.f32 0.01, %v2077_v27  ;;  %v5128_v54 = vpop.permute.xlu0 %5127  ;;  %v5119_v33 = vunpack.i.l.bf16 %v5118_v2 }
 0x291   : > { %v2140_v40 = vmax.f32 %v2066_v7, %v2108_v63  ;;  %v2109_v35 = vmul.f32 0.01, %v2069_v32  ;;  %v7853_v0 = vpop.permute.xlu1 %5112  ;;  %v5130_v44 = vunpack.i.h.bf16 %v5128_v54  ;;  %v5129_v19 = vunpack.i.l.bf16 %v5128_v54 }
 0x292   : > { %2175 = vst.msk [vmem:[#allocation3 + $0x208] sm:$0xff] %vm297_vm3, %v2142_v58  ;;  %v2143_v21 = vmax.f32 %v2077_v27, %v2111_v46  ;;  %5402 = vrot.lane.b32.xlu0 %v5401_v55, %s5688_s7  ;;  %5407 = vrot.lane.b32.xlu1 %v5396_v45, %s5690_s25  ;;  %v5416_v58 = vpack.i.bf16 %v7851_v14, %v7841_v3  ;;  %v5085_v27 = vunpack.i.h.bf16 %v7780_v47  ;;  %v2235_v46 = vld [vmem:[#allocation3 + $0x1d0] sm:$0xff] }
 0x293   : > { %2173 = vst.msk [vmem:[#allocation3 + $0x1e8] sm:$0xff] %vm297_vm3, %v2140_v40  ;;  %v2141_v63 = vmax.f32 %v2069_v32, %v2109_v35  ;;  %v3277_v60 = vsel %vm297_vm3, %v7461_v23, %v5130_v44  ;;  %v3276_v7 = vsel %vm297_vm3, %v7473_v24, %v5129_v19  ;;  %v7876_v44 = vsel %vm690_vm2, %v2517_v17, %v2518_v57  ;;  %v2234_v40 = vld [vmem:[#allocation3 + $0x1c8] sm:$0xff] }
 0x294   : > { %2176 = vst.msk [vmem:[#allocation3 + $0x210] sm:$0xff] %vm297_vm3, %v2143_v21  ;;  %v3308_v2 = vsel %vm3210_vm12, %v3276_v7, %v5119_v33  ;;  %v3309_v45 = vsel %vm3210_vm12, %v3277_v60, %v5120_v36  ;;  %v7879_v24 = vsel %vm690_vm2, %v2518_v57, %v2520_v30  ;;  %v8966_v17 = vunpack.i.l.bf16 %v7756_v22  ;;  %v2236_v60 = vld [vmem:[#allocation3 + $0x1d8] sm:$0xff] }
 0x295   : > { %2174 = vst.msk [vmem:[#allocation3 + $0x1f0] sm:$0xff] %vm297_vm3, %v2141_v63  ;;  %v7871_v16 = vpop.permute.xlu1 %5122  ;;  %v3340_v35 = vsel %vm3243_vm13, %v3308_v2, %v5094_v42  ;;  %v3341_v23 = vsel %vm3243_vm13, %v3309_v45, %v5095_v52  ;;  %v3179_v52 = vsel %vm297_vm3, %v7429_v29, %v8965_v49  ;;  %v7905_v42 = vpack.i.bf16 %v2235_v46, %v2234_v40  ;;  %v5576_v45 = vld [vmem:[%s8743_s3 + $0x88] sm:$0xff]  }
 0x296   : > { %5417 = vrot.lane.b32.xlu0 %v5416_v58, %s5689_s8  ;;  %5412 = vrot.lane.b32.xlu1 %v5401_v55, %s5689_s8  ;;  %v3373_v19 = vpack.c.bf16 %v3341_v23, %v3340_v35  ;;  %v3178_v30 = vsel %vm297_vm3, %v7819_v8, %v8966_v17  ;;  %v5421_v55 = vpack.i.bf16 %v7879_v24, %v7876_v44  ;;  %v2233_v8 = vld [vmem:[#allocation3 + $0x1c0] sm:$0xff]  ;;  %v2407_v63 = vrot.slane %v2235_v46, 7 }
 0x297   : > { %v3211_v29 = vsel %vm3210_vm12, %v3178_v30, %v5084_v38  ;;  %v3212_v22 = vsel %vm3210_vm12, %v3179_v52, %v5085_v27  ;;  %v5089_v35 = vunpack.i.l.bf16 %v7791_v1  ;;  %v2404_v23 = vrot.slane %v2233_v8, 7  ;;  %v2229_v27 = vld [vmem:[#allocation3 + $0x1a0] sm:$0xff]  ;;  %v2232_v38 = vld [vmem:[#allocation3 + $0x1b8] sm:$0xff]  ;;  %v2230_v52 = vld [vmem:[#allocation3 + $0x1a8] sm:$0xff] }
 0x298   : > { %v7893_v32 = vpop.permute.xlu0 %5137  ;;  %3614 = vmatprep.mubr.bf16.mxu0 %v3373_v19  ;;  %v2405_v19 = vrot.slane %v2234_v40, 7  ;;  %v5090_v49 = vunpack.i.h.bf16 %v7791_v1  ;;  %v2533_v17 = vrot.slane %v2235_v46, 1  ;;  %v2535_v30 = vrot.slane %v2236_v60, 1 }
 0x299   : > { %v5133_v57 = vpop.permute.xlu1 %5132  ;;  %v2530_v8 = vrot.slane %v2232_v38, 1  ;;  %v5125_v60 = vunpack.i.h.bf16 %v7871_v16  ;;  %v2527_v38 = vrot.slane %v2230_v52, 1 }
 0x29a   : > { %v5135_v54 = vunpack.i.h.bf16 %v5133_v57  ;;  %v5134_v47 = vunpack.i.l.bf16 %v5133_v57  ;;  %5422 = vrot.lane.b32.xlu0 %v5421_v55, %s5688_s7  ;;  %5427 = vrot.lane.b32.xlu1 %v5416_v58, %s5690_s25  ;;  %v7909_v58 = vld [vmem:[#allocation3 + $0x1b0] sm:$0xff]  ;;  %v8967_v57 = vpack.c.bf16 %v7469_v62, %v7466_v13  ;;  %v7936_v13 = vsel %vm297_vm3, %v7496_v5, %v5089_v35 }
 0x29b   : > { %v2402_v1 = vrot.slane %v7909_v58, 7  ;;  %v5100_v62 = vunpack.i.h.bf16 %v7803_v41 }
 0x29c   : > { %v3245_v36 = vsel %vm3243_vm13, %v3212_v22, %v5135_v54  ;;  %v3244_v33 = vsel %vm3243_vm13, %v3211_v29, %v5134_v47  ;;  %v7903_v21 = vpop.permute.xlu0 %5147  ;;  %v7928_v47 = vsel %vm561_vm1, %v2405_v19, %v2407_v63  ;;  %v5099_v29 = vunpack.i.l.bf16 %v7803_v41 }
 0x29d   : > { %v3372_v7 = vpack.c.bf16 %v3245_v36, %v3244_v33  ;;  %v7907_v2 = vpop.permute.xlu1 %5142  ;;  %v2399_v22 = vrot.slane %v2229_v27, 7  ;;  %v7942_v36 = vsel %vm561_vm1, %v2404_v23, %v2405_v19  ;;  %v2400_v33 = vrot.slane %v2230_v52, 7 }
 0x29e   : > { %5437 = vrot.lane.b32.xlu0 %v7905_v42, %s5690_s25  ;;  %5432 = vrot.lane.b32.xlu1 %v5421_v55, %s5689_s8  ;;  %v5441_v55 = vpack.i.bf16 %v7909_v58, %v2230_v52  ;;  %v7946_v63 = vsel %vm297_vm3, %v7486_v10, %v5090_v49  ;;  %v7954_v41 = vsel %vm690_vm2, %v2533_v17, %v2535_v30  ;;  %v5105_v10 = vunpack.i.h.bf16 %v7801_v11 }
 0x29f   : > { %3615 = vmatmul.mubr.bf16.vlgmr.msra.gmra.mrb[32].mxu0 %v3372_v7  ;;  %v5124_v7 = vunpack.i.l.bf16 %v7871_v16  ;;  %v7961_v23 = vsel %vm561_vm1, %v2400_v33, %v2402_v1  ;;  %v3180_v19 = vsel %vm297_vm3, %v7536_v50, %v5099_v29  ;;  %v2528_v49 = vrot.slane %v7909_v58, 1 }
 0x2a0   : > { %4333 = vmatpush3.bf16.msra.mxu0 %v7528_v26  ;;  %4336 = vmatprep.mubr.msk.bf16.mxu0 %vm297_vm3, %v8967_v57  ;;  %v7924_v54 = vpop.permute.xlu0 %5157  ;;  %v2532_v26 = vrot.slane %v2234_v40, 1  ;;  %v5451_v40 = vpack.i.bf16 %v7928_v47, %v7942_v36  ;;  %v3181_v16 = vsel %vm297_vm3, %v7531_v56, %v5100_v62  ;;  %v7979_v50 = vsel %vm561_vm1, %v2399_v22, %v2400_v33 }
 0x2a1   : > { %v7932_v46 = vpop.permute.xlu1 %5152  ;;  %4334 = vmatprep.subr.bf16.mxu0 %v5576_v45  ;;  %v5110_v52 = vunpack.i.h.bf16 %v7829_v61  ;;  %v5109_v58 = vunpack.i.l.bf16 %v7829_v61  ;;  %v5476_v56 = vpack.i.bf16 %v7961_v23, %v7979_v50  ;;  %v5115_v30 = vunpack.i.h.bf16 %v7853_v0 }
 0x2a2   : > { %5442 = vrot.lane.b32.xlu0 %v5441_v55, %s5690_s25  ;;  %5447 = vrot.lane.b32.xlu1 %v5441_v55, %s5688_s7  ;;  %v7951_v5 = vsel %vm690_vm2, %v2532_v26, %v2533_v17  ;;  %v5104_v17 = vunpack.i.l.bf16 %v7801_v11  ;;  %v8968_v11 = vpack.c.bf16 %v7557_v34, %v7554_v20  ;;  %v5114_v57 = vunpack.i.l.bf16 %v7853_v0 }
 0x2a3   : > { %v3213_v55 = vsel %vm3210_vm12, %v3180_v19, %v5124_v7  ;;  %v3214_v1 = vsel %vm3210_vm12, %v3181_v16, %v5125_v60  ;;  %v8969_v29 = vpack.c.bf16 %v7551_v9, %v7547_v43  ;;  %v8000_v22 = vsel %vm690_vm2, %v2527_v38, %v2528_v49  ;;  %v5588_v43 = vld [vmem:[#allocation3 + $0x48] sm:$0xff]  ;;  %v5589_v60 = vld [vmem:[#allocation3 + $0x50] sm:$0xff] }
 0x2a4   : > { %4335 = vmatpush3.bf16.msra.mxu0 %v5576_v45  ;;  %v7958_v35 = vpop.permute.xlu0 %5162  ;;  %v7976_v45 = vpack.i.bf16 %v7954_v41, %v7951_v5  ;;  %v8003_v62 = vsel %vm690_vm2, %v2528_v49, %v2530_v8  ;;  %v5150_v33 = vunpack.i.h.bf16 %v7903_v21  ;;  %v3278_v9 = vsel %vm297_vm3, %v5588_v43, %v5104_v17 }
 0x2a5   : > { %v7966_v27 = vpop.permute.xlu1 %5167  ;;  %v3279_v7 = vsel %vm297_vm3, %v5589_v60, %v5105_v10  ;;  %v3246_v38 = vsel %vm3243_vm13, %v3213_v55, %v5109_v58  ;;  %v3247_v49 = vsel %vm3243_vm13, %v3214_v1, %v5110_v52  ;;  %v5481_v16 = vpack.i.bf16 %v8003_v62, %v8000_v22  ;;  %v8026_v1 = vld [vmem:[#allocation3 + $0x1f0] sm:$0xff] }
 0x2a6   : > { %5452 = vrot.lane.b32.xlu0 %v5451_v40, %s5689_s8  ;;  %5462 = vrot.lane.b32.xlu1 %v5451_v40, %s5690_s25  ;;  %v5149_v40 = vunpack.i.l.bf16 %v7903_v21  ;;  %v5140_v17 = vunpack.i.h.bf16 %v7893_v32  ;;  %v5160_v58 = vunpack.i.h.bf16 %v7924_v54  ;;  %v5159_v52 = vunpack.i.l.bf16 %v7924_v54 }
 0x2a7   : > { %4337 = vmatmul.mubr.msk.bf16.vlgmr.msra.gmra.mrb[36].mxu0 %vm297_vm3, %v8968_v11  ;;  %v3375_v55 = vpack.c.bf16 %v3247_v49, %v3246_v38  ;;  %v8970_v54 = vpack.c.bf16 %v7611_v53, %v7608_v15  ;;  %v8971_v38 = vpack.c.bf16 %v7605_v4, %v7601_v18 }
 0x2a8   : > { %4340 = vmatprep.mubr.msk.bf16.mxu0 %vm297_vm3, %v8969_v29  ;;  %v5178_v61 = vpop.permute.xlu0 %5177 }
 0x2a9   : > { %v5180_v20 = vunpack.i.h.bf16 %v5178_v61  ;;  %v5179_v34 = vunpack.i.l.bf16 %v5178_v61  ;;  %v7997_v26 = vpop.permute.xlu1 %5172 }
 0x2aa   : > { %5457 = vrot.lane.b32.xlu0 %v7976_v45, %s5688_s7  ;;  %5477 = vrot.lane.b32.xlu1 %v5476_v56, %s5690_s25 }
 0x2ab   : > { %v3310_v19 = vsel %vm3210_vm12, %v3278_v9, %v5179_v34  ;;  %v3311_v8 = vsel %vm3210_vm12, %v3279_v7, %v5180_v20  ;;  %v2241_v9 = vld [vmem:[#allocation3 + $0x200] sm:$0xff]  ;;  %v5139_v20 = vunpack.i.l.bf16 %v7893_v32  ;;  %v5591_v7 = vld [vmem:[#allocation3 + $0x68] sm:$0xff] }
 0x2ac   : > { %v5183_v21 = vpop.permute.xlu0 %5182  ;;  %v3342_v11 = vsel %vm3243_vm13, %v3310_v19, %v5149_v40  ;;  %v3343_v29 = vsel %vm3243_vm13, %v3311_v8, %v5150_v33  ;;  %v8028_v33 = vld [vmem:[#allocation3 + $0x210] sm:$0xff]  ;;  %v2545_v15 = vrot.slane %v2241_v9, 7  ;;  %v3215_v9 = vsel %vm3210_vm12, %v7936_v13, %v5114_v57 }
 0x2ad   : > { %v5185_v61 = vunpack.i.h.bf16 %v5183_v21  ;;  %v5184_v10 = vunpack.i.l.bf16 %v5183_v21  ;;  %v5188_v43 = vpop.permute.xlu1 %5187  ;;  %v3376_v34 = vpack.c.bf16 %v3343_v29, %v3342_v11  ;;  %v5590_v40 = vld [vmem:[#allocation3 + $0x70] sm:$0xff]  ;;  %v8044_v29 = vld [vmem:[#allocation3 + $0x1e8] sm:$0xff]  ;;  %v2548_v4 = vrot.slane %v8028_v33, 7 }
 0x2ae   : > { %5467 = vrot.lane.b32.xlu0 %v5476_v56, %s5689_s8  ;;  %5482 = vrot.lane.b32.xlu1 %v5481_v16, %s5689_s8  ;;  %v5190_v32 = vunpack.i.h.bf16 %v5188_v43  ;;  %v5189_v8 = vunpack.i.l.bf16 %v5188_v43  ;;  %v2237_v56 = vld [vmem:[#allocation3 + $0x1e0] sm:$0xff]  ;;  %v2412_v43 = vrot.slane %v8026_v1, 7 }
 0x2af   : > { %v3281_v60 = vsel %vm297_vm3, %v5590_v40, %v5185_v61  ;;  %v3280_v19 = vsel %vm297_vm3, %v5591_v7, %v5184_v10  ;;  %4341 = vmatmul.mubr.msk.bf16.gmra.mrb[40].mxu0 %vm297_vm3, %v8970_v54  ;;  %3622 = vmatprep.mubr.bf16.mxu1 %v3376_v34  ;;  %v8046_v61 = vld [vmem:[#allocation3 + $0x208] sm:$0xff]  ;;  %v2245_v34 = vld [vmem:[#allocation3 + $0x220] sm:$0xff] }
 0x2b0   : > { %4344 = vmatprep.mubr.msk.bf16.mxu0 %vm297_vm3, %v8971_v38  ;;  %v8040_v49 = vpop.permute.xlu0 %5197  ;;  %3623 = vmatmul.mubr.bf16.vlgmr.msra.gmra.mrb[0].mxu1 %v3375_v55  ;;  %v3312_v21 = vsel %vm3210_vm12, %v3280_v19, %v5159_v52  ;;  %v3313_v11 = vsel %vm3210_vm12, %v3281_v60, %v5160_v58  ;;  %v3216_v58 = vsel %vm3210_vm12, %v7946_v63, %v5115_v30  ;;  %v8065_v52 = vld [vmem:[#allocation3 + $0x228] sm:$0xff]  ;;  %v8067_v55 = vld [vmem:[#allocation3 + $0x230] sm:$0xff]  ;;  %v2546_v0 = vrot.slane %v8046_v61, 7  ;;  %v2240_v19 = vld [vmem:[#allocation3 + $0x1f8] sm:$0xff] }
 0x2b1   : > { %v8048_v53 = vpop.permute.xlu1 %5192  ;;  %v3344_v10 = vsel %vm3243_vm13, %v3312_v21, %v5139_v20  ;;  %v3345_v18 = vsel %vm3243_vm13, %v3313_v11, %v5140_v17  ;;  %v2409_v20 = vrot.slane %v2237_v56, 7  ;;  %v3248_v40 = vsel %vm3243_vm13, %v3215_v9, %v5189_v8  ;;  %v2244_v56 = vld [vmem:[#allocation3 + $0x218] sm:$0xff] }
 0x2b2   : > { %5472 = vrot.lane.b32.xlu0 %v5481_v16, %s5688_s7  ;;  %5487 = vrot.lane.b32.xlu1 %v7905_v42, %s5688_s7  ;;  %v3379_v17 = vpack.c.bf16 %v3345_v18, %v3344_v10  ;;  %v3249_v63 = vsel %vm3243_vm13, %v3216_v58, %v5190_v32  ;;  %v2410_v30 = vrot.slane %v8044_v29, 7  ;;  %v5496_v42 = vpack.i.bf16 %v8026_v1, %v8044_v29 }
 0x2b3   : > { %v2559_v57 = vrot.slane %v2245_v34, 7  ;;  %v2549_v60 = vsel %vm561_vm1, %v2546_v0, %v2548_v4  ;;  %v2560_v32 = vrot.slane %v8065_v52, 7  ;;  %v2562_v8 = vrot.slane %v8067_v55, 7 }
 0x2b4   : > { %v8073_v13 = vpop.permute.xlu0 %5207  ;;  %3630 = vmatprep.mubr.bf16.mxu1 %v3379_v17  ;;  %v8081_v7 = vsel %vm561_vm1, %v2410_v30, %v2412_v43  ;;  %v3378_v54 = vpack.c.bf16 %v3249_v63, %v3248_v40  ;;  %v8972_v38 = vpack.c.bf16 %v7673_v6, %v7670_v48  ;;  %v2547_v21 = vsel %vm561_vm1, %v2545_v15, %v2546_v0 }
 0x2b5   : > { %v8077_v16 = vpop.permute.xlu1 %5202  ;;  %v8094_v11 = vsel %vm561_vm1, %v2409_v20, %v2410_v30  ;;  %v8973_v10 = vpack.c.bf16 %v7667_v31, %v7663_v59  ;;  %v2540_v6 = vrot.slane %v2240_v19, 1  ;;  %v2538_v15 = vrot.slane %v8026_v1, 1 }
 0x2b6   : > { %5497 = vrot.lane.b32.xlu0 %v5496_v42, %s5690_s25  ;;  %5492 = vrot.lane.b32.xlu1 %v7976_v45, %s5689_s8  ;;  %v8102_v45 = vpack.i.bf16 %v2549_v60, %v2547_v21  ;;  %v5521_v48 = vpack.i.bf16 %v8081_v7, %v8094_v11  ;;  %v2554_v43 = vrot.slane %v2244_v56, 1  ;;  %v8110_v34 = vsel %vm561_vm1, %v2559_v57, %v2560_v32 }
 0x2b7   : > { %4345 = vmatmul.mubr.msk.bf16.gmra.mrb[44].mxu0 %vm297_vm3, %v8972_v38  ;;  %v8113_v59 = vsel %vm561_vm1, %v2560_v32, %v2562_v8  ;;  %v3395_v31 = vpack.c.bf16 %v7775_v39, %v7772_v28  ;;  %v2537_v58 = vrot.slane %v8044_v29, 1  ;;  %v3401_v9 = vpack.c.bf16 %v7879_v24, %v7876_v44  ;;  %v8977_v44 = vld [vmem:[#allocation22_spill] sm:$0xff] }
 0x2b8   : > { %4348 = vmatprep.mubr.msk.bf16.mxu0 %vm297_vm3, %v8973_v10  ;;  %v8100_v18 = vpop.permute.xlu0 %5217  ;;  %3631 = vmatmul.mubr.bf16.gmra.mrb[4].mxu1 %v3378_v54  ;;  %v3404_v17 = vpack.c.bf16 %v7835_v12, %v7832_v25  ;;  %v5155_v20 = vunpack.i.h.bf16 %v7932_v46  ;;  %v5154_v40 = vunpack.i.l.bf16 %v7932_v46  ;;  %v2551_v63 = vrot.slane %v8046_v61, 1  ;;  %v8978_v25 = vld [vmem:[#allocation8_spill] sm:$0xff] }
 0x2b9   : > { %v8106_v4 = vpop.permute.xlu1 %5212  ;;  %v2552_v0 = vrot.slane %v8028_v33, 1  ;;  %v5195_v30 = vunpack.i.h.bf16 %v8048_v53  ;;  %v5194_v39 = vunpack.i.l.bf16 %v8048_v53  ;;  %v5145_v57 = vunpack.i.h.bf16 %v7907_v2 }
 0x2ba   : > { %5502 = vrot.lane.b32.xlu0 %v8102_v45, %s5689_s8  ;;  %5522 = vrot.lane.b32.xlu1 %v5521_v48, %s5690_s25  ;;  %v5144_v60 = vunpack.i.l.bf16 %v7907_v2  ;;  %v8138_v32 = vsel %vm690_vm2, %v2537_v58, %v2538_v15  ;;  %v8141_v46 = vsel %vm690_vm2, %v2538_v15, %v2540_v6  ;;  %v5165_v8 = vunpack.i.h.bf16 %v7958_v35 }
 0x2bb   : > { %v5164_v54 = vunpack.i.l.bf16 %v7958_v35  ;;  %v5516_v53 = vpack.i.bf16 %v8028_v33, %v8046_v61  ;;  %v3185_v56 = vsel %vm297_vm3, %v7581_v51, %v5155_v20  ;;  %v3184_v38 = vsel %vm297_vm3, %v7586_v37, %v5154_v40  ;;  %v8975_v33 = vld [vmem:[#allocation26_spill] sm:$0xff]  ;;  %v5592_v20 = vld [vmem:[#allocation3 + $0x90] sm:$0xff] }
 0x2bc   : > { %v8131_v28 = vpop.permute.xlu0 %5222  ;;  %v8155_v21 = vsel %vm690_vm2, %v2551_v63, %v2552_v0  ;;  %v8158_v35 = vsel %vm690_vm2, %v2552_v0, %v2554_v43  ;;  %v3217_v10 = vsel %vm3210_vm12, %v3184_v38, %v5194_v39  ;;  %v5511_v37 = vpack.i.bf16 %v8141_v46, %v8138_v32  ;;  %v5593_v63 = vld [vmem:[#allocation3 + $0x88] sm:$0xff] }
 0x2bd   : > { %v8135_v19 = vpop.permute.xlu1 %5227  ;;  %v5170_v6 = vunpack.i.h.bf16 %v7966_v27  ;;  %v5169_v15 = vunpack.i.l.bf16 %v7966_v27  ;;  %v3283_v40 = vsel %vm297_vm3, %v5592_v20, %v5165_v8  ;;  %v3282_v0 = vsel %vm297_vm3, %v5593_v63, %v5164_v54 }
 0x2be   : > { %5507 = vrot.lane.b32.xlu0 %v5521_v48, %s5689_s8  ;;  %5532 = vrot.lane.b32.xlu1 %v5496_v42, %s5688_s7  ;;  %v3218_v42 = vsel %vm3210_vm12, %v3185_v56, %v5195_v30  ;;  %v8974_v48 = vld [vmem:[#allocation30_spill] sm:$0xff]  ;;  %v5210_v30 = vunpack.i.h.bf16 %v8073_v13  ;;  %v5209_v39 = vunpack.i.l.bf16 %v8073_v13  ;;  %v5175_v8 = vunpack.i.h.bf16 %v7997_v26 }
 0x2bf   : > { %4349 = vmatmul.mubr.msk.bf16.gmra.mrb[48].mxu0 %vm297_vm3, %v3395_v31  ;;  %v8976_v61 = vpack.c.bf16 %v8974_v48, %v8975_v33  ;;  %v3250_v38 = vsel %vm3243_vm13, %v3217_v10, %v5169_v15  ;;  %v3251_v48 = vsel %vm3243_vm13, %v3218_v42, %v5170_v6  ;;  %v5174_v54 = vunpack.i.l.bf16 %v7997_v26  ;;  %v5594_v6 = vld [vmem:[#allocation3 + $0xb0] sm:$0xff] }
 0x2c0   : > { %v5238_v51 = vpop.permute.xlu0 %5237  ;;  %v5220_v10 = vunpack.i.h.bf16 %v8100_v18  ;;  %v5219_v42 = vunpack.i.l.bf16 %v8100_v18  ;;  %v3381_v26 = vpack.c.bf16 %v3251_v48, %v3250_v38  ;;  %v5526_v18 = vpack.i.bf16 %v8158_v35, %v8155_v21 }
 0x2c1   : > { %4352 = vmatprep.mubr.msk.bf16.mxu0 %vm297_vm3, %v8976_v61  ;;  %v5240_v31 = vunpack.i.h.bf16 %v5238_v51  ;;  %v5239_v43 = vunpack.i.l.bf16 %v5238_v51  ;;  %v8170_v58 = vpop.permute.xlu1 %5232  ;;  %v5200_v51 = vunpack.i.h.bf16 %v8040_v49  ;;  %v3187_v24 = vsel %vm297_vm3, %v8977_v44, %v5145_v57 }
 0x2c2   : > { %5512 = vrot.lane.b32.xlu0 %v5511_v37, %s5688_s7  ;;  %5542 = vrot.lane.b32.xlu1 %v5511_v37, %s5689_s8  ;;  %v3186_v12 = vsel %vm297_vm3, %v8978_v25, %v5144_v60  ;;  %v3220_v38 = vsel %vm3210_vm12, %v3187_v24, %v5175_v8  ;;  %v5536_v57 = vpack.i.bf16 %v8113_v59, %v8110_v34 }
 0x2c3   : > { %v3314_v27 = vsel %vm3210_vm12, %v3282_v0, %v5239_v43  ;;  %v3315_v56 = vsel %vm3210_vm12, %v3283_v40, %v5240_v31  ;;  %v5199_v31 = vunpack.i.l.bf16 %v8040_v49  ;;  %v5595_v40 = vld [vmem:[#allocation3 + $0xa8] sm:$0xff]  ;;  %v3410_v8 = vpack.c.bf16 %v7954_v41, %v7951_v5 }
 0x2c4   : > { %v5243_v33 = vpop.permute.xlu0 %5242  ;;  %v3346_v61 = vsel %vm3243_vm13, %v3314_v27, %v5209_v39  ;;  %v3347_v13 = vsel %vm3243_vm13, %v3315_v56, %v5210_v30  ;;  %v3219_v56 = vsel %vm3210_vm12, %v3186_v12, %v5174_v54  ;;  %v5546_v34 = vpack.i.bf16 %v8067_v55, %v8065_v52  ;;  %v5597_v12 = vld [vmem:[#allocation3 + $0xc8] sm:$0xff] }
 0x2c5   : > { %v5245_v37 = vunpack.i.h.bf16 %v5243_v33  ;;  %v5244_v20 = vunpack.i.l.bf16 %v5243_v33  ;;  %v5248_v43 = vpop.permute.xlu1 %5247  ;;  %v3382_v63 = vpack.c.bf16 %v3347_v13, %v3346_v61  ;;  %v3407_v13 = vpack.c.bf16 %v8003_v62, %v8000_v22 }
 0x2c6   : > { %5517 = vrot.lane.b32.xlu0 %v5516_v53, %s5690_s25  ;;  %5552 = vrot.lane.b32.xlu1 %v8102_v45, %s5690_s25  ;;  %v5250_v30 = vunpack.i.h.bf16 %v5248_v43  ;;  %v5249_v39 = vunpack.i.l.bf16 %v5248_v43  ;;  %v5215_v22 = vunpack.i.h.bf16 %v8106_v4  ;;  %v5214_v5 = vunpack.i.l.bf16 %v8106_v4 }
 0x2c7   : > { %v3285_v15 = vsel %vm297_vm3, %v5594_v6, %v5245_v37  ;;  %v3284_v0 = vsel %vm297_vm3, %v5595_v40, %v5244_v20  ;;  %4353 = vmatmul.mubr.msk.bf16.gmra.mrb[52].mxu0 %vm297_vm3, %v3401_v9  ;;  %3638 = vmatprep.mubr.bf16.mxu1 %v3382_v63  ;;  %v2565_v41 = vrot.slane %v8065_v52, 1  ;;  %v2566_v62 = vrot.slane %v8067_v55, 1  ;;  %v8979_v55 = vld [vmem:[#allocation27_spill] sm:$0xff] }
 0x2c8   : > { %4356 = vmatprep.mubr.msk.bf16.mxu0 %vm297_vm3, %v3404_v17  ;;  %v8203_v49 = vpop.permute.xlu0 %5257  ;;  %3639 = vmatmul.mubr.bf16.gmra.mrb[8].mxu1 %v3381_v26  ;;  %v3316_v45 = vsel %vm3210_vm12, %v3284_v0, %v5219_v42  ;;  %v3317_v53 = vsel %vm3210_vm12, %v3285_v15, %v5220_v10  ;;  %v3252_v2 = vsel %vm3243_vm13, %v3219_v56, %v5249_v39  ;;  %v5225_v10 = vunpack.i.h.bf16 %v8131_v28  ;;  %v8980_v40 = vld [vmem:[#allocation19_spill] sm:$0xff] }
 0x2c9   : > { %v5253_v9 = vpop.permute.xlu1 %5252  ;;  %v3348_v17 = vsel %vm3243_vm13, %v3316_v45, %v5199_v31  ;;  %v3349_v27 = vsel %vm3243_vm13, %v3317_v53, %v5200_v51  ;;  %v3253_v33 = vsel %vm3243_vm13, %v3220_v38, %v5250_v30  ;;  %v2248_v51 = vld [vmem:[#allocation3 + $0x238] sm:$0xff]  ;;  %v3413_v26 = vpack.c.bf16 %v8141_v46, %v8138_v32 }
 0x2ca   : > { %5527 = vrot.lane.b32.xlu0 %v5526_v18, %s5688_s7  ;;  %v3385_v48 = vpack.c.bf16 %v3349_v27, %v3348_v17  ;;  %v3384_v54 = vpack.c.bf16 %v3253_v33, %v3252_v2  ;;  %v2568_v20 = vrot.slane %v2248_v51, 1  ;;  %v5255_v43 = vunpack.i.h.bf16 %v5253_v9  ;;  %v5596_v18 = vld [vmem:[#allocation3 + $0xd0] sm:$0xff] }
 0x2cb   : > { %v5254_v63 = vunpack.i.l.bf16 %v5253_v9  ;;  %v5205_v6 = vunpack.i.h.bf16 %v8077_v16  ;;  %v5224_v4 = vunpack.i.l.bf16 %v8131_v28  ;;  %v3416_v52 = vpack.c.bf16 %v8158_v35, %v8155_v21 }
 0x2cc   : > { %v5268_v60 = vpop.permute.xlu0 %5267  ;;  %3646 = vmatprep.mubr.bf16.mxu1 %v3385_v48  ;;  %v3189_v15 = vsel %vm297_vm3, %v8979_v55, %v5215_v22  ;;  %v3188_v0 = vsel %vm297_vm3, %v8980_v40, %v5214_v5  ;;  %v2567_v30 = vsel %vm690_vm2, %v2565_v41, %v2566_v62  ;;  %v2569_v39 = vsel %vm690_vm2, %v2566_v62, %v2568_v20  ;;  %v8982_v40 = vld [vmem:[#allocation24_spill] sm:$0xff] }
 0x2cd   : > { %v8226_v61 = vpop.permute.xlu1 %5262  ;;  %v5204_v32 = vunpack.i.l.bf16 %v8077_v16  ;;  %v5230_v46 = vunpack.i.h.bf16 %v8135_v19  ;;  %v3221_v28 = vsel %vm3210_vm12, %v3188_v0, %v5254_v63  ;;  %v3222_v21 = vsel %vm3210_vm12, %v3189_v15, %v5255_v43  ;;  %v5598_v43 = vld [vmem:[#allocation3 + $0xf0] sm:$0xff]  ;;  %v5599_v63 = vld [vmem:[#allocation3 + $0xe8] sm:$0xff] }
 0x2ce   : > { %5537 = vrot.lane.b32.xlu0 %v5536_v57, %s5689_s8  ;;  %v3287_v45 = vsel %vm297_vm3, %v5596_v18, %v5225_v10  ;;  %v5229_v53 = vunpack.i.l.bf16 %v8135_v19  ;;  %v3286_v16 = vsel %vm297_vm3, %v5597_v12, %v5224_v4  ;;  %v5270_v9 = vunpack.i.h.bf16 %v5268_v60 }
 0x2cf   : > { %4357 = vmatmul.mubr.msk.bf16.gmra.mrb[56].mxu0 %vm297_vm3, %v3407_v13  ;;  %v5269_v17 = vunpack.i.l.bf16 %v5268_v60  ;;  %v3419_v27 = vpack.c.bf16 %v2569_v39, %v2567_v30  ;;  %v3255_v57 = vsel %vm3243_vm13, %v3222_v21, %v5230_v46  ;;  %v5235_v19 = vunpack.i.h.bf16 %v8170_v58 }
 0x2d0   : > { %4360 = vmatprep.mubr.msk.bf16.mxu0 %vm297_vm3, %v3410_v8  ;;  %v8237_v59 = vpop.permute.xlu0 %5277  ;;  %3647 = vmatmul.mubr.bf16.gmra.mrb[12].mxu1 %v3384_v54  ;;  %v3254_v48 = vsel %vm3243_vm13, %v3221_v28, %v5229_v53  ;;  %v5234_v2 = vunpack.i.l.bf16 %v8170_v58  ;;  %v5260_v60 = vunpack.i.h.bf16 %v8203_v49  ;;  %v5259_v5 = vunpack.i.l.bf16 %v8203_v49 }
 0x2d1   : > { %v8239_v37 = vpop.permute.xlu1 %5272  ;;  %v5280_v41 = vunpack.i.h.bf16 %v8237_v59  ;;  %v5279_v62 = vunpack.i.l.bf16 %v8237_v59  ;;  %v3387_v20 = vpack.c.bf16 %v3255_v57, %v3254_v48  ;;  %v8981_v59 = vld [vmem:[#allocation42_spill] sm:$0xff]  ;;  %v3190_v0 = vsel %vm297_vm3, %v8982_v40, %v5204_v32  ;;  %v8983_v57 = vld [vmem:[#allocation9_spill] sm:$0xff] }
 0x2d2   : > { %5547 = vrot.lane.b32.xlu0 %v5546_v34, %s5690_s25  ;;  %v3191_v15 = vsel %vm297_vm3, %v8981_v59, %v5205_v6  ;;  %v3223_v28 = vsel %vm3210_vm12, %v3190_v0, %v5234_v2  ;;  %v5275_v12 = vunpack.i.h.bf16 %v8239_v37  ;;  %v8984_v2 = vld [vmem:[#allocation25_spill] sm:$0xff]  ;;  %s215_s25 = sand.u32 1, %s5670_s19  }
 0x2d3   : > { %v3224_v21 = vsel %vm3210_vm12, %v3191_v15, %v5235_v19  ;;  %s4080_s13 = sshll.u32 %s215_s25, 8  ;;  %s8698_s22 = scalar_lea.sflag [#allocation5], %s215_s25 }
 0x2d4   : > { %v8246_v31 = vpop.permute.xlu0 %5282  ;;  %v3193_v19 = vsel %vm297_vm3, %v8983_v57, %v5275_v12  ;;  %s8525_s14 = scalar_lea.vmem [#allocation4], %s4080_s13 }
 0x2d5   : > { %v8249_v42 = vpop.permute.xlu1 %5287  ;;  %v5284_v48 = vunpack.i.l.bf16 %v8246_v31  ;;  %s4014_s16 = sshll.u32 %s8525_s14, 4  ;;  %s8692_s16 = int_to_ptr.vmem [resolvable:$true] %s4014_s16 }
 0x2d6   : > { %s5616_s30 = scalar_lea.vmem %s8692_s16, 4096  ;;  %p5623_p0 = scmp.lt.s32.totalorder %s8692_s16, %s5621_s9 }
 0x2d7   : > { %4361 = vmatmul.mubr.msk.bf16.gmra.mrb[60].mxu0 %vm297_vm3, %v3413_v26  ;;  %p5617_p11 = scmp.ne.s32.totalorder %s8692_s16, %s5616_s30  ;;  %p5624_p1 = scmp.lt.s32.totalorder %s5622_s10, %s5616_s30 }
 0x2d8   : > { %4364 = vmatprep.mubr.msk.bf16.mxu0 %vm297_vm3, %v3416_v52  ;;  %v5298_v35 = vpop.permute.xlu0 %5297 }
 0x2d9   : > { %v5300_v44 = vunpack.i.h.bf16 %v5298_v35  ;;  %v5299_v24 = vunpack.i.l.bf16 %v5298_v35  ;;  %v8271_v25 = vpop.permute.xlu1 %5292  ;;  %p5618_p12 = pnand %p5617_p11, %p5761_p5  ;;  %p5625_p2 = por %p5624_p1, %p5623_p0 }
 0x2db   : > { %v3318_v56 = vsel %vm3210_vm12, %v3286_v16, %v5299_v24  ;;  %v3319_v38 = vsel %vm3210_vm12, %v3287_v45, %v5300_v44  ;;  %v5274_v16 = vunpack.i.l.bf16 %v8239_v37  ;;  %v5264_v37 = vunpack.i.l.bf16 %v8226_v61  ;;  %p5619_p13 = pneg %p5618_p12 }
 0x2dc   : > { %v5303_v33 = vpop.permute.xlu0 %5302  ;;  %v3350_v13 = vsel %vm3243_vm13, %v3318_v56, %v5269_v17  ;;  %v3351_v8 = vsel %vm3243_vm13, %v3319_v38, %v5270_v9  ;;  %v5285_v38 = vunpack.i.h.bf16 %v8246_v31 }
 0x2dd   : > { %v5305_v54 = vunpack.i.h.bf16 %v5303_v33  ;;  %v5304_v34 = vunpack.i.l.bf16 %v5303_v33  ;;  %v5308_v51 = vpop.permute.xlu1 %5307  ;;  %v3388_v22 = vpack.c.bf16 %v3351_v8, %v3350_v13  ;;  %v3192_v33 = vsel %vm297_vm3, %v8984_v2, %v5274_v16  ;;  %p5626_p3 = pnand %p5625_p2, %p5619_p13 }
 0x2de   : > { %v5310_v26 = vunpack.i.h.bf16 %v5308_v51  ;;  %v5309_v4 = vunpack.i.l.bf16 %v5308_v51  ;;  %v5265_v13 = vunpack.i.h.bf16 %v8226_v61  ;;  %v5289_v51 = vunpack.i.l.bf16 %v8249_v42 }
 0x2df   : > { %v3289_v58 = vsel %vm297_vm3, %v5598_v43, %v5305_v54  ;;  %v3288_v10 = vsel %vm297_vm3, %v5599_v63, %v5304_v34  ;;  %3654 = vmatprep.mubr.bf16.mxu1 %v3388_v22  ;;  %4365 = vmatmul.mubr.msk.bf16.gmra.mrb[64].mxu0 %vm297_vm3, %v3419_v27  ;;  %v5290_v34 = vunpack.i.h.bf16 %v8249_v42 }
 0x2e0   : > { %v8289_v52 = vpop.permute.xlu0 %5317  ;;  %3655 = vmatmul.mubr.bf16.gmra.mrb[16].mxu1 %v3387_v20  ;;  %v3320_v49 = vsel %vm3210_vm12, %v3288_v10, %v5279_v62  ;;  %v3321_v55 = vsel %vm3210_vm12, %v3289_v58, %v5280_v41  ;;  %v3256_v18 = vsel %vm3243_vm13, %v3223_v28, %v5309_v4  ;;  %v3257_v45 = vsel %vm3243_vm13, %v3224_v21, %v5310_v26  ;;  %v5600_v41 = vld [vmem:[#allocation3 + $0x110] sm:$0xff]  ;;  %v5601_v20 = vld [vmem:[#allocation3 + $0x108] sm:$0xff] }
 0x2e1   : > { %v5313_v30 = vpop.permute.xlu1 %5312  ;;  %v3352_v39 = vsel %vm3243_vm13, %v3320_v49, %v5259_v5  ;;  %v3353_v46 = vsel %vm3243_vm13, %v3321_v55, %v5260_v60  ;;  %v3390_v44 = vpack.c.bf16 %v3257_v45, %v3256_v18  ;;  %v3291_v62 = vsel %vm297_vm3, %v5600_v41, %v5285_v38  ;;  %v5602_v45 = vld [vmem:[#allocation3 + $0x130] sm:$0xff] }
 0x2e2   : > { %v3391_v35 = vpack.c.bf16 %v3353_v46, %v3352_v39  ;;  %v5315_v9 = vunpack.i.h.bf16 %v5313_v30  ;;  %v5314_v17 = vunpack.i.l.bf16 %v5313_v30  ;;  %v3290_v43 = vsel %vm297_vm3, %v5601_v20, %v5284_v48  ;;  %v8986_v48 = vld [vmem:[#allocation10_spill] sm:$0xff] }
 0x2e3   : > { %v5295_v4 = vunpack.i.h.bf16 %v8271_v25  ;;  %v5294_v49 = vunpack.i.l.bf16 %v8271_v25  ;;  %v5320_v40 = vunpack.i.h.bf16 %v8289_v52  ;;  %v5319_v28 = vunpack.i.l.bf16 %v8289_v52  ;;  %v5603_v25 = vld [vmem:[#allocation3 + $0x128] sm:$0xff]  ;;  %v8985_v52 = vld [vmem:[#allocation38_spill] sm:$0xff] }
 0x2e4   : > { %v5328_v53 = vpop.permute.xlu0 %5327  ;;  %3662 = vmatprep.mubr.bf16.mxu1 %v3391_v35  ;;  %v3225_v8 = vsel %vm3210_vm12, %v3192_v33, %v5314_v17  ;;  %v3226_v60 = vsel %vm3210_vm12, %v3193_v19, %v5315_v9  ;;  %v3194_v57 = vsel %vm297_vm3, %v8986_v48, %v5264_v37 }
 0x2e5   : > { %v8303_v6 = vpop.permute.xlu1 %5322  ;;  %v5330_v61 = vunpack.i.h.bf16 %v5328_v53  ;;  %v5329_v58 = vunpack.i.l.bf16 %v5328_v53  ;;  %v3258_v26 = vsel %vm3243_vm13, %v3225_v8, %v5289_v51  ;;  %v3259_v42 = vsel %vm3243_vm13, %v3226_v60, %v5290_v34 }
 0x2e6   : > { %v3393_v18 = vpack.c.bf16 %v3259_v42, %v3258_v26  ;;  %v3227_v8 = vsel %vm3210_vm12, %v3194_v57, %v5294_v49  ;;  %v8987_v42 = vld [vmem:[#allocation20_spill] sm:$0xff]  ;;  %v8988_v49 = vld [vmem:[#allocation29_spill] sm:$0xff] }
 0x2e8   : > { %v5338_v32 = vpop.permute.xlu0 %5337  ;;  %3663 = vmatmul.mubr.bf16.gmra.mrb[20].mxu1 %v3390_v44 }
 0x2e9   : > { %v8305_v24 = vpop.permute.xlu1 %5332  ;;  %v5340_v21 = vunpack.i.h.bf16 %v5338_v32  ;;  %v5339_v35 = vunpack.i.l.bf16 %v5338_v32  ;;  %v3195_v32 = vsel %vm297_vm3, %v8985_v52, %v5265_v13 }
 0x2ea   : > { %v3228_v60 = vsel %vm3210_vm12, %v3195_v32, %v5295_v4  ;;  %v5334_v20 = vunpack.i.l.bf16 %v8305_v24 }
 0x2ec   : > { %v8309_v27 = vpop.permute.xlu0 %5342 }
 0x2ed   : > { %v8311_v56 = vpop.permute.xlu1 %5347  ;;  %v5344_v26 = vunpack.i.l.bf16 %v8309_v27 }
 0x2f0   : > { %v5358_v54 = vpop.permute.xlu0 %5357 }
 0x2f1   : > { %v5360_v31 = vunpack.i.h.bf16 %v5358_v54  ;;  %v5359_v22 = vunpack.i.l.bf16 %v5358_v54  ;;  %v8325_v5 = vpop.permute.xlu1 %5352 }
 0x2f3   : > { %v3322_v63 = vsel %vm3210_vm12, %v3290_v43, %v5359_v22  ;;  %v3323_v10 = vsel %vm3210_vm12, %v3291_v62, %v5360_v31  ;;  %v5335_v62 = vunpack.i.h.bf16 %v8305_v24  ;;  %v5324_v24 = vunpack.i.l.bf16 %v8303_v6 }
 0x2f4   : > { %v5363_v55 = vpop.permute.xlu0 %5362  ;;  %v3354_v59 = vsel %vm3243_vm13, %v3322_v63, %v5329_v58  ;;  %v3355_v15 = vsel %vm3243_vm13, %v3323_v10, %v5330_v61  ;;  %v5345_v10 = vunpack.i.h.bf16 %v8309_v27 }
 0x2f5   : > { %v5365_v0 = vunpack.i.h.bf16 %v5363_v55  ;;  %v5364_v30 = vunpack.i.l.bf16 %v5363_v55  ;;  %v5368_v39 = vpop.permute.xlu1 %5367  ;;  %v3394_v46 = vpack.c.bf16 %v3355_v15, %v3354_v59  ;;  %v3197_v4 = vsel %vm297_vm3, %v8987_v42, %v5335_v62 }
 0x2f6   : > { %v5370_v12 = vunpack.i.h.bf16 %v5368_v39  ;;  %v5369_v16 = vunpack.i.l.bf16 %v5368_v39  ;;  %v3196_v55 = vsel %vm297_vm3, %v8988_v49, %v5334_v20  ;;  %v5325_v59 = vunpack.i.h.bf16 %v8303_v6 }
 0x2f7   : > { %v3293_v53 = vsel %vm297_vm3, %v5602_v45, %v5365_v0  ;;  %v3292_v44 = vsel %vm297_vm3, %v5603_v25, %v5364_v30  ;;  %3670 = vmatprep.mubr.bf16.mxu1 %v3394_v46  ;;  %v5350_v30 = vunpack.i.h.bf16 %v8311_v56  ;;  %v5349_v39 = vunpack.i.l.bf16 %v8311_v56 }
 0x2f8   : > { %v8341_v9 = vpop.permute.xlu0 %5377  ;;  %3671 = vmatmul.mubr.bf16.gmra.mrb[24].mxu1 %v3393_v18  ;;  %v3324_v17 = vsel %vm3210_vm12, %v3292_v44, %v5339_v35  ;;  %v3325_v38 = vsel %vm3210_vm12, %v3293_v53, %v5340_v21  ;;  %v3260_v34 = vsel %vm3243_vm13, %v3227_v8, %v5369_v16  ;;  %v3261_v51 = vsel %vm3243_vm13, %v3228_v60, %v5370_v12  ;;  %v5604_v21 = vld [vmem:[#allocation3 + $0x150] sm:$0xff]  ;;  %v5605_v18 = vld [vmem:[#allocation3 + $0x148] sm:$0xff] }
 0x2f9   : > { %v5373_v19 = vpop.permute.xlu1 %5372  ;;  %v3356_v2 = vsel %vm3243_vm13, %v3324_v17, %v5319_v28  ;;  %v3357_v33 = vsel %vm3243_vm13, %v3325_v38, %v5320_v40  ;;  %v3396_v22 = vpack.c.bf16 %v3261_v51, %v3260_v34  ;;  %v3295_v35 = vsel %vm297_vm3, %v5604_v21, %v5345_v10  ;;  %v5606_v51 = vld [vmem:[#allocation3 + $0x170] sm:$0xff] }
 0x2fa   : > { %v3397_v54 = vpack.c.bf16 %v3357_v33, %v3356_v2  ;;  %v5375_v43 = vunpack.i.h.bf16 %v5373_v19  ;;  %v5374_v61 = vunpack.i.l.bf16 %v5373_v19  ;;  %v3294_v45 = vsel %vm297_vm3, %v5605_v18, %v5344_v26  ;;  %v8990_v26 = vld [vmem:[#allocation16_spill] sm:$0xff] }
 0x2fb   : > { %v5355_v16 = vunpack.i.h.bf16 %v8325_v5  ;;  %v5354_v17 = vunpack.i.l.bf16 %v8325_v5  ;;  %v5380_v48 = vunpack.i.h.bf16 %v8341_v9  ;;  %v5379_v8 = vunpack.i.l.bf16 %v8341_v9  ;;  %v5607_v5 = vld [vmem:[#allocation3 + $0x168] sm:$0xff]  ;;  %v8989_v9 = vld [vmem:[#allocation13_spill] sm:$0xff] }
 0x2fc   : > { %v5388_v31 = vpop.permute.xlu0 %5387  ;;  %3678 = vmatprep.mubr.bf16.mxu1 %v3397_v54  ;;  %v3229_v15 = vsel %vm3210_vm12, %v3196_v55, %v5374_v61  ;;  %v3230_v40 = vsel %vm3210_vm12, %v3197_v4, %v5375_v43  ;;  %v3198_v42 = vsel %vm297_vm3, %v8990_v26, %v5324_v24 }
 0x2fd   : > { %v8355_v13 = vpop.permute.xlu1 %5382  ;;  %v5390_v6 = vunpack.i.h.bf16 %v5388_v31  ;;  %v5389_v53 = vunpack.i.l.bf16 %v5388_v31  ;;  %v3262_v12 = vsel %vm3243_vm13, %v3229_v15, %v5349_v39  ;;  %v3263_v56 = vsel %vm3243_vm13, %v3230_v40, %v5350_v30 }
 0x2fe   : > { %v3399_v34 = vpack.c.bf16 %v3263_v56, %v3262_v12  ;;  %v3231_v15 = vsel %vm3210_vm12, %v3198_v42, %v5354_v17  ;;  %v5385_v17 = vunpack.i.h.bf16 %v8355_v13 }
 0x300   : > { %v5398_v37 = vpop.permute.xlu0 %5397  ;;  %3679 = vmatmul.mubr.bf16.gmra.mrb[28].mxu1 %v3396_v22 }
 0x301   : > { %v8357_v41 = vpop.permute.xlu1 %5392  ;;  %v5400_v60 = vunpack.i.h.bf16 %v5398_v37  ;;  %v5399_v54 = vunpack.i.l.bf16 %v5398_v37  ;;  %v3199_v37 = vsel %vm297_vm3, %v8989_v9, %v5325_v59 }
 0x302   : > { %v3232_v40 = vsel %vm3210_vm12, %v3199_v37, %v5355_v16  ;;  %v5394_v18 = vunpack.i.l.bf16 %v8357_v41 }
 0x304   : > { %v8361_v58 = vpop.permute.xlu0 %5402  ;;  %v3200_v16 = vsel %vm297_vm3, %v7841_v3, %v5394_v18  ;;  %v5609_v3 = vld [vmem:[#allocation3 + $0x188] sm:$0xff]  ;;  %v8992_v18 = vld [vmem:[#allocation21_spill] sm:$0xff] }
 0x305   : > { %v8363_v63 = vpop.permute.xlu1 %5407  ;;  %v5404_v12 = vunpack.i.l.bf16 %v8361_v58 }
 0x308   : > { %v5418_v0 = vpop.permute.xlu0 %5417 }
 0x309   : > { %v5420_v27 = vunpack.i.h.bf16 %v5418_v0  ;;  %v5419_v46 = vunpack.i.l.bf16 %v5418_v0  ;;  %v8377_v28 = vpop.permute.xlu1 %5412 }
 0x30b   : > { %v3326_v25 = vsel %vm3210_vm12, %v3294_v45, %v5419_v46  ;;  %v3327_v44 = vsel %vm3210_vm12, %v3295_v35, %v5420_v27  ;;  %v5395_v35 = vunpack.i.h.bf16 %v8357_v41  ;;  %v5384_v41 = vunpack.i.l.bf16 %v8355_v13 }
 0x30c   : > { %v5423_v38 = vpop.permute.xlu0 %5422  ;;  %v3358_v52 = vsel %vm3243_vm13, %v3326_v25, %v5389_v53  ;;  %v3359_v32 = vsel %vm3243_vm13, %v3327_v44, %v5390_v6  ;;  %v5405_v44 = vunpack.i.h.bf16 %v8361_v58 }
 0x30d   : > { %v5425_v57 = vunpack.i.h.bf16 %v5423_v38  ;;  %v5424_v19 = vunpack.i.l.bf16 %v5423_v38  ;;  %v5428_v2 = vpop.permute.xlu1 %5427  ;;  %v3400_v33 = vpack.c.bf16 %v3359_v32, %v3358_v52  ;;  %v3201_v56 = vsel %vm297_vm3, %v7851_v14, %v5395_v35  ;;  %v5608_v14 = vld [vmem:[#allocation3 + $0x190] sm:$0xff]  ;;  %v8991_v35 = vld [vmem:[#allocation28_spill] sm:$0xff] }
 0x30e   : > { %v5430_v62 = vunpack.i.h.bf16 %v5428_v2  ;;  %v5429_v20 = vunpack.i.l.bf16 %v5428_v2 }
 0x30f   : > { %v3297_v31 = vsel %vm297_vm3, %v5606_v51, %v5425_v57  ;;  %v3296_v22 = vsel %vm297_vm3, %v5607_v5, %v5424_v19  ;;  %3686 = vmatprep.mubr.bf16.mxu1 %v3400_v33  ;;  %v5409_v57 = vunpack.i.l.bf16 %v8363_v63  ;;  %v3299_v33 = vsel %vm297_vm3, %v5608_v14, %v5405_v44 }
 0x310   : > { %v8393_v43 = vpop.permute.xlu0 %5437  ;;  %3687 = vmatmul.mubr.bf16.gmra.mrb[32].mxu1 %v3399_v34  ;;  %v3328_v61 = vsel %vm3210_vm12, %v3296_v22, %v5399_v54  ;;  %v3329_v10 = vsel %vm3210_vm12, %v3297_v31, %v5400_v60  ;;  %v3264_v30 = vsel %vm3243_vm13, %v3231_v15, %v5429_v20  ;;  %v3265_v39 = vsel %vm3243_vm13, %v3232_v40, %v5430_v62  ;;  %v5610_v40 = vld [vmem:[#allocation3 + $0x1b0] sm:$0xff] }
 0x311   : > { %v5433_v4 = vpop.permute.xlu1 %5432  ;;  %v3360_v49 = vsel %vm3243_vm13, %v3328_v61, %v5379_v8  ;;  %v3361_v55 = vsel %vm3243_vm13, %v3329_v10, %v5380_v48  ;;  %v3402_v46 = vpack.c.bf16 %v3265_v39, %v3264_v30  ;;  %v5410_v48 = vunpack.i.h.bf16 %v8363_v63  ;;  %v5611_v30 = vld [vmem:[#allocation3 + $0x1a8] sm:$0xff] }
 0x312   : > { %v3403_v0 = vpack.c.bf16 %v3361_v55, %v3360_v49  ;;  %v5435_v45 = vunpack.i.h.bf16 %v5433_v4  ;;  %v5434_v6 = vunpack.i.l.bf16 %v5433_v4  ;;  %v3298_v8 = vsel %vm297_vm3, %v5609_v3, %v5404_v12 }
 0x313   : > { %v5415_v63 = vunpack.i.h.bf16 %v8377_v28  ;;  %v5414_v5 = vunpack.i.l.bf16 %v8377_v28  ;;  %v5440_v61 = vunpack.i.h.bf16 %v8393_v43  ;;  %v5439_v42 = vunpack.i.l.bf16 %v8393_v43 }
 0x314   : > { %v5443_v27 = vpop.permute.xlu0 %5442  ;;  %3694 = vmatprep.mubr.bf16.mxu1 %v3403_v0  ;;  %v3233_v38 = vsel %vm3210_vm12, %v3200_v16, %v5434_v6  ;;  %v3234_v52 = vsel %vm3210_vm12, %v3201_v56, %v5435_v45  ;;  %v3202_v45 = vsel %vm297_vm3, %v8992_v18, %v5384_v41 }
 0x315   : > { %v8407_v59 = vpop.permute.xlu1 %5447  ;;  %v5445_v60 = vunpack.i.h.bf16 %v5443_v27  ;;  %v5444_v13 = vunpack.i.l.bf16 %v5443_v27  ;;  %v3266_v51 = vsel %vm3243_vm13, %v3233_v38, %v5409_v57  ;;  %v3267_v31 = vsel %vm3243_vm13, %v3234_v52, %v5410_v48 }
 0x316   : > { %v3405_v55 = vpack.c.bf16 %v3267_v31, %v3266_v51  ;;  %v3235_v12 = vsel %vm3210_vm12, %v3202_v45, %v5414_v5  ;;  %v5450_v38 = vunpack.i.h.bf16 %v8407_v59  ;;  %v5449_v52 = vunpack.i.l.bf16 %v8407_v59 }
 0x318   : > { %v5453_v24 = vpop.permute.xlu0 %5452  ;;  %3695 = vmatmul.mubr.bf16.gmra.mrb[36].mxu1 %v3402_v46  ;;  %v3205_v3 = vsel %vm297_vm3, %v7961_v23, %v5450_v38  ;;  %v3204_v59 = vsel %vm297_vm3, %v7979_v50, %v5449_v52 }
 0x319   : > { %v8409_v21 = vpop.permute.xlu1 %5462  ;;  %v5455_v4 = vunpack.i.h.bf16 %v5453_v24  ;;  %v5454_v49 = vunpack.i.l.bf16 %v5453_v24  ;;  %v3203_v24 = vsel %vm297_vm3, %v8991_v35, %v5385_v17 }
 0x31a   : > { %v3236_v56 = vsel %vm3210_vm12, %v3203_v24, %v5415_v63  ;;  %v5613_v63 = vld [vmem:[#allocation3 + $0x1c8] sm:$0xff] }
 0x31c   : > { %v8413_v53 = vpop.permute.xlu0 %5457 }
 0x31d   : > { %v8415_v25 = vpop.permute.xlu1 %5477  ;;  %v5459_v14 = vunpack.i.l.bf16 %v8413_v53 }
 0x31e   : > { %v5480_v15 = vunpack.i.h.bf16 %v8415_v25  ;;  %v5479_v28 = vunpack.i.l.bf16 %v8415_v25 }
 0x31f   : > { %v3302_v23 = vsel %vm297_vm3, %v5613_v63, %v5459_v14  ;;  %v5615_v63 = vld [vmem:[#allocation3 + $0x208] sm:$0xff] }
 0x320   : > { %v5468_v32 = vpop.permute.xlu0 %5467  ;;  %v3268_v17 = vsel %vm3243_vm13, %v3235_v12, %v5479_v28 }
 0x321   : > { %v5470_v58 = vunpack.i.h.bf16 %v5468_v32  ;;  %v5469_v19 = vunpack.i.l.bf16 %v5468_v32  ;;  %v5483_v2 = vpop.permute.xlu1 %5482  ;;  %v3269_v32 = vsel %vm3243_vm13, %v3236_v56, %v5480_v15 }
 0x322   : > { %v5485_v41 = vunpack.i.h.bf16 %v5483_v2  ;;  %v5484_v48 = vunpack.i.l.bf16 %v5483_v2  ;;  %v5465_v2 = vunpack.i.h.bf16 %v8409_v21 }
 0x323   : > { %v3330_v54 = vsel %vm3210_vm12, %v3298_v8, %v5469_v19  ;;  %v3331_v34 = vsel %vm3210_vm12, %v3299_v33, %v5470_v58  ;;  %v5460_v19 = vunpack.i.h.bf16 %v8413_v53  ;;  %v3408_v33 = vpack.c.bf16 %v3269_v32, %v3268_v17  ;;  %v5612_v53 = vld [vmem:[#allocation3 + $0x1d0] sm:$0xff] }
 0x324   : > { %v5473_v22 = vpop.permute.xlu0 %5472  ;;  %v3362_v62 = vsel %vm3243_vm13, %v3330_v54, %v5444_v13  ;;  %v3363_v20 = vsel %vm3243_vm13, %v3331_v34, %v5445_v60  ;;  %v3237_v8 = vsel %vm3210_vm12, %v3204_v59, %v5484_v48  ;;  %v3238_v60 = vsel %vm3210_vm12, %v3205_v3, %v5485_v41 }
 0x325   : > { %v5475_v10 = vunpack.i.h.bf16 %v5473_v22  ;;  %v5474_v9 = vunpack.i.l.bf16 %v5473_v22  ;;  %v8440_v37 = vpop.permute.xlu1 %5487  ;;  %v3406_v26 = vpack.c.bf16 %v3363_v20, %v3362_v62  ;;  %v5464_v54 = vunpack.i.l.bf16 %v8409_v21 }
 0x326   : > { %v3303_v31 = vsel %vm297_vm3, %v5612_v53, %v5460_v19  ;;  %v5490_v21 = vunpack.i.h.bf16 %v8440_v37  ;;  %v5614_v53 = vld [vmem:[#allocation3 + $0x210] sm:$0xff] }
 0x327   : > { %v3301_v0 = vsel %vm297_vm3, %v5610_v40, %v5475_v10  ;;  %v3300_v39 = vsel %vm297_vm3, %v5611_v30, %v5474_v9  ;;  %3702 = vmatprep.mubr.bf16.mxu1 %v3406_v26  ;;  %v3271_v10 = vsel %vm3243_vm13, %v3238_v60, %v5465_v2 }
 0x328   : > { %v5498_v27 = vpop.permute.xlu0 %5497  ;;  %3703 = vmatmul.mubr.bf16.gmra.mrb[40].mxu1 %v3405_v55  ;;  %v3332_v46 = vsel %vm3210_vm12, %v3300_v39, %v5454_v49  ;;  %v3333_v43 = vsel %vm3210_vm12, %v3301_v0, %v5455_v4  ;;  %v5489_v4 = vunpack.i.l.bf16 %v8440_v37  ;;  %v3207_v24 = vsel %vm297_vm3, %v7928_v47, %v5490_v21 }
 0x329   : > { %v8453_v6 = vpop.permute.xlu1 %5492  ;;  %v3364_v25 = vsel %vm3243_vm13, %v3332_v46, %v5439_v42  ;;  %v3365_v44 = vsel %vm3243_vm13, %v3333_v43, %v5440_v61  ;;  %v5500_v5 = vunpack.i.h.bf16 %v5498_v27  ;;  %v5499_v50 = vunpack.i.l.bf16 %v5498_v27 }
 0x32a   : > { %v3409_v16 = vpack.c.bf16 %v3365_v44, %v3364_v25  ;;  %v3270_v61 = vsel %vm3243_vm13, %v3237_v8, %v5464_v54  ;;  %v5495_v28 = vunpack.i.h.bf16 %v8453_v6  ;;  %v5494_v40 = vunpack.i.l.bf16 %v8453_v6 }
 0x32b   : > { %v3411_v0 = vpack.c.bf16 %v3271_v10, %v3270_v61  ;;  %v3206_v18 = vsel %vm297_vm3, %v7942_v36, %v5489_v4 }
 0x32c   : > { %v5503_v57 = vpop.permute.xlu0 %5502  ;;  %3710 = vmatprep.mubr.bf16.mxu1 %v3409_v16  ;;  %v3239_v44 = vsel %vm3210_vm12, %v3206_v18, %v5494_v40 }
 0x32d   : > { %v5523_v58 = vpop.permute.xlu1 %5522  ;;  %v5505_v43 = vunpack.i.h.bf16 %v5503_v57  ;;  %v5504_v35 = vunpack.i.l.bf16 %v5503_v57 }
 0x32e   : > { %v5525_v30 = vunpack.i.h.bf16 %v5523_v58  ;;  %v5524_v39 = vunpack.i.l.bf16 %v5523_v58 }
 0x330   : > { %v5508_v13 = vpop.permute.xlu0 %5507  ;;  %3711 = vmatmul.mubr.bf16.gmra.mrb[44].mxu1 %v3408_v33  ;;  %v3272_v47 = vsel %vm3243_vm13, %v3239_v44, %v5524_v39 }
 0x331   : > { %v5510_v34 = vunpack.i.h.bf16 %v5508_v13  ;;  %v5509_v51 = vunpack.i.l.bf16 %v5508_v13  ;;  %v5533_v20 = vpop.permute.xlu1 %5532 }
 0x332   : > { %v5535_v32 = vunpack.i.h.bf16 %v5533_v20  ;;  %v5534_v41 = vunpack.i.l.bf16 %v5533_v20 }
 0x333   : > { %v3334_v22 = vsel %vm3210_vm12, %v3302_v23, %v5509_v51  ;;  %v3335_v62 = vsel %vm3210_vm12, %v3303_v31, %v5510_v34 }
 0x334   : > { %v5513_v9 = vpop.permute.xlu0 %5512  ;;  %v3366_v26 = vsel %vm3243_vm13, %v3334_v22, %v5499_v50  ;;  %v3367_v42 = vsel %vm3243_vm13, %v3335_v62, %v5500_v5  ;;  %v3209_v13 = vsel %vm297_vm3, %v8081_v7, %v5535_v32  ;;  %v3208_v2 = vsel %vm297_vm3, %v8094_v11, %v5534_v41 }
 0x335   : > { %v5515_v49 = vunpack.i.h.bf16 %v5513_v9  ;;  %v5514_v55 = vunpack.i.l.bf16 %v5513_v9  ;;  %v3412_v15 = vpack.c.bf16 %v3367_v42, %v3366_v26  ;;  %v5543_v45 = vpop.permute.xlu1 %5542 }
 0x336   : > { %v5545_v57 = vunpack.i.h.bf16 %v5543_v45  ;;  %v5544_v58 = vunpack.i.l.bf16 %v5543_v45 }
 0x337   : > { %v3305_v27 = vsel %vm297_vm3, %v8026_v1, %v5515_v49  ;;  %v3304_v46 = vsel %vm297_vm3, %v8044_v29, %v5514_v55  ;;  %3718 = vmatprep.mubr.bf16.mxu1 %v3412_v15  ;;  %v3240_v1 = vsel %vm3210_vm12, %v3207_v24, %v5495_v28  ;;  %v8518_v15 = vld [vmem:[%s8744_s4] ss:$0 sm:$0xff] }
 0x338   : > { %v5518_v37 = vpop.permute.xlu0 %5517  ;;  %3719 = vmatmul.mubr.bf16.gmra.mrb[48].mxu1 %v3411_v0  ;;  %v3336_v29 = vsel %vm3210_vm12, %v3304_v46, %v5504_v35  ;;  %v3337_v12 = vsel %vm3210_vm12, %v3305_v27, %v5505_v43  ;;  %v3273_v38 = vsel %vm3243_vm13, %v3240_v1, %v5525_v30  ;;  %v3241_v54 = vsel %vm3210_vm12, %v3208_v2, %v5544_v58 }
 0x339   : > { %v5520_v6 = vunpack.i.h.bf16 %v5518_v37  ;;  %v5519_v25 = vunpack.i.l.bf16 %v5518_v37  ;;  %v3414_v17 = vpack.c.bf16 %v3273_v38, %v3272_v47  ;;  %v5553_v48 = vpop.permute.xlu1 %5552  ;;  %v3242_v34 = vsel %vm3210_vm12, %v3209_v13, %v5545_v57 }
 0x33a   : > { %v5555_v3 = vunpack.i.h.bf16 %v5553_v48  ;;  %v5554_v59 = vunpack.i.l.bf16 %v5553_v48 }
 0x33b   : > { %v3368_v56 = vsel %vm3243_vm13, %v3336_v29, %v5519_v25  ;;  %v3369_v16 = vsel %vm3243_vm13, %v3337_v12, %v5520_v6 }
 0x33c   : > { %v5528_v36 = vpop.permute.xlu0 %5527  ;;  %v3415_v52 = vpack.c.bf16 %v3369_v16, %v3368_v56  ;;  %v3274_v11 = vsel %vm3243_vm13, %v3241_v54, %v5554_v59  ;;  %v3275_v62 = vsel %vm3243_vm13, %v3242_v34, %v5555_v3 }
 0x33d   : > { %v5530_v14 = vunpack.i.h.bf16 %v5528_v36  ;;  %v5529_v33 = vunpack.i.l.bf16 %v5528_v36  ;;  %v3417_v21 = vpack.c.bf16 %v3275_v62, %v3274_v11 }
 0x33e   : > { %3726 = vmatprep.mubr.bf16.mxu1 %v3415_v52 }
 0x33f   : > { %v3307_v31 = vsel %vm297_vm3, %v5614_v53, %v5530_v14  ;;  %v3306_v23 = vsel %vm297_vm3, %v5615_v63, %v5529_v33 }
 0x340   : > { %v5538_v19 = vpop.permute.xlu0 %5537  ;;  %3727 = vmatmul.mubr.bf16.gmra.mrb[52].mxu1 %v3414_v17 }
 0x341   : > { %v5540_v8 = vunpack.i.h.bf16 %v5538_v19  ;;  %v5539_v60 = vunpack.i.l.bf16 %v5538_v19 }
 0x343   : > { %v3338_v22 = vsel %vm3210_vm12, %v3306_v23, %v5539_v60  ;;  %v3339_v7 = vsel %vm3210_vm12, %v3307_v31, %v5540_v8 }
 0x344   : > { %v5548_v51 = vpop.permute.xlu0 %5547 }
 0x345   : > { %v5550_v5 = vunpack.i.h.bf16 %v5548_v51  ;;  %v5549_v50 = vunpack.i.l.bf16 %v5548_v51 }
 0x347   : > { %v3370_v20 = vsel %vm3243_vm13, %v3338_v22, %v5549_v50  ;;  %v3371_v61 = vsel %vm3243_vm13, %v3339_v7, %v5550_v5 }
 0x348   : > { %v3418_v10 = vpack.c.bf16 %v3371_v61, %v3370_v20 }
 0x34a   : > { %3734 = vmatprep.mubr.bf16.mxu1 %v3418_v10 }
 0x34b   : > { %3735 = vmatmul.mubr.bf16.gmra.mrb[56].mxu1 %v3417_v21 }
 0x372   : > { %v4180_v9 = vpop.f32.mrb[32].mxu0 }
 0x373   : > { %v4181_v26 = vpop.f32.mrb[33].mxu0 }
 0x374   : > { %v4182_v42 = vadd.f32 %v4181_v26, %v4180_v9  ;;  %v4183_v4 = vpop.f32.mrb[34].mxu0 }
 0x375   : > { %v4184_v49 = vpop.f32.mrb[35].mxu0 }
 0x376   : > { %v4185_v55 = vadd.f32 %v4184_v49, %v4183_v4  ;;  %v3617_v40 = vadd.f32 %v4182_v42, %v8518_v15 }
 0x378   : > { %v3620_v27 = vadd.f32 %v4185_v55, %v8518_v15 }
 0x37a   : > { %v4338_v28 = vpop.f32.mrb[36].mxu0 }
 0x37b   : > { %v3777_v0 = vpop.f32.mrb[37].mxu0 }
 0x37c   : > { %v3778_v30 = vadd.f32 %v3777_v0, %v3617_v40  ;;  %v4339_v39 = vpop.f32.mrb[38].mxu0 }
 0x37d   : > { %v3780_v46 = vpop.f32.mrb[39].mxu0 }
 0x37e   : > { %v3904_v43 = vmul.f32 0.01, %v3778_v30  ;;  %v3781_v35 = vadd.f32 %v3780_v46, %v3620_v27 }
 0x380   : > { %v3936_v37 = vmax.f32 %v3778_v30, %v3904_v43  ;;  %v3905_v24 = vmul.f32 0.01, %v3781_v35 }
 0x382   : > { %3968 = vst.msk [vmem:[%s8525_s14] sm:$0xff] %vm297_vm3, %v3936_v37  ;;  %v3937_v18 = vmax.f32 %v3781_v35, %v3905_v24  ;;  %v4342_v45 = vpop.f32.mrb[40].mxu0 }
 0x383   : > { %v3793_v6 = vpop.f32.mrb[41].mxu0  ;;  %v4186_v25 = vpop.f32.mrb[0].mxu1 }
 0x384   : > { %3969 = vst.msk [vmem:[%s8525_s14 + $0x8] sm:$0xff] %vm297_vm3, %v3937_v18  ;;  %v4343_v44 = vpop.f32.mrb[42].mxu0  ;;  %v4187_v1 = vpop.f32.mrb[1].mxu1 }
 0x385   : > { %v4188_v29 = vadd.f32 %v4187_v1, %v4186_v25  ;;  %v3796_v12 = vpop.f32.mrb[43].mxu0  ;;  %v4189_v56 = vpop.f32.mrb[2].mxu1 }
 0x386   : > { %v4190_v16 = vpop.f32.mrb[3].mxu1 }
 0x387   : > { %v3625_v47 = vadd.f32 %v4188_v29, %v8518_v15  ;;  %v4191_v38 = vadd.f32 %v4190_v16, %v4189_v56 }
 0x389   : > { %v3786_v36 = vadd.f32 %v4338_v28, %v3625_v47  ;;  %v3628_v52 = vadd.f32 %v4191_v38, %v8518_v15 }
 0x38a   : > { %v8533_v17 = vpop.f32.mrb[44].mxu0 }
 0x38b   : > { %v3906_v32 = vmul.f32 0.01, %v3786_v36  ;;  %v3789_v41 = vadd.f32 %v4339_v39, %v3628_v52  ;;  %v3809_v48 = vpop.f32.mrb[45].mxu0  ;;  %v4192_v57 = vpop.f32.mrb[4].mxu1 }
 0x38c   : > { %v8535_v58 = vpop.f32.mrb[46].mxu0  ;;  %v4193_v19 = vpop.f32.mrb[5].mxu1 }
 0x38d   : > { %v3938_v14 = vmax.f32 %v3786_v36, %v3906_v32  ;;  %v3907_v33 = vmul.f32 0.01, %v3789_v41  ;;  %v4194_v3 = vadd.f32 %v4193_v19, %v4192_v57  ;;  %v3812_v59 = vpop.f32.mrb[47].mxu0  ;;  %v4195_v8 = vpop.f32.mrb[6].mxu1 }
 0x38e   : > { %v4196_v60 = vpop.f32.mrb[7].mxu1 }
 0x38f   : > { %3970 = vst.msk [vmem:[%s8525_s14 + $0x10] sm:$0xff] %vm297_vm3, %v3938_v14  ;;  %v3939_v13 = vmax.f32 %v3789_v41, %v3907_v33  ;;  %v3633_v2 = vadd.f32 %v4194_v3, %v8518_v15  ;;  %v4197_v54 = vadd.f32 %v4196_v60, %v4195_v8 }
 0x391   : > { %3971 = vst.msk [vmem:[%s8525_s14 + $0x18] sm:$0xff] %vm297_vm3, %v3939_v13  ;;  %v3794_v34 = vadd.f32 %v3793_v6, %v3633_v2  ;;  %v3636_v51 = vadd.f32 %v4197_v54, %v8518_v15 }
 0x392   : > { %v8543_v53 = vpop.f32.mrb[48].mxu0 }
 0x393   : > { %v3908_v31 = vmul.f32 0.01, %v3794_v34  ;;  %v3797_v63 = vadd.f32 %v3796_v12, %v3636_v51  ;;  %v8545_v23 = vpop.f32.mrb[49].mxu0 }
 0x394   : > { %v8547_v5 = vpop.f32.mrb[50].mxu0 }
 0x395   : > { %v3940_v50 = vmax.f32 %v3794_v34, %v3908_v31  ;;  %v3909_v22 = vmul.f32 0.01, %v3797_v63  ;;  %v8549_v7 = vpop.f32.mrb[51].mxu0 }
 0x397   : > { %3972 = vst.msk [vmem:[%s8525_s14 + $0x20] sm:$0xff] %vm297_vm3, %v3940_v50  ;;  %v3941_v11 = vmax.f32 %v3797_v63, %v3909_v22 }
 0x399   : > { %3973 = vst.msk [vmem:[%s8525_s14 + $0x28] sm:$0xff] %vm297_vm3, %v3941_v11 }
 0x39a   : > { %v8555_v62 = vpop.f32.mrb[52].mxu0 }
 0x39b   : > { %v8557_v20 = vpop.f32.mrb[53].mxu0  ;;  %v4198_v61 = vpop.f32.mrb[8].mxu1 }
 0x39c   : > { %v8559_v10 = vpop.f32.mrb[54].mxu0  ;;  %v4199_v21 = vpop.f32.mrb[9].mxu1 }
 0x39d   : > { %v4200_v9 = vadd.f32 %v4199_v21, %v4198_v61  ;;  %v8561_v26 = vpop.f32.mrb[55].mxu0  ;;  %v4201_v42 = vpop.f32.mrb[10].mxu1 }
 0x39e   : > { %v4202_v4 = vpop.f32.mrb[11].mxu1 }
 0x39f   : > { %v3641_v49 = vadd.f32 %v4200_v9, %v8518_v15  ;;  %v4203_v55 = vadd.f32 %v4202_v4, %v4201_v42 }
 0x3a1   : > { %v3802_v28 = vadd.f32 %v4342_v45, %v3641_v49  ;;  %v3644_v40 = vadd.f32 %v4203_v55, %v8518_v15 }
 0x3a2   : > { %v8565_v0 = vpop.f32.mrb[56].mxu0 }
 0x3a3   : > { %v3910_v30 = vmul.f32 0.01, %v3802_v28  ;;  %v3805_v39 = vadd.f32 %v4343_v44, %v3644_v40  ;;  %v8567_v27 = vpop.f32.mrb[57].mxu0  ;;  %v4204_v46 = vpop.f32.mrb[12].mxu1 }
 0x3a4   : > { %v8569_v43 = vpop.f32.mrb[58].mxu0  ;;  %v4205_v35 = vpop.f32.mrb[13].mxu1 }
 0x3a5   : > { %v3942_v37 = vmax.f32 %v3802_v28, %v3910_v30  ;;  %v3911_v24 = vmul.f32 0.01, %v3805_v39  ;;  %v4206_v18 = vadd.f32 %v4205_v35, %v4204_v46  ;;  %v8571_v6 = vpop.f32.mrb[59].mxu0  ;;  %v4207_v25 = vpop.f32.mrb[14].mxu1 }
 0x3a6   : > { %v4208_v45 = vpop.f32.mrb[15].mxu1 }
 0x3a7   : > { %3974 = vst.msk [vmem:[%s8525_s14 + $0x30] sm:$0xff] %vm297_vm3, %v3942_v37  ;;  %v3943_v1 = vmax.f32 %v3805_v39, %v3911_v24  ;;  %v3649_v44 = vadd.f32 %v4206_v18, %v8518_v15  ;;  %v4209_v29 = vadd.f32 %v4208_v45, %v4207_v25 }
 0x3a9   : > { %3975 = vst.msk [vmem:[%s8525_s14 + $0x38] sm:$0xff] %vm297_vm3, %v3943_v1  ;;  %v3810_v12 = vadd.f32 %v3809_v48, %v3649_v44  ;;  %v3652_v56 = vadd.f32 %v4209_v29, %v8518_v15 }
 0x3aa   : > { %v8579_v16 = vpop.f32.mrb[60].mxu0 }
 0x3ab   : > { %v3912_v47 = vmul.f32 0.01, %v3810_v12  ;;  %v3813_v38 = vadd.f32 %v3812_v59, %v3652_v56  ;;  %v8581_v36 = vpop.f32.mrb[61].mxu0 }
 0x3ac   : > { %v8583_v52 = vpop.f32.mrb[62].mxu0 }
 0x3ad   : > { %v3944_v32 = vmax.f32 %v3810_v12, %v3912_v47  ;;  %v3913_v41 = vmul.f32 0.01, %v3813_v38  ;;  %v8585_v57 = vpop.f32.mrb[63].mxu0 }
 0x3af   : > { %3976 = vst.msk [vmem:[%s8525_s14 + $0x40] sm:$0xff] %vm297_vm3, %v3944_v32  ;;  %v3945_v19 = vmax.f32 %v3813_v38, %v3913_v41 }
 0x3b1   : > { %3977 = vst.msk [vmem:[%s8525_s14 + $0x48] sm:$0xff] %vm297_vm3, %v3945_v19 }
 0x3b2   : > { %v8591_v48 = vpop.f32.mrb[64].mxu0 }
 0x3b3   : > { %v4210_v14 = vpop.f32.mrb[16].mxu1  ;;  %v8593_v33 = vpop.f32.mrb[65].mxu0 }
 0x3b4   : > { %v4211_v3 = vpop.f32.mrb[17].mxu1  ;;  %v8595_v59 = vpop.f32.mrb[66].mxu0 }
 0x3b5   : > { %v4212_v8 = vadd.f32 %v4211_v3, %v4210_v14  ;;  %v4213_v60 = vpop.f32.mrb[18].mxu1  ;;  %v8597_v13 = vpop.f32.mrb[67].mxu0 }
 0x3b6   : > { %v4214_v2 = vpop.f32.mrb[19].mxu1 }
 0x3b7   : > { %v3657_v54 = vadd.f32 %v4212_v8, %v8518_v15  ;;  %v4215_v34 = vadd.f32 %v4214_v2, %v4213_v60 }
 0x3b9   : > { %v3818_v51 = vadd.f32 %v8533_v17, %v3657_v54  ;;  %v3660_v31 = vadd.f32 %v4215_v34, %v8518_v15 }
 0x3bb   : > { %v3914_v63 = vmul.f32 0.01, %v3818_v51  ;;  %v3821_v50 = vadd.f32 %v8535_v58, %v3660_v31  ;;  %v4216_v22 = vpop.f32.mrb[20].mxu1 }
 0x3bc   : > { %v4217_v11 = vpop.f32.mrb[21].mxu1 }
 0x3bd   : > { %v3946_v61 = vmax.f32 %v3818_v51, %v3914_v63  ;;  %v3915_v21 = vmul.f32 0.01, %v3821_v50  ;;  %v4218_v9 = vadd.f32 %v4217_v11, %v4216_v22  ;;  %v4219_v42 = vpop.f32.mrb[22].mxu1 }
 0x3be   : > { %v4220_v4 = vpop.f32.mrb[23].mxu1 }
 0x3bf   : > { %3978 = vst.msk [vmem:[%s8525_s14 + $0x50] sm:$0xff] %vm297_vm3, %v3946_v61  ;;  %v3947_v49 = vmax.f32 %v3821_v50, %v3915_v21  ;;  %v3665_v55 = vadd.f32 %v4218_v9, %v8518_v15  ;;  %v4221_v17 = vadd.f32 %v4220_v4, %v4219_v42 }
 0x3c1   : > { %3979 = vst.msk [vmem:[%s8525_s14 + $0x58] sm:$0xff] %vm297_vm3, %v3947_v49  ;;  %v3826_v28 = vadd.f32 %v8545_v23, %v3665_v55  ;;  %v3668_v58 = vadd.f32 %v4221_v17, %v8518_v15 }
 0x3c3   : > { %v3916_v40 = vmul.f32 0.01, %v3826_v28  ;;  %v3829_v30 = vadd.f32 %v8549_v7, %v3668_v58 }
 0x3c5   : > { %v3948_v39 = vmax.f32 %v3826_v28, %v3916_v40  ;;  %v3917_v46 = vmul.f32 0.01, %v3829_v30 }
 0x3c7   : > { %3980 = vst.msk [vmem:[%s8525_s14 + $0x60] sm:$0xff] %vm297_vm3, %v3948_v39  ;;  %v3949_v35 = vmax.f32 %v3829_v30, %v3917_v46 }
 0x3c9   : > { %3981 = vst.msk [vmem:[%s8525_s14 + $0x68] sm:$0xff] %vm297_vm3, %v3949_v35 }
 0x3cb   : > { %v4222_v37 = vpop.f32.mrb[24].mxu1 }
 0x3cc   : > { %v4223_v24 = vpop.f32.mrb[25].mxu1 }
 0x3cd   : > { %v4224_v18 = vadd.f32 %v4223_v24, %v4222_v37  ;;  %v4225_v25 = vpop.f32.mrb[26].mxu1 }
 0x3ce   : > { %v4226_v45 = vpop.f32.mrb[27].mxu1 }
 0x3cf   : > { %v3673_v23 = vadd.f32 %v4224_v18, %v8518_v15  ;;  %v4227_v1 = vadd.f32 %v4226_v45, %v4225_v25 }
 0x3d1   : > { %v3834_v44 = vadd.f32 %v8543_v53, %v3673_v23  ;;  %v3676_v7 = vadd.f32 %v4227_v1, %v8518_v15 }
 0x3d3   : > { %v3918_v29 = vmul.f32 0.01, %v3834_v44  ;;  %v3837_v12 = vadd.f32 %v8547_v5, %v3676_v7  ;;  %v4228_v56 = vpop.f32.mrb[28].mxu1 }
 0x3d4   : > { %v4229_v47 = vpop.f32.mrb[29].mxu1 }
 0x3d5   : > { %v3950_v38 = vmax.f32 %v3834_v44, %v3918_v29  ;;  %v3919_v32 = vmul.f32 0.01, %v3837_v12  ;;  %v4230_v41 = vadd.f32 %v4229_v47, %v4228_v56  ;;  %v4231_v19 = vpop.f32.mrb[30].mxu1 }
 0x3d6   : > { %v4232_v14 = vpop.f32.mrb[31].mxu1 }
 0x3d7   : > { %3982 = vst.msk [vmem:[%s8525_s14 + $0x70] sm:$0xff] %vm297_vm3, %v3950_v38  ;;  %v3951_v3 = vmax.f32 %v3837_v12, %v3919_v32  ;;  %v3681_v8 = vadd.f32 %v4230_v41, %v8518_v15  ;;  %v4233_v53 = vadd.f32 %v4232_v14, %v4231_v19 }
 0x3d9   : > { %3983 = vst.msk [vmem:[%s8525_s14 + $0x78] sm:$0xff] %vm297_vm3, %v3951_v3  ;;  %v3842_v60 = vadd.f32 %v8557_v20, %v3681_v8  ;;  %v3684_v5 = vadd.f32 %v4233_v53, %v8518_v15 }
 0x3db   : > { %v3920_v2 = vmul.f32 0.01, %v3842_v60  ;;  %v3845_v54 = vadd.f32 %v8561_v26, %v3684_v5 }
 0x3dd   : > { %v3952_v34 = vmax.f32 %v3842_v60, %v3920_v2  ;;  %v3921_v51 = vmul.f32 0.01, %v3845_v54 }
 0x3df   : > { %3984 = vst.msk [vmem:[%s8525_s14 + $0x80] sm:$0xff] %vm297_vm3, %v3952_v34  ;;  %v3953_v31 = vmax.f32 %v3845_v54, %v3921_v51 }
 0x3e1   : > { %3985 = vst.msk [vmem:[%s8525_s14 + $0x88] sm:$0xff] %vm297_vm3, %v3953_v31 }
 0x3e3   : > { %v4234_v63 = vpop.f32.mrb[32].mxu1 }
 0x3e4   : > { %v4235_v50 = vpop.f32.mrb[33].mxu1 }
 0x3e5   : > { %v4236_v22 = vadd.f32 %v4235_v50, %v4234_v63  ;;  %v4237_v11 = vpop.f32.mrb[34].mxu1 }
 0x3e6   : > { %v4238_v61 = vpop.f32.mrb[35].mxu1 }
 0x3e7   : > { %v3689_v20 = vadd.f32 %v4236_v22, %v8518_v15  ;;  %v4239_v21 = vadd.f32 %v4238_v61, %v4237_v11 }
 0x3e9   : > { %v3850_v9 = vadd.f32 %v8555_v62, %v3689_v20  ;;  %v3692_v26 = vadd.f32 %v4239_v21, %v8518_v15 }
 0x3eb   : > { %v3922_v42 = vmul.f32 0.01, %v3850_v9  ;;  %v3853_v4 = vadd.f32 %v8559_v10, %v3692_v26  ;;  %v4240_v49 = vpop.f32.mrb[36].mxu1 }
 0x3ec   : > { %v4241_v55 = vpop.f32.mrb[37].mxu1 }
 0x3ed   : > { %v3954_v17 = vmax.f32 %v3850_v9, %v3922_v42  ;;  %v3923_v28 = vmul.f32 0.01, %v3853_v4  ;;  %v4242_v58 = vadd.f32 %v4241_v55, %v4240_v49  ;;  %v4243_v40 = vpop.f32.mrb[38].mxu1 }
 0x3ee   : > { %v4244_v30 = vpop.f32.mrb[39].mxu1 }
 0x3ef   : > { %3986 = vst.msk [vmem:[%s8525_s14 + $0x90] sm:$0xff] %vm297_vm3, %v3954_v17  ;;  %v3955_v39 = vmax.f32 %v3853_v4, %v3923_v28  ;;  %v3697_v46 = vadd.f32 %v4242_v58, %v8518_v15  ;;  %v4245_v62 = vadd.f32 %v4244_v30, %v4243_v40 }
 0x3f1   : > { %3987 = vst.msk [vmem:[%s8525_s14 + $0x98] sm:$0xff] %vm297_vm3, %v3955_v39  ;;  %v3858_v35 = vadd.f32 %v8567_v27, %v3697_v46  ;;  %v3700_v10 = vadd.f32 %v4245_v62, %v8518_v15 }
 0x3f3   : > { %v3924_v37 = vmul.f32 0.01, %v3858_v35  ;;  %v3861_v24 = vadd.f32 %v8571_v6, %v3700_v10 }
 0x3f5   : > { %v3956_v18 = vmax.f32 %v3858_v35, %v3924_v37  ;;  %v3925_v25 = vmul.f32 0.01, %v3861_v24 }
 0x3f7   : > { %3988 = vst.msk [vmem:[%s8525_s14 + $0xa0] sm:$0xff] %vm297_vm3, %v3956_v18  ;;  %v3957_v45 = vmax.f32 %v3861_v24, %v3925_v25 }
 0x3f9   : > { %3989 = vst.msk [vmem:[%s8525_s14 + $0xa8] sm:$0xff] %vm297_vm3, %v3957_v45 }
 0x3fb   : > { %v4246_v23 = vpop.f32.mrb[40].mxu1 }
 0x3fc   : > { %v4247_v1 = vpop.f32.mrb[41].mxu1 }
 0x3fd   : > { %v4248_v44 = vadd.f32 %v4247_v1, %v4246_v23  ;;  %v4249_v7 = vpop.f32.mrb[42].mxu1 }
 0x3fe   : > { %v4250_v29 = vpop.f32.mrb[43].mxu1 }
 0x3ff   : > { %v3705_v27 = vadd.f32 %v4248_v44, %v8518_v15  ;;  %v4251_v12 = vadd.f32 %v4250_v29, %v4249_v7 }
 0x401   : > { %v3866_v56 = vadd.f32 %v8565_v0, %v3705_v27  ;;  %v3708_v6 = vadd.f32 %v4251_v12, %v8518_v15 }
 0x403   : > { %v3926_v47 = vmul.f32 0.01, %v3866_v56  ;;  %v3869_v38 = vadd.f32 %v8569_v43, %v3708_v6  ;;  %v4252_v32 = vpop.f32.mrb[44].mxu1 }
 0x404   : > { %v4253_v41 = vpop.f32.mrb[45].mxu1 }
 0x405   : > { %v3958_v19 = vmax.f32 %v3866_v56, %v3926_v47  ;;  %v3927_v14 = vmul.f32 0.01, %v3869_v38  ;;  %v4254_v3 = vadd.f32 %v4253_v41, %v4252_v32  ;;  %v4255_v8 = vpop.f32.mrb[46].mxu1 }
 0x406   : > { %v4256_v53 = vpop.f32.mrb[47].mxu1 }
 0x407   : > { %3990 = vst.msk [vmem:[%s8525_s14 + $0xb0] sm:$0xff] %vm297_vm3, %v3958_v19  ;;  %v3959_v60 = vmax.f32 %v3869_v38, %v3927_v14  ;;  %v3713_v5 = vadd.f32 %v4254_v3, %v8518_v15  ;;  %v4257_v2 = vadd.f32 %v4256_v53, %v4255_v8 }
 0x409   : > { %3991 = vst.msk [vmem:[%s8525_s14 + $0xb8] sm:$0xff] %vm297_vm3, %v3959_v60  ;;  %v3874_v0 = vadd.f32 %v8581_v36, %v3713_v5  ;;  %v3716_v43 = vadd.f32 %v4257_v2, %v8518_v15 }
 0x40b   : > { %v3928_v54 = vmul.f32 0.01, %v3874_v0  ;;  %v3877_v34 = vadd.f32 %v8585_v57, %v3716_v43  ;;  %v4258_v51 = vpop.f32.mrb[48].mxu1 }
 0x40c   : > { %v4259_v31 = vpop.f32.mrb[49].mxu1 }
 0x40d   : > { %v3960_v63 = vmax.f32 %v3874_v0, %v3928_v54  ;;  %v3929_v50 = vmul.f32 0.01, %v3877_v34  ;;  %v4260_v22 = vadd.f32 %v4259_v31, %v4258_v51  ;;  %v4261_v11 = vpop.f32.mrb[50].mxu1 }
 0x40e   : > { %v4262_v61 = vpop.f32.mrb[51].mxu1 }
 0x40f   : > { %3992 = vst.msk [vmem:[%s8525_s14 + $0xc0] sm:$0xff] %vm297_vm3, %v3960_v63  ;;  %v3961_v20 = vmax.f32 %v3877_v34, %v3929_v50  ;;  %v3721_v21 = vadd.f32 %v4260_v22, %v8518_v15  ;;  %v4263_v9 = vadd.f32 %v4262_v61, %v4261_v11 }
 0x411   : > { %3993 = vst.msk [vmem:[%s8525_s14 + $0xc8] sm:$0xff] %vm297_vm3, %v3961_v20  ;;  %v3882_v36 = vadd.f32 %v8579_v16, %v3721_v21  ;;  %v3724_v57 = vadd.f32 %v4263_v9, %v8518_v15 }
 0x413   : > { %v3930_v26 = vmul.f32 0.01, %v3882_v36  ;;  %v3885_v42 = vadd.f32 %v8583_v52, %v3724_v57  ;;  %v4264_v4 = vpop.f32.mrb[52].mxu1 }
 0x414   : > { %v4265_v49 = vpop.f32.mrb[53].mxu1 }
 0x415   : > { %v3962_v55 = vmax.f32 %v3882_v36, %v3930_v26  ;;  %v3931_v17 = vmul.f32 0.01, %v3885_v42  ;;  %v4266_v28 = vadd.f32 %v4265_v49, %v4264_v4  ;;  %v4267_v58 = vpop.f32.mrb[54].mxu1 }
 0x416   : > { %v4268_v40 = vpop.f32.mrb[55].mxu1 }
 0x417   : > { %3994 = vst.msk [vmem:[%s8525_s14 + $0xd0] sm:$0xff] %vm297_vm3, %v3962_v55  ;;  %v3963_v30 = vmax.f32 %v3885_v42, %v3931_v17  ;;  %v4269_v39 = vadd.f32 %v4268_v40, %v4267_v58  ;;  %v3729_v16 = vadd.f32 %v4266_v28, %v8518_v15 }
 0x419   : > { %3995 = vst.msk [vmem:[%s8525_s14 + $0xd8] sm:$0xff] %vm297_vm3, %v3963_v30  ;;  %v3890_v46 = vadd.f32 %v8593_v33, %v3729_v16  ;;  %v3732_v52 = vadd.f32 %v4269_v39, %v8518_v15 }
 0x41b   : > { %v3932_v62 = vmul.f32 0.01, %v3890_v46  ;;  %v3893_v35 = vadd.f32 %v8597_v13, %v3732_v52 }
 0x41d   : > { %v3964_v10 = vmax.f32 %v3890_v46, %v3932_v62  ;;  %v3933_v37 = vmul.f32 0.01, %v3893_v35 }
 0x41e   : > { %v4270_v24 = vpop.f32.mrb[56].mxu1 }
 0x41f   : > { %3996 = vst.msk [vmem:[%s8525_s14 + $0xe0] sm:$0xff] %vm297_vm3, %v3964_v10  ;;  %v3965_v18 = vmax.f32 %v3893_v35, %v3933_v37  ;;  %v4271_v25 = vpop.f32.mrb[57].mxu1 }
 0x420   : > { %v4272_v45 = vadd.f32 %v4271_v25, %v4270_v24  ;;  %v4273_v23 = vpop.f32.mrb[58].mxu1 }
 0x421   : > { %3997 = vst.msk [vmem:[%s8525_s14 + $0xe8] sm:$0xff] %vm297_vm3, %v3965_v18  ;;  %v4274_v33 = vpop.f32.mrb[59].mxu1 }
 0x422   : > { %v3737_v1 = vadd.f32 %v4272_v45, %v8518_v15  ;;  %v4275_v13 = vadd.f32 %v4274_v33, %v4273_v23 }
 0x424   : > { %v3898_v44 = vadd.f32 %v8591_v48, %v3737_v1  ;;  %v3740_v7 = vadd.f32 %v4275_v13, %v8518_v15 }
 0x426   : > { %v3934_v29 = vmul.f32 0.01, %v3898_v44  ;;  %v3901_v27 = vadd.f32 %v8595_v59, %v3740_v7 }
 0x428   : > { %v3966_v12 = vmax.f32 %v3898_v44, %v3934_v29  ;;  %v3935_v56 = vmul.f32 0.01, %v3901_v27 }
 0x42a   : > { %3998 = vst.msk [vmem:[%s8525_s14 + $0xf0] sm:$0xff] %vm297_vm3, %v3966_v12  ;;  %v3967_v6 = vmax.f32 %v3901_v27, %v3935_v56 }
 0x42c   : > { %3999 = vst.msk [vmem:[%s8525_s14 + $0xf8] sm:$0xff] %vm297_vm3, %v3967_v6 }
 0x42d   : > { %5629 = shalt.err (!%p5626_p3)
}
 0x42e   : > { %s5630_s12 = scalar_lea.hbm %s8688_s26, 4096  ;;  %s5634_s25 = scalar_lea.hbm %s8745_s5, 8192 }
 0x42f   : > { %p5631_p4 = scmp.ne.s32.totalorder %s8688_s26, %s5630_s12  ;;  %p5635_p9 = scmp.lt.u32.totalorder %s8688_s26, %s8745_s5 }
 0x430   : > { %p5636_p10 = scmp.lt.u32.totalorder %s5634_s25, %s5630_s12  ;;  %p5638_p12 = scmp.lt.u32.totalorder %s5630_s12, %s8688_s26 }
 0x431   : > { %p5632_p7 = pnand %p5631_p4, %p5761_p5 }
 0x432   : > { %p5637_p11 = por %p5636_p10, %p5635_p9 }
 0x433   : > { %p5633_p8 = pneg %p5632_p7 }
 0x434   : > { %p5639_p13 = por %p5638_p12, %p5637_p11 }
 0x436   : > { %p5640_p0 = pnand %p5639_p13, %p5633_p8 }
 0x438   : > { %5643 = shalt.err (!%p5640_p0)
}
 0x439   : > { %s5692_s15 = smov 128  }
 0x43a   : > { %4385 = dma.vmem_to_hbm [thread:$0]  (%p5761_p5), %s8692_s16, 4096, %s8688_s26, %s8698_s22, %s5692_s15, %s5692_s15, %s5682_s11  }
 0x43b PF: > { %p4391_p1 = scmp.ge.s32.totalorder %s5678_s21, 2  ;;  %s4029_s17 = sand.u32 1, %s5666_s18  }
 0x43c   : > { %s4030_s23 = scalar_lea.sflag [#allocation5], %s4029_s17 }
 0x43d   : > { %p4388_p2 = pnand %p4391_p1, %p5765_p6 }
 0x43f   : > { %5661 = dma.done.wait (!%p4388_p2), %s4030_s23, 4096  }
 0x440   : > { %5663 = vsyncadd (!%p4388_p2), %s4030_s23, 4294963200  ;;  %p15_p3 = scmp.ge.s32.totalorder %s5748_s24, 4   ;;  %s8993_s18 = smov %s5670_s19 }
 0x441   : > { %s8994_s19 = smov %s5674_s20  ;;  %s8995_s20 = smov %s5759_s27 }
 0x442   : > { %s8996_s21 = smov %s5748_s24  ;;  %17 = sbr.rel (!%p15_p3) target bundleno = 3 (0x3), region = 77 }
 0x449   :  { %4035 = vsyncpa [#allocation5], 1 }
 0x44a   :  { %4037 = vsyncpa [#allocation5 + $0x1], 1 }

</bundles_post_ra>
